<compile_context>
chip_gen: v6e
topology: v6e:2x2x1
jax: 0.10.0
libtpu: 0.0.40
codegen_flags: <defaults>
</compile_context>

<pallas_src>
import functools

import jax
import jax.numpy as jnp
from jax.experimental import pallas as pl
from jax.experimental.pallas import tpu as pltpu

EPS = 1e-5  # torch.nn.LayerNorm default eps


def _round_up(x, m):
    return ((x + m - 1) // m) * m


def _layernorm(x, gamma, beta):
    mu = jnp.mean(x, axis=-1, keepdims=True)
    var = jnp.mean((x - mu) ** 2, axis=-1, keepdims=True)
    return (x - mu) * jax.lax.rsqrt(var + EPS) * gamma + beta


def _default_bf16_act():
    # v6e/v7x VPUs have native bf16 elementwise (2 elem/lane); v4/v5 do not -> keep f32.
    try:
        kind = jax.devices()[0].device_kind.lower()
    except Exception:
        return True
    return not any(t in kind for t in ("v2", "v3", "v4", "v5"))


def _make_overlap_kernel(bf16_act):
    bf16 = jnp.bfloat16
    f32 = jnp.float32

    def dot(a, w_ref):
        # bf16 operands, f32 MXU accumulation (native on v5e/v6e/v7x).
        return jnp.dot(a.astype(bf16), w_ref[...], preferred_element_type=f32)

    def act(x_f32):
        # Non-LayerNorm layers: bias already added in f32; ReLU in bf16 on v6e/v7x
        # (halves VALU work + vreg pressure), f32 on older generations.
        if bf16_act:
            return jax.nn.relu(x_f32.astype(bf16))
        return jax.nn.relu(x_f32)

    relu = jax.nn.relu

    def overlap_kernel(pcd_ref, pts_ref, idx_ref, img_tab_ref,
                       wp, bp, gp, btp,
                       w1, b1, w2, b2, w3, b3, g3, bt3,
                       wo1p, wo1i, wo1t, bo1,
                       wo2, bo2, wo3, bo3, wo4, bo4, wo5, bo5,
                       wo6, bo6,
                       out_ref):
        # --- pcd_mlp: Linear(1024,512) + LN + ReLU (LN/ReLU stay f32) ---
        pcd_c = relu(_layernorm(dot(pcd_ref[...], wp) + bp[...], gp[...], btp[...]))

        # --- img branch: img_mlp already applied per batch item outside the kernel.
        #     repeat_interleave == exact row gather from the VMEM-resident bf16 [b_pad,512]
        #     table, implemented as a bf16 one-hot matmul (no dynamic gather, no f32 MXU op).
        idx = idx_ref[...]                                    # (tile_n, 1) int32
        b_pad = img_tab_ref.shape[0]
        one_hot = (jax.lax.broadcasted_iota(jnp.int32, (idx.shape[0], b_pad), 1)
                   == idx).astype(bf16)
        img_c = jnp.dot(one_hot, img_tab_ref[...], preferred_element_type=f32)

        # --- point_mlp (coords zero-padded 3 -> 8 lanes; matching w1 rows are zero) ---
        p = act(dot(pts_ref[...], w1) + b1[...])
        p = act(dot(p, w2) + b2[...])
        p = relu(_layernorm(dot(p, w3) + b3[...], g3[...], bt3[...]))

        # --- overlap_estimator head. Linear(1152,512) as a split matmul over the concat
        #     blocks: cat([pcd,img,p]) @ W == pcd@W[:512] + img@W[512:1024] + p@W[1024:]
        h = act(dot(pcd_c, wo1p) + dot(img_c, wo1i) + dot(p, wo1t) + bo1[...])
        h = act(dot(h, wo2) + bo2[...])
        h = act(dot(h, wo3) + bo3[...])
        h = act(dot(h, wo4) + bo4[...])
        h = act(dot(h, wo5) + bo5[...])
        # wo6/bo6 padded to 8 output lanes; column 0 holds the result. Store stays f32.
        out_ref[...] = dot(h, wo6) + bo6[...]

    return overlap_kernel


def overlap_estimator_forward(params, pcd_feats, global_img_feats, pcd_points_c,
                              pcd_lengths, tile_n=512, bf16_act=None):
    (wi, bi, gi, bti, wp, bp, gp, btp,
     w1p, b1, w2, b2, w3, b3, g3, bt3,
     wo1, bo1, wo2, bo2, wo3, bo3, wo4, bo4, wo5, bo5, wo6, bo6) = params

    N = pcd_feats.shape[0]
    B = global_img_feats.shape[0]
    bf16 = jnp.bfloat16
    if bf16_act is None:
        bf16_act = _default_bf16_act()

    # Hoist img_mlp: run once per batch item (B rows, N >> B in practice) in f32, then keep
    # a tiny bf16 table resident in VMEM for the per-row gather inside the kernel.
    img_c = jax.nn.relu(_layernorm(global_img_feats @ wi + bi, gi, bti))
    b_pad = _round_up(max(B, 1), 16)                 # 16: bf16 sublane packing
    img_tab = jnp.zeros((b_pad, 512), bf16).at[:B].set(img_c.astype(bf16))

    # repeat_interleave(pcd_lengths) -> per-row batch index consumed inside the kernel.
    # Caller contract: sum(pcd_lengths) == N (jnp.repeat with total_repeat_length silently
    # truncates/pads otherwise).
    row_idx = jnp.repeat(jnp.arange(B, dtype=jnp.int32), pcd_lengths,
                         total_repeat_length=N)

    # Zero-pad point coords 3 -> 8 lanes (exact because matching w1 rows are zero).
    pts = jnp.zeros((N, 8), jnp.float32).at[:, :3].set(pcd_points_c)

    # Row tiling: big tiles amortize per-grid-step overhead; clamp for tiny N.
    # VMEM at tile_n=512: ~1 MB pcd tile x2 buffers + ~2.6 MB bf16 weights x2 << 48 MiB.
    tile_n = max(8, min(_round_up(int(tile_n), 8), _round_up(N, 8)))
    n_pad = _round_up(N, tile_n)
    if n_pad != N:
        pad = n_pad - N
        pcd_feats = jnp.pad(pcd_feats, ((0, pad), (0, 0)))
        pts = jnp.pad(pts, ((0, pad), (0, 0)))
        row_idx = jnp.pad(row_idx, (0, pad))

    pcd_bf = pcd_feats.astype(bf16)
    pts_bf = pts.astype(bf16)
    idx2d = row_idx.reshape(n_pad, 1)

    # Weights: bf16 matmul operands, f32 biases/LN params. Head weight split along the
    # concat boundaries; final Linear(32,1) zero-padded to 8 output lanes (lane-light store).
    wo6_pad = jnp.zeros((wo6.shape[0], 8), jnp.float32).at[:, :1].set(wo6)
    bo6_pad = jnp.zeros((1, 8), jnp.float32).at[:, :1].set(bo6)
    weights = [
        wp.astype(bf16), bp, gp, btp,
        w1p.astype(bf16), b1, w2.astype(bf16), b2, w3.astype(bf16), b3, g3, bt3,
        wo1[:512].astype(bf16), wo1[512:1024].astype(bf16), wo1[1024:].astype(bf16), bo1,
        wo2.astype(bf16), bo2, wo3.astype(bf16), bo3, wo4.astype(bf16), bo4,
        wo5.astype(bf16), bo5,
        wo6_pad.astype(bf16), bo6_pad,
    ]

    data_specs = [
        pl.BlockSpec((tile_n, 1024), lambda i: (i, 0)),
        pl.BlockSpec((tile_n, 8), lambda i: (i, 0)),
        pl.BlockSpec((tile_n, 1), lambda i: (i, 0)),
        pl.BlockSpec((b_pad, 512), lambda i: (0, 0)),   # img table, VMEM-resident
    ]
    # Constant index map -> weight blocks DMA'd once, stay resident across grid steps.
    w_specs = [pl.BlockSpec(w.shape, lambda i: (0, 0)) for w in weights]

    # Advisory cost estimate so XLA schedules the hoisted img_mlp / prep around the call.
    flops_row = 2 * (1024 * 512 + 8 * 32 + 32 * 64 + 64 * 128 + b_pad * 512
                     + 512 * 512 + 512 * 512 + 128 * 512
                     + 512 * 256 + 256 * 128 + 128 * 64 + 64 * 32 + 32 * 8)
    weight_bytes = sum(int(w.size) * w.dtype.itemsize for w in weights)
    cost = pl.CostEstimate(
        flops=int(n_pad) * flops_row,
        transcendentals=2 * int(n_pad),               # two LayerNorm rsqrt per row
        bytes_accessed=int(n_pad) * (1024 * 2 + 8 * 2 + 4 + 8 * 4)
                       + weight_bytes + b_pad * 512 * 2,
    )

    out = pl.pallas_call(
        _make_overlap_kernel(bf16_act),
        out_shape=jax.ShapeDtypeStruct((n_pad, 8), jnp.float32),
        grid=(n_pad // tile_n,),
        in_specs=data_specs + w_specs,
        out_specs=pl.BlockSpec((tile_n, 8), lambda i: (i, 0)),
        compiler_params=pltpu.CompilerParams(
            dimension_semantics=("parallel",),
            vmem_limit_bytes=48 * 1024 * 1024),       # fits v7x's 64 MiB physical VMEM
        cost_estimate=cost,
    )(pcd_bf, pts_bf, idx2d, img_tab, *weights)
    return out[:N, 0]  # .squeeze()


def init_params(key):
    keys = iter(jax.random.split(key, 32))

    def W(din, dout, scale=0.02):
        return jax.random.normal(next(keys), (din, dout), jnp.float32) * scale

    def b(d):
        return jax.random.normal(next(keys), (1, d), jnp.float32) * 0.01

    wi, bi = W(512, 512), b(512)
    gi, bti = jnp.ones((1, 512), jnp.float32), jnp.zeros((1, 512), jnp.float32)
    wp, bp = W(1024, 512), b(512)
    gp, btp = jnp.ones((1, 512), jnp.float32), jnp.zeros((1, 512), jnp.float32)
    w1, b1 = W(3, 32), b(32)
    w2, b2 = W(32, 64), b(64)
    w3, b3 = W(64, 128), b(128)
    g3, bt3 = jnp.ones((1, 128), jnp.float32), jnp.zeros((1, 128), jnp.float32)
    wo1, bo1 = W(1152, 512), b(512)
    wo2, bo2 = W(512, 256), b(256)
    wo3, bo3 = W(256, 128), b(128)
    wo4, bo4 = W(128, 64), b(64)
    wo5, bo5 = W(64, 32), b(32)
    wo6, bo6 = W(32, 1), b(1)
    w1_pad = jnp.zeros((8, 32), jnp.float32).at[:3].set(w1)  # zero-padded first point Linear
    return (wi, bi, gi, bti, wp, bp, gp, btp,
            w1_pad, b1, w2, b2, w3, b3, g3, bt3,
            wo1, bo1, wo2, bo2, wo3, bo3, wo4, bo4, wo5, bo5, wo6, bo6)


def reference_forward(params, pcd_feats, global_img_feats, pcd_points_c, pcd_lengths):
    (wi, bi, gi, bti, wp, bp, gp, btp,
     w1p, b1, w2, b2, w3, b3, g3, bt3,
     wo1, bo1, wo2, bo2, wo3, bo3, wo4, bo4, wo5, bo5, wo6, bo6) = params
    relu = jax.nn.relu
    img = relu(_layernorm(global_img_feats @ wi + bi, gi, bti))
    N = pcd_feats.shape[0]
    img = jnp.repeat(img, pcd_lengths, axis=0, total_repeat_length=N)
    pcd = relu(_layernorm(pcd_feats @ wp + bp, gp, btp))
    p = relu(pcd_points_c @ w1p[:3] + b1)
    p = relu(p @ w2 + b2)
    p = relu(_layernorm(p @ w3 + b3, g3, bt3))
    f = jnp.concatenate([pcd, img, p], axis=1)
    h = relu(f @ wo1 + bo1)
    h = relu(h @ wo2 + bo2)
    h = relu(h @ wo3 + bo3)
    h = relu(h @ wo4 + bo4)
    h = relu(h @ wo5 + bo5)
    return (h @ wo6 + bo6)[:, 0]


if __name__ == "__main__":
    key = jax.random.PRNGKey(0)
    kp, k1, k2, k3 = jax.random.split(key, 4)
    params = init_params(kp)

    B = 2
    pcd_lengths = jnp.array([9, 7], dtype=jnp.int32)   # N = 16 points total
    N = 16
    pcd_feats = jax.random.normal(k1, (N, 1024), jnp.float32)
    global_img_feats = jax.random.normal(k2, (B, 512), jnp.float32)
    pcd_points_c = jax.random.normal(k3, (N, 3), jnp.float32)

    out = overlap_estimator_forward(params, pcd_feats, global_img_feats,
                                    pcd_points_c, pcd_lengths)
    out = jax.block_until_ready(out)
    assert out.shape == (N,)

    ref = reference_forward(params, pcd_feats, global_img_feats, pcd_points_c, pcd_lengths)
    if not bool(jnp.allclose(out, ref, rtol=1e-2, atol=1e-2)):
        raise AssertionError("Pallas kernel mismatch vs reference, max abs diff = "
                             f"{float(jnp.max(jnp.abs(out - ref)))}")
    print("KERNEL_OK")
</pallas_src>

<mosaic_0001>
module attributes {stable_mosaic.version = 11 : i64} {
  func.func @overlap_kernel(%arg0: i32, %arg1: memref<16x1024xbf16, #tpu.memory_space<vmem>>, %arg2: memref<16x8xbf16, #tpu.memory_space<vmem>>, %arg3: memref<16x1xi32, #tpu.memory_space<vmem>>, %arg4: memref<16x512xbf16, #tpu.memory_space<vmem>>, %arg5: memref<1024x512xbf16, #tpu.memory_space<vmem>>, %arg6: memref<1x512xf32, #tpu.memory_space<vmem>>, %arg7: memref<1x512xf32, #tpu.memory_space<vmem>>, %arg8: memref<1x512xf32, #tpu.memory_space<vmem>>, %arg9: memref<8x32xbf16, #tpu.memory_space<vmem>>, %arg10: memref<1x32xf32, #tpu.memory_space<vmem>>, %arg11: memref<32x64xbf16, #tpu.memory_space<vmem>>, %arg12: memref<1x64xf32, #tpu.memory_space<vmem>>, %arg13: memref<64x128xbf16, #tpu.memory_space<vmem>>, %arg14: memref<1x128xf32, #tpu.memory_space<vmem>>, %arg15: memref<1x128xf32, #tpu.memory_space<vmem>>, %arg16: memref<1x128xf32, #tpu.memory_space<vmem>>, %arg17: memref<512x512xbf16, #tpu.memory_space<vmem>>, %arg18: memref<512x512xbf16, #tpu.memory_space<vmem>>, %arg19: memref<128x512xbf16, #tpu.memory_space<vmem>>, %arg20: memref<1x512xf32, #tpu.memory_space<vmem>>, %arg21: memref<512x256xbf16, #tpu.memory_space<vmem>>, %arg22: memref<1x256xf32, #tpu.memory_space<vmem>>, %arg23: memref<256x128xbf16, #tpu.memory_space<vmem>>, %arg24: memref<1x128xf32, #tpu.memory_space<vmem>>, %arg25: memref<128x64xbf16, #tpu.memory_space<vmem>>, %arg26: memref<1x64xf32, #tpu.memory_space<vmem>>, %arg27: memref<64x32xbf16, #tpu.memory_space<vmem>>, %arg28: memref<1x32xf32, #tpu.memory_space<vmem>>, %arg29: memref<32x8xbf16, #tpu.memory_space<vmem>>, %arg30: memref<1x8xf32, #tpu.memory_space<vmem>>, %arg31: memref<16x8xf32, #tpu.memory_space<vmem>>) attributes {dimension_semantics = [#tpu.dimension_semantics<parallel>], iteration_bounds = array<i64: 1>, scalar_prefetch = 0 : i64, scratch_operands = 0 : i64, tpu.core_type = #tpu.core_type<tc>, window_params = [{transform_indices = @transform_0, window_bounds = array<i64: 16, 1024>}, {transform_indices = @transform_1, window_bounds = array<i64: 16, 8>}, {transform_indices = @transform_2, window_bounds = array<i64: 16, 1>}, {pipeline_mode = #tpu.pipeline_mode<synchronous>, transform_indices = @transform_3, window_bounds = array<i64: 16, 512>}, {pipeline_mode = #tpu.pipeline_mode<synchronous>, transform_indices = @transform_4, window_bounds = array<i64: 1024, 512>}, {pipeline_mode = #tpu.pipeline_mode<synchronous>, transform_indices = @transform_5, window_bounds = array<i64: 1, 512>}, {pipeline_mode = #tpu.pipeline_mode<synchronous>, transform_indices = @transform_6, window_bounds = array<i64: 1, 512>}, {pipeline_mode = #tpu.pipeline_mode<synchronous>, transform_indices = @transform_7, window_bounds = array<i64: 1, 512>}, {pipeline_mode = #tpu.pipeline_mode<synchronous>, transform_indices = @transform_8, window_bounds = array<i64: 8, 32>}, {pipeline_mode = #tpu.pipeline_mode<synchronous>, transform_indices = @transform_9, window_bounds = array<i64: 1, 32>}, {pipeline_mode = #tpu.pipeline_mode<synchronous>, transform_indices = @transform_10, window_bounds = array<i64: 32, 64>}, {pipeline_mode = #tpu.pipeline_mode<synchronous>, transform_indices = @transform_11, window_bounds = array<i64: 1, 64>}, {pipeline_mode = #tpu.pipeline_mode<synchronous>, transform_indices = @transform_12, window_bounds = array<i64: 64, 128>}, {pipeline_mode = #tpu.pipeline_mode<synchronous>, transform_indices = @transform_13, window_bounds = array<i64: 1, 128>}, {pipeline_mode = #tpu.pipeline_mode<synchronous>, transform_indices = @transform_14, window_bounds = array<i64: 1, 128>}, {pipeline_mode = #tpu.pipeline_mode<synchronous>, transform_indices = @transform_15, window_bounds = array<i64: 1, 128>}, {pipeline_mode = #tpu.pipeline_mode<synchronous>, transform_indices = @transform_16, window_bounds = array<i64: 512, 512>}, {pipeline_mode = #tpu.pipeline_mode<synchronous>, transform_indices = @transform_17, window_bounds = array<i64: 512, 512>}, {pipeline_mode = #tpu.pipeline_mode<synchronous>, transform_indices = @transform_18, window_bounds = array<i64: 128, 512>}, {pipeline_mode = #tpu.pipeline_mode<synchronous>, transform_indices = @transform_19, window_bounds = array<i64: 1, 512>}, {pipeline_mode = #tpu.pipeline_mode<synchronous>, transform_indices = @transform_20, window_bounds = array<i64: 512, 256>}, {pipeline_mode = #tpu.pipeline_mode<synchronous>, transform_indices = @transform_21, window_bounds = array<i64: 1, 256>}, {pipeline_mode = #tpu.pipeline_mode<synchronous>, transform_indices = @transform_22, window_bounds = array<i64: 256, 128>}, {pipeline_mode = #tpu.pipeline_mode<synchronous>, transform_indices = @transform_23, window_bounds = array<i64: 1, 128>}, {pipeline_mode = #tpu.pipeline_mode<synchronous>, transform_indices = @transform_24, window_bounds = array<i64: 128, 64>}, {pipeline_mode = #tpu.pipeline_mode<synchronous>, transform_indices = @transform_25, window_bounds = array<i64: 1, 64>}, {pipeline_mode = #tpu.pipeline_mode<synchronous>, transform_indices = @transform_26, window_bounds = array<i64: 64, 32>}, {pipeline_mode = #tpu.pipeline_mode<synchronous>, transform_indices = @transform_27, window_bounds = array<i64: 1, 32>}, {pipeline_mode = #tpu.pipeline_mode<synchronous>, transform_indices = @transform_28, window_bounds = array<i64: 32, 8>}, {pipeline_mode = #tpu.pipeline_mode<synchronous>, transform_indices = @transform_29, window_bounds = array<i64: 1, 8>}, {transform_indices = @transform_30, window_bounds = array<i64: 16, 8>}]} {
    %c0 = arith.constant 0 : index
    %c0_0 = arith.constant 0 : index
    %0 = vector.load %arg1[%c0, %c0_0] : memref<16x1024xbf16, #tpu.memory_space<vmem>>, vector<16x1024xbf16>
    %c0_1 = arith.constant 0 : index
    %c0_2 = arith.constant 0 : index
    %1 = vector.load %arg5[%c0_1, %c0_2] : memref<1024x512xbf16, #tpu.memory_space<vmem>>, vector<1024x512xbf16>
    %cst = arith.constant dense<0.000000e+00> : vector<16x512xf32>
    %2 = tpu.matmul %0, %1, %cst {dimension_numbers = #tpu.dot_dimension_numbers<[1], [0], [0], [1], [0, 0, 1, 1], [], []>} : vector<16x1024xbf16>, vector<1024x512xbf16>, vector<16x512xf32> -> vector<16x512xf32>
    %c0_3 = arith.constant 0 : index
    %c0_4 = arith.constant 0 : index
    %3 = vector.load %arg6[%c0_3, %c0_4] : memref<1x512xf32, #tpu.memory_space<vmem>>, vector<1x512xf32>
    %4 = vector.broadcast %3 : vector<1x512xf32> to vector<16x512xf32>
    %5 = arith.addf %2, %4 : vector<16x512xf32>
    %c0_5 = arith.constant 0 : index
    %c0_6 = arith.constant 0 : index
    %6 = vector.load %arg7[%c0_5, %c0_6] : memref<1x512xf32, #tpu.memory_space<vmem>>, vector<1x512xf32>
    %c0_7 = arith.constant 0 : index
    %c0_8 = arith.constant 0 : index
    %7 = vector.load %arg8[%c0_7, %c0_8] : memref<1x512xf32, #tpu.memory_space<vmem>>, vector<1x512xf32>
    %cst_9 = arith.constant dense<0.000000e+00> : vector<16xf32>
    %8 = vector.multi_reduction <add>, %5, %cst_9 [1] : vector<16x512xf32> to vector<16xf32>
    %9 = vector.shape_cast %8 : vector<16xf32> to vector<16x1xf32>
    %cst_10 = arith.constant 5.120000e+02 : f32
    %10 = vector.broadcast %cst_10 : f32 to vector<16x1xf32>
    %11 = arith.divf %9, %10 : vector<16x1xf32>
    %12 = vector.broadcast %11 : vector<16x1xf32> to vector<16x512xf32>
    %13 = arith.subf %5, %12 : vector<16x512xf32>
    %14 = arith.mulf %13, %13 : vector<16x512xf32>
    %cst_11 = arith.constant dense<0.000000e+00> : vector<16xf32>
    %15 = vector.multi_reduction <add>, %14, %cst_11 [1] : vector<16x512xf32> to vector<16xf32>
    %16 = vector.shape_cast %15 : vector<16xf32> to vector<16x1xf32>
    %cst_12 = arith.constant 5.120000e+02 : f32
    %17 = vector.broadcast %cst_12 : f32 to vector<16x1xf32>
    %18 = arith.divf %16, %17 : vector<16x1xf32>
    %19 = vector.broadcast %11 : vector<16x1xf32> to vector<16x512xf32>
    %20 = arith.subf %5, %19 : vector<16x512xf32>
    %cst_13 = arith.constant 9.99999974E-6 : f32
    %21 = vector.broadcast %cst_13 : f32 to vector<16x1xf32>
    %22 = arith.addf %18, %21 : vector<16x1xf32>
    %23 = math.rsqrt %22 : vector<16x1xf32>
    %24 = vector.broadcast %23 : vector<16x1xf32> to vector<16x512xf32>
    %25 = arith.mulf %20, %24 : vector<16x512xf32>
    %26 = vector.broadcast %6 : vector<1x512xf32> to vector<16x512xf32>
    %27 = arith.mulf %25, %26 : vector<16x512xf32>
    %28 = vector.broadcast %7 : vector<1x512xf32> to vector<16x512xf32>
    %29 = arith.addf %27, %28 : vector<16x512xf32>
    %cst_14 = arith.constant 0.000000e+00 : f32
    %30 = vector.broadcast %cst_14 : f32 to vector<16x512xf32>
    %31 = arith.maximumf %29, %30 : vector<16x512xf32>
    %c0_15 = arith.constant 0 : index
    %c0_16 = arith.constant 0 : index
    %32 = vector.load %arg3[%c0_15, %c0_16] : memref<16x1xi32, #tpu.memory_space<vmem>>, vector<16x1xi32>
    %33 = tpu.iota {dimensions = array<i32: 1>} : vector<16x16xi32>
    %34 = vector.broadcast %32 : vector<16x1xi32> to vector<16x16xi32>
    %35 = arith.cmpi eq, %33, %34 : vector<16x16xi32>
    %36 = arith.extui %35 : vector<16x16xi1> to vector<16x16xi32>
    %37 = arith.sitofp %36 : vector<16x16xi32> to vector<16x16xf32>
    %38 = arith.truncf %37 : vector<16x16xf32> to vector<16x16xbf16>
    %c0_17 = arith.constant 0 : index
    %c0_18 = arith.constant 0 : index
    %39 = vector.load %arg4[%c0_17, %c0_18] : memref<16x512xbf16, #tpu.memory_space<vmem>>, vector<16x512xbf16>
    %cst_19 = arith.constant dense<0.000000e+00> : vector<16x512xf32>
    %40 = tpu.matmul %38, %39, %cst_19 {dimension_numbers = #tpu.dot_dimension_numbers<[1], [0], [0], [1], [0, 0, 1, 1], [], []>} : vector<16x16xbf16>, vector<16x512xbf16>, vector<16x512xf32> -> vector<16x512xf32>
    %c0_20 = arith.constant 0 : index
    %c0_21 = arith.constant 0 : index
    %41 = vector.load %arg2[%c0_20, %c0_21] : memref<16x8xbf16, #tpu.memory_space<vmem>>, vector<16x8xbf16>
    %c0_22 = arith.constant 0 : index
    %c0_23 = arith.constant 0 : index
    %42 = vector.load %arg9[%c0_22, %c0_23] : memref<8x32xbf16, #tpu.memory_space<vmem>>, vector<8x32xbf16>
    %cst_24 = arith.constant dense<0.000000e+00> : vector<16x32xf32>
    %43 = tpu.matmul %41, %42, %cst_24 {dimension_numbers = #tpu.dot_dimension_numbers<[1], [0], [0], [1], [0, 0, 1, 1], [], []>} : vector<16x8xbf16>, vector<8x32xbf16>, vector<16x32xf32> -> vector<16x32xf32>
    %c0_25 = arith.constant 0 : index
    %c0_26 = arith.constant 0 : index
    %44 = vector.load %arg10[%c0_25, %c0_26] : memref<1x32xf32, #tpu.memory_space<vmem>>, vector<1x32xf32>
    %45 = vector.broadcast %44 : vector<1x32xf32> to vector<16x32xf32>
    %46 = arith.addf %43, %45 : vector<16x32xf32>
    %47 = arith.truncf %46 : vector<16x32xf32> to vector<16x32xbf16>
    %cst_27 = arith.constant 0.000000e+00 : bf16
    %48 = vector.broadcast %cst_27 : bf16 to vector<16x32xbf16>
    %49 = arith.maximumf %47, %48 : vector<16x32xbf16>
    %c0_28 = arith.constant 0 : index
    %c0_29 = arith.constant 0 : index
    %50 = vector.load %arg11[%c0_28, %c0_29] : memref<32x64xbf16, #tpu.memory_space<vmem>>, vector<32x64xbf16>
    %cst_30 = arith.constant dense<0.000000e+00> : vector<16x64xf32>
    %51 = tpu.matmul %49, %50, %cst_30 {dimension_numbers = #tpu.dot_dimension_numbers<[1], [0], [0], [1], [0, 0, 1, 1], [], []>} : vector<16x32xbf16>, vector<32x64xbf16>, vector<16x64xf32> -> vector<16x64xf32>
    %c0_31 = arith.constant 0 : index
    %c0_32 = arith.constant 0 : index
    %52 = vector.load %arg12[%c0_31, %c0_32] : memref<1x64xf32, #tpu.memory_space<vmem>>, vector<1x64xf32>
    %53 = vector.broadcast %52 : vector<1x64xf32> to vector<16x64xf32>
    %54 = arith.addf %51, %53 : vector<16x64xf32>
    %55 = arith.truncf %54 : vector<16x64xf32> to vector<16x64xbf16>
    %cst_33 = arith.constant 0.000000e+00 : bf16
    %56 = vector.broadcast %cst_33 : bf16 to vector<16x64xbf16>
    %57 = arith.maximumf %55, %56 : vector<16x64xbf16>
    %c0_34 = arith.constant 0 : index
    %c0_35 = arith.constant 0 : index
    %58 = vector.load %arg13[%c0_34, %c0_35] : memref<64x128xbf16, #tpu.memory_space<vmem>>, vector<64x128xbf16>
    %cst_36 = arith.constant dense<0.000000e+00> : vector<16x128xf32>
    %59 = tpu.matmul %57, %58, %cst_36 {dimension_numbers = #tpu.dot_dimension_numbers<[1], [0], [0], [1], [0, 0, 1, 1], [], []>} : vector<16x64xbf16>, vector<64x128xbf16>, vector<16x128xf32> -> vector<16x128xf32>
    %c0_37 = arith.constant 0 : index
    %c0_38 = arith.constant 0 : index
    %60 = vector.load %arg14[%c0_37, %c0_38] : memref<1x128xf32, #tpu.memory_space<vmem>>, vector<1x128xf32>
    %61 = vector.broadcast %60 : vector<1x128xf32> to vector<16x128xf32>
    %62 = arith.addf %59, %61 : vector<16x128xf32>
    %c0_39 = arith.constant 0 : index
    %c0_40 = arith.constant 0 : index
    %63 = vector.load %arg15[%c0_39, %c0_40] : memref<1x128xf32, #tpu.memory_space<vmem>>, vector<1x128xf32>
    %c0_41 = arith.constant 0 : index
    %c0_42 = arith.constant 0 : index
    %64 = vector.load %arg16[%c0_41, %c0_42] : memref<1x128xf32, #tpu.memory_space<vmem>>, vector<1x128xf32>
    %cst_43 = arith.constant dense<0.000000e+00> : vector<16xf32>
    %65 = vector.multi_reduction <add>, %62, %cst_43 [1] : vector<16x128xf32> to vector<16xf32>
    %66 = vector.shape_cast %65 : vector<16xf32> to vector<16x1xf32>
    %cst_44 = arith.constant 1.280000e+02 : f32
    %67 = vector.broadcast %cst_44 : f32 to vector<16x1xf32>
    %68 = arith.divf %66, %67 : vector<16x1xf32>
    %69 = vector.broadcast %68 : vector<16x1xf32> to vector<16x128xf32>
    %70 = arith.subf %62, %69 : vector<16x128xf32>
    %71 = arith.mulf %70, %70 : vector<16x128xf32>
    %cst_45 = arith.constant dense<0.000000e+00> : vector<16xf32>
    %72 = vector.multi_reduction <add>, %71, %cst_45 [1] : vector<16x128xf32> to vector<16xf32>
    %73 = vector.shape_cast %72 : vector<16xf32> to vector<16x1xf32>
    %cst_46 = arith.constant 1.280000e+02 : f32
    %74 = vector.broadcast %cst_46 : f32 to vector<16x1xf32>
    %75 = arith.divf %73, %74 : vector<16x1xf32>
    %76 = vector.broadcast %68 : vector<16x1xf32> to vector<16x128xf32>
    %77 = arith.subf %62, %76 : vector<16x128xf32>
    %cst_47 = arith.constant 9.99999974E-6 : f32
    %78 = vector.broadcast %cst_47 : f32 to vector<16x1xf32>
    %79 = arith.addf %75, %78 : vector<16x1xf32>
    %80 = math.rsqrt %79 : vector<16x1xf32>
    %81 = vector.broadcast %80 : vector<16x1xf32> to vector<16x128xf32>
    %82 = arith.mulf %77, %81 : vector<16x128xf32>
    %83 = vector.broadcast %63 : vector<1x128xf32> to vector<16x128xf32>
    %84 = arith.mulf %82, %83 : vector<16x128xf32>
    %85 = vector.broadcast %64 : vector<1x128xf32> to vector<16x128xf32>
    %86 = arith.addf %84, %85 : vector<16x128xf32>
    %cst_48 = arith.constant 0.000000e+00 : f32
    %87 = vector.broadcast %cst_48 : f32 to vector<16x128xf32>
    %88 = arith.maximumf %86, %87 : vector<16x128xf32>
    %89 = arith.truncf %31 : vector<16x512xf32> to vector<16x512xbf16>
    %c0_49 = arith.constant 0 : index
    %c0_50 = arith.constant 0 : index
    %90 = vector.load %arg17[%c0_49, %c0_50] : memref<512x512xbf16, #tpu.memory_space<vmem>>, vector<512x512xbf16>
    %cst_51 = arith.constant dense<0.000000e+00> : vector<16x512xf32>
    %91 = tpu.matmul %89, %90, %cst_51 {dimension_numbers = #tpu.dot_dimension_numbers<[1], [0], [0], [1], [0, 0, 1, 1], [], []>} : vector<16x512xbf16>, vector<512x512xbf16>, vector<16x512xf32> -> vector<16x512xf32>
    %92 = arith.truncf %40 : vector<16x512xf32> to vector<16x512xbf16>
    %c0_52 = arith.constant 0 : index
    %c0_53 = arith.constant 0 : index
    %93 = vector.load %arg18[%c0_52, %c0_53] : memref<512x512xbf16, #tpu.memory_space<vmem>>, vector<512x512xbf16>
    %cst_54 = arith.constant dense<0.000000e+00> : vector<16x512xf32>
    %94 = tpu.matmul %92, %93, %cst_54 {dimension_numbers = #tpu.dot_dimension_numbers<[1], [0], [0], [1], [0, 0, 1, 1], [], []>} : vector<16x512xbf16>, vector<512x512xbf16>, vector<16x512xf32> -> vector<16x512xf32>
    %95 = arith.addf %91, %94 : vector<16x512xf32>
    %96 = arith.truncf %88 : vector<16x128xf32> to vector<16x128xbf16>
    %c0_55 = arith.constant 0 : index
    %c0_56 = arith.constant 0 : index
    %97 = vector.load %arg19[%c0_55, %c0_56] : memref<128x512xbf16, #tpu.memory_space<vmem>>, vector<128x512xbf16>
    %cst_57 = arith.constant dense<0.000000e+00> : vector<16x512xf32>
    %98 = tpu.matmul %96, %97, %cst_57 {dimension_numbers = #tpu.dot_dimension_numbers<[1], [0], [0], [1], [0, 0, 1, 1], [], []>} : vector<16x128xbf16>, vector<128x512xbf16>, vector<16x512xf32> -> vector<16x512xf32>
    %99 = arith.addf %95, %98 : vector<16x512xf32>
    %c0_58 = arith.constant 0 : index
    %c0_59 = arith.constant 0 : index
    %100 = vector.load %arg20[%c0_58, %c0_59] : memref<1x512xf32, #tpu.memory_space<vmem>>, vector<1x512xf32>
    %101 = vector.broadcast %100 : vector<1x512xf32> to vector<16x512xf32>
    %102 = arith.addf %99, %101 : vector<16x512xf32>
    %103 = arith.truncf %102 : vector<16x512xf32> to vector<16x512xbf16>
    %cst_60 = arith.constant 0.000000e+00 : bf16
    %104 = vector.broadcast %cst_60 : bf16 to vector<16x512xbf16>
    %105 = arith.maximumf %103, %104 : vector<16x512xbf16>
    %c0_61 = arith.constant 0 : index
    %c0_62 = arith.constant 0 : index
    %106 = vector.load %arg21[%c0_61, %c0_62] : memref<512x256xbf16, #tpu.memory_space<vmem>>, vector<512x256xbf16>
    %cst_63 = arith.constant dense<0.000000e+00> : vector<16x256xf32>
    %107 = tpu.matmul %105, %106, %cst_63 {dimension_numbers = #tpu.dot_dimension_numbers<[1], [0], [0], [1], [0, 0, 1, 1], [], []>} : vector<16x512xbf16>, vector<512x256xbf16>, vector<16x256xf32> -> vector<16x256xf32>
    %c0_64 = arith.constant 0 : index
    %c0_65 = arith.constant 0 : index
    %108 = vector.load %arg22[%c0_64, %c0_65] : memref<1x256xf32, #tpu.memory_space<vmem>>, vector<1x256xf32>
    %109 = vector.broadcast %108 : vector<1x256xf32> to vector<16x256xf32>
    %110 = arith.addf %107, %109 : vector<16x256xf32>
    %111 = arith.truncf %110 : vector<16x256xf32> to vector<16x256xbf16>
    %cst_66 = arith.constant 0.000000e+00 : bf16
    %112 = vector.broadcast %cst_66 : bf16 to vector<16x256xbf16>
    %113 = arith.maximumf %111, %112 : vector<16x256xbf16>
    %c0_67 = arith.constant 0 : index
    %c0_68 = arith.constant 0 : index
    %114 = vector.load %arg23[%c0_67, %c0_68] : memref<256x128xbf16, #tpu.memory_space<vmem>>, vector<256x128xbf16>
    %cst_69 = arith.constant dense<0.000000e+00> : vector<16x128xf32>
    %115 = tpu.matmul %113, %114, %cst_69 {dimension_numbers = #tpu.dot_dimension_numbers<[1], [0], [0], [1], [0, 0, 1, 1], [], []>} : vector<16x256xbf16>, vector<256x128xbf16>, vector<16x128xf32> -> vector<16x128xf32>
    %c0_70 = arith.constant 0 : index
    %c0_71 = arith.constant 0 : index
    %116 = vector.load %arg24[%c0_70, %c0_71] : memref<1x128xf32, #tpu.memory_space<vmem>>, vector<1x128xf32>
    %117 = vector.broadcast %116 : vector<1x128xf32> to vector<16x128xf32>
    %118 = arith.addf %115, %117 : vector<16x128xf32>
    %119 = arith.truncf %118 : vector<16x128xf32> to vector<16x128xbf16>
    %cst_72 = arith.constant 0.000000e+00 : bf16
    %120 = vector.broadcast %cst_72 : bf16 to vector<16x128xbf16>
    %121 = arith.maximumf %119, %120 : vector<16x128xbf16>
    %c0_73 = arith.constant 0 : index
    %c0_74 = arith.constant 0 : index
    %122 = vector.load %arg25[%c0_73, %c0_74] : memref<128x64xbf16, #tpu.memory_space<vmem>>, vector<128x64xbf16>
    %cst_75 = arith.constant dense<0.000000e+00> : vector<16x64xf32>
    %123 = tpu.matmul %121, %122, %cst_75 {dimension_numbers = #tpu.dot_dimension_numbers<[1], [0], [0], [1], [0, 0, 1, 1], [], []>} : vector<16x128xbf16>, vector<128x64xbf16>, vector<16x64xf32> -> vector<16x64xf32>
    %c0_76 = arith.constant 0 : index
    %c0_77 = arith.constant 0 : index
    %124 = vector.load %arg26[%c0_76, %c0_77] : memref<1x64xf32, #tpu.memory_space<vmem>>, vector<1x64xf32>
    %125 = vector.broadcast %124 : vector<1x64xf32> to vector<16x64xf32>
    %126 = arith.addf %123, %125 : vector<16x64xf32>
    %127 = arith.truncf %126 : vector<16x64xf32> to vector<16x64xbf16>
    %cst_78 = arith.constant 0.000000e+00 : bf16
    %128 = vector.broadcast %cst_78 : bf16 to vector<16x64xbf16>
    %129 = arith.maximumf %127, %128 : vector<16x64xbf16>
    %c0_79 = arith.constant 0 : index
    %c0_80 = arith.constant 0 : index
    %130 = vector.load %arg27[%c0_79, %c0_80] : memref<64x32xbf16, #tpu.memory_space<vmem>>, vector<64x32xbf16>
    %cst_81 = arith.constant dense<0.000000e+00> : vector<16x32xf32>
    %131 = tpu.matmul %129, %130, %cst_81 {dimension_numbers = #tpu.dot_dimension_numbers<[1], [0], [0], [1], [0, 0, 1, 1], [], []>} : vector<16x64xbf16>, vector<64x32xbf16>, vector<16x32xf32> -> vector<16x32xf32>
    %c0_82 = arith.constant 0 : index
    %c0_83 = arith.constant 0 : index
    %132 = vector.load %arg28[%c0_82, %c0_83] : memref<1x32xf32, #tpu.memory_space<vmem>>, vector<1x32xf32>
    %133 = vector.broadcast %132 : vector<1x32xf32> to vector<16x32xf32>
    %134 = arith.addf %131, %133 : vector<16x32xf32>
    %135 = arith.truncf %134 : vector<16x32xf32> to vector<16x32xbf16>
    %cst_84 = arith.constant 0.000000e+00 : bf16
    %136 = vector.broadcast %cst_84 : bf16 to vector<16x32xbf16>
    %137 = arith.maximumf %135, %136 : vector<16x32xbf16>
    %c0_85 = arith.constant 0 : index
    %c0_86 = arith.constant 0 : index
    %138 = vector.load %arg29[%c0_85, %c0_86] : memref<32x8xbf16, #tpu.memory_space<vmem>>, vector<32x8xbf16>
    %cst_87 = arith.constant dense<0.000000e+00> : vector<16x8xf32>
    %139 = tpu.matmul %137, %138, %cst_87 {dimension_numbers = #tpu.dot_dimension_numbers<[1], [0], [0], [1], [0, 0, 1, 1], [], []>} : vector<16x32xbf16>, vector<32x8xbf16>, vector<16x8xf32> -> vector<16x8xf32>
    %c0_88 = arith.constant 0 : index
    %c0_89 = arith.constant 0 : index
    %140 = vector.load %arg30[%c0_88, %c0_89] : memref<1x8xf32, #tpu.memory_space<vmem>>, vector<1x8xf32>
    %141 = vector.broadcast %140 : vector<1x8xf32> to vector<16x8xf32>
    %142 = arith.addf %139, %141 : vector<16x8xf32>
    %c0_90 = arith.constant 0 : index
    %c0_91 = arith.constant 0 : index
    %143 = vector.load %arg31[%c0_90, %c0_91] : memref<16x8xf32, #tpu.memory_space<vmem>>, vector<16x8xf32>
    tpu.vector_store %arg31[%c0_90, %c0_91], %142 {strides = array<i32>} : memref<16x8xf32, #tpu.memory_space<vmem>>, vector<16x8xf32>,
    return
  }
  func.func @transform_0(%arg0: i32) -> (i32, i32) {
    %c0_i32 = arith.constant 0 : i32
    %c0_i32_0 = arith.constant 0 : i32
    return %arg0, %c0_i32 : i32, i32
  }
  func.func @transform_1(%arg0: i32) -> (i32, i32) {
    %c0_i32 = arith.constant 0 : i32
    %c0_i32_0 = arith.constant 0 : i32
    return %arg0, %c0_i32 : i32, i32
  }
  func.func @transform_2(%arg0: i32) -> (i32, i32) {
    %c0_i32 = arith.constant 0 : i32
    %c0_i32_0 = arith.constant 0 : i32
    return %arg0, %c0_i32 : i32, i32
  }
  func.func @transform_3(%arg0: i32) -> (i32, i32) {
    %c0_i32 = arith.constant 0 : i32
    %c0_i32_0 = arith.constant 0 : i32
    %c0_i32_1 = arith.constant 0 : i32
    return %c0_i32, %c0_i32_0 : i32, i32
  }
  func.func @transform_4(%arg0: i32) -> (i32, i32) {
    %c0_i32 = arith.constant 0 : i32
    %c0_i32_0 = arith.constant 0 : i32
    %c0_i32_1 = arith.constant 0 : i32
    return %c0_i32, %c0_i32_0 : i32, i32
  }
  func.func @transform_5(%arg0: i32) -> (i32, i32) {
    %c0_i32 = arith.constant 0 : i32
    %c0_i32_0 = arith.constant 0 : i32
    %c0_i32_1 = arith.constant 0 : i32
    return %c0_i32, %c0_i32_0 : i32, i32
  }
  func.func @transform_6(%arg0: i32) -> (i32, i32) {
    %c0_i32 = arith.constant 0 : i32
    %c0_i32_0 = arith.constant 0 : i32
    %c0_i32_1 = arith.constant 0 : i32
    return %c0_i32, %c0_i32_0 : i32, i32
  }
  func.func @transform_7(%arg0: i32) -> (i32, i32) {
    %c0_i32 = arith.constant 0 : i32
    %c0_i32_0 = arith.constant 0 : i32
    %c0_i32_1 = arith.constant 0 : i32
    return %c0_i32, %c0_i32_0 : i32, i32
  }
  func.func @transform_8(%arg0: i32) -> (i32, i32) {
    %c0_i32 = arith.constant 0 : i32
    %c0_i32_0 = arith.constant 0 : i32
    %c0_i32_1 = arith.constant 0 : i32
    return %c0_i32, %c0_i32_0 : i32, i32
  }
  func.func @transform_9(%arg0: i32) -> (i32, i32) {
    %c0_i32 = arith.constant 0 : i32
    %c0_i32_0 = arith.constant 0 : i32
    %c0_i32_1 = arith.constant 0 : i32
    return %c0_i32, %c0_i32_0 : i32, i32
  }
  func.func @transform_10(%arg0: i32) -> (i32, i32) {
    %c0_i32 = arith.constant 0 : i32
    %c0_i32_0 = arith.constant 0 : i32
    %c0_i32_1 = arith.constant 0 : i32
    return %c0_i32, %c0_i32_0 : i32, i32
  }
  func.func @transform_11(%arg0: i32) -> (i32, i32) {
    %c0_i32 = arith.constant 0 : i32
    %c0_i32_0 = arith.constant 0 : i32
    %c0_i32_1 = arith.constant 0 : i32
    return %c0_i32, %c0_i32_0 : i32, i32
  }
  func.func @transform_12(%arg0: i32) -> (i32, i32) {
    %c0_i32 = arith.constant 0 : i32
    %c0_i32_0 = arith.constant 0 : i32
    %c0_i32_1 = arith.constant 0 : i32
    return %c0_i32, %c0_i32_0 : i32, i32
  }
  func.func @transform_13(%arg0: i32) -> (i32, i32) {
    %c0_i32 = arith.constant 0 : i32
    %c0_i32_0 = arith.constant 0 : i32
    %c0_i32_1 = arith.constant 0 : i32
    return %c0_i32, %c0_i32_0 : i32, i32
  }
  func.func @transform_14(%arg0: i32) -> (i32, i32) {
    %c0_i32 = arith.constant 0 : i32
    %c0_i32_0 = arith.constant 0 : i32
    %c0_i32_1 = arith.constant 0 : i32
    return %c0_i32, %c0_i32_0 : i32, i32
  }
  func.func @transform_15(%arg0: i32) -> (i32, i32) {
    %c0_i32 = arith.constant 0 : i32
    %c0_i32_0 = arith.constant 0 : i32
    %c0_i32_1 = arith.constant 0 : i32
    return %c0_i32, %c0_i32_0 : i32, i32
  }
  func.func @transform_16(%arg0: i32) -> (i32, i32) {
    %c0_i32 = arith.constant 0 : i32
    %c0_i32_0 = arith.constant 0 : i32
    %c0_i32_1 = arith.constant 0 : i32
    return %c0_i32, %c0_i32_0 : i32, i32
  }
  func.func @transform_17(%arg0: i32) -> (i32, i32) {
    %c0_i32 = arith.constant 0 : i32
    %c0_i32_0 = arith.constant 0 : i32
    %c0_i32_1 = arith.constant 0 : i32
    return %c0_i32, %c0_i32_0 : i32, i32
  }
  func.func @transform_18(%arg0: i32) -> (i32, i32) {
    %c0_i32 = arith.constant 0 : i32
    %c0_i32_0 = arith.constant 0 : i32
    %c0_i32_1 = arith.constant 0 : i32
    return %c0_i32, %c0_i32_0 : i32, i32
  }
  func.func @transform_19(%arg0: i32) -> (i32, i32) {
    %c0_i32 = arith.constant 0 : i32
    %c0_i32_0 = arith.constant 0 : i32
    %c0_i32_1 = arith.constant 0 : i32
    return %c0_i32, %c0_i32_0 : i32, i32
  }
  func.func @transform_20(%arg0: i32) -> (i32, i32) {
    %c0_i32 = arith.constant 0 : i32
    %c0_i32_0 = arith.constant 0 : i32
    %c0_i32_1 = arith.constant 0 : i32
    return %c0_i32, %c0_i32_0 : i32, i32
  }
  func.func @transform_21(%arg0: i32) -> (i32, i32) {
    %c0_i32 = arith.constant 0 : i32
    %c0_i32_0 = arith.constant 0 : i32
    %c0_i32_1 = arith.constant 0 : i32
    return %c0_i32, %c0_i32_0 : i32, i32
  }
  func.func @transform_22(%arg0: i32) -> (i32, i32) {
    %c0_i32 = arith.constant 0 : i32
    %c0_i32_0 = arith.constant 0 : i32
    %c0_i32_1 = arith.constant 0 : i32
    return %c0_i32, %c0_i32_0 : i32, i32
  }
  func.func @transform_23(%arg0: i32) -> (i32, i32) {
    %c0_i32 = arith.constant 0 : i32
    %c0_i32_0 = arith.constant 0 : i32
    %c0_i32_1 = arith.constant 0 : i32
    return %c0_i32, %c0_i32_0 : i32, i32
  }
  func.func @transform_24(%arg0: i32) -> (i32, i32) {
    %c0_i32 = arith.constant 0 : i32
    %c0_i32_0 = arith.constant 0 : i32
    %c0_i32_1 = arith.constant 0 : i32
    return %c0_i32, %c0_i32_0 : i32, i32
  }
  func.func @transform_25(%arg0: i32) -> (i32, i32) {
    %c0_i32 = arith.constant 0 : i32
    %c0_i32_0 = arith.constant 0 : i32
    %c0_i32_1 = arith.constant 0 : i32
    return %c0_i32, %c0_i32_0 : i32, i32
  }
  func.func @transform_26(%arg0: i32) -> (i32, i32) {
    %c0_i32 = arith.constant 0 : i32
    %c0_i32_0 = arith.constant 0 : i32
    %c0_i32_1 = arith.constant 0 : i32
    return %c0_i32, %c0_i32_0 : i32, i32
  }
  func.func @transform_27(%arg0: i32) -> (i32, i32) {
    %c0_i32 = arith.constant 0 : i32
    %c0_i32_0 = arith.constant 0 : i32
    %c0_i32_1 = arith.constant 0 : i32
    return %c0_i32, %c0_i32_0 : i32, i32
  }
  func.func @transform_28(%arg0: i32) -> (i32, i32) {
    %c0_i32 = arith.constant 0 : i32
    %c0_i32_0 = arith.constant 0 : i32
    %c0_i32_1 = arith.constant 0 : i32
    return %c0_i32, %c0_i32_0 : i32, i32
  }
  func.func @transform_29(%arg0: i32) -> (i32, i32) {
    %c0_i32 = arith.constant 0 : i32
    %c0_i32_0 = arith.constant 0 : i32
    %c0_i32_1 = arith.constant 0 : i32
    return %c0_i32, %c0_i32_0 : i32, i32
  }
  func.func @transform_30(%arg0: i32) -> (i32, i32) {
    %c0_i32 = arith.constant 0 : i32
    %c0_i32_0 = arith.constant 0 : i32
    return %arg0, %c0_i32 : i32, i32
  }
}

</mosaic_0001>

<bundles_post_ra>
// kernel: tpu_custom_call.1
= control target key start
LH: loop header
LB: loop body
LE: loop exit
PB: predicated region body
PF: predicated region fallthrough
CT: control target
= control target key end

     0   :  { %s8364_s6 = smov 1   ;;  %s8365_s10 = smov 2   ;;  %s8944_s0 = inlined_call_operand.smem [shape: u32[31], index: -1, kind: input, shape index: {}] }
   0x1   :  { %s8434_s5 = sld [smem:[%s8944_s0]]   ;;  %s8366_s14 = smov 3  }
   0x2   :  { %s8439_s9 = sld [smem:[%s8944_s0 + %s8364_s6]]   ;;  %s8367_s18 = smov 4  }
   0x3   :  { %s8444_s13 = sld [smem:[%s8944_s0 + %s8365_s10]]   ;;  %s8368_s22 = smov 5  }
   0x4   :  { %s8449_s17 = sld [smem:[%s8944_s0 + %s8366_s14]]   ;;  %s8369_s26 = smov 6  }
   0x5   :  { %s8454_s21 = sld [smem:[%s8944_s0 + %s8367_s18]]   ;;  %s8370_s30 = smov 7  }
   0x6   :  { %s8459_s25 = sld [smem:[%s8944_s0 + %s8368_s22]]   ;;  %s8371_s4 = smov 8  }
   0x7   :  { %8950 = sst [smem:[#allocation49_spill]] %s8434_s5  ;;  %s8372_s10 = smov 9  }
   0x8   :  { %8951 = sst [smem:[#allocation50_spill]] %s8439_s9  ;;  %s8373_s15 = smov 10  }
   0x9   :  { %8952 = sst [smem:[#allocation51_spill]] %s8444_s13  ;;  %s8374_s20 = smov 11  }
   0xa   :  { %s8464_s29 = sld [smem:[%s8944_s0 + %s8369_s26]]   ;;  %s8375_s26 = smov 12  }
   0xb   :  { %s8469_s3 = sld [smem:[%s8944_s0 + %s8370_s30]]   ;;  %s8376_s1 = smov 13  }
   0xc   :  { %s8474_s8 = sld [smem:[%s8944_s0 + %s8371_s4]]   ;;  %s8377_s7 = smov 14  }
   0xd   :  { %s8479_s14 = sld [smem:[%s8944_s0 + %s8372_s10]]   ;;  %s8379_s22 = smov 16  }
   0xe   :  { %s8484_s19 = sld [smem:[%s8944_s0 + %s8373_s15]]   ;;  %s8378_s15 = smov 15  }
   0xf   :  { %s8489_s24 = sld [smem:[%s8944_s0 + %s8374_s20]]   ;;  %s8380_s28 = smov 17  }
  0x10   :  { %s8494_s30 = sld [smem:[%s8944_s0 + %s8375_s26]]  }
  0x11   :  { %s8499_s6 = sld [smem:[%s8944_s0 + %s8376_s1]]  }
  0x12   :  { %s8504_s12 = sld [smem:[%s8944_s0 + %s8377_s7]]   ;;  %s8381_s7 = smov 18  }
  0x13   :  { %s8509_s20 = sld [smem:[%s8944_s0 + %s8378_s15]]   ;;  %s8382_s15 = smov 19  }
  0x14   :  { %s8514_s27 = sld [smem:[%s8944_s0 + %s8379_s22]]   ;;  %s8383_s22 = smov 20  }
  0x15   :  { %8953 = sst [smem:[#allocation52_spill]] %s8489_s24 }
  0x16   :  { %s8519_s4 = sld [smem:[%s8944_s0 + %s8380_s28]]   ;;  %s8384_s28 = smov 21  }
  0x17   :  { %8954 = sst [smem:[#allocation53_spill]] %s8499_s6 }
  0x18   :  { %s8524_s9 = sld [smem:[%s8944_s0 + %s8381_s7]]   ;;  %s8385_s7 = smov 22  }
  0x19   :  { %8955 = sst [smem:[#allocation54_spill]] %s8509_s20 }
  0x1a   :  { %s8529_s13 = sld [smem:[%s8944_s0 + %s8382_s15]]   ;;  %s8386_s15 = smov 23  }
  0x1b   :  { %s8534_s5 = sld [smem:[%s8944_s0 + %s8383_s22]]   ;;  %s8387_s22 = smov 24  }
  0x1c   :  { %8956 = sst [smem:[#allocation55_spill]] %s8519_s4 }
  0x1d   :  { %s8539_s4 = sld [smem:[%s8944_s0 + %s8384_s28]]   ;;  %s8388_s28 = smov 25  }
  0x1e   :  { %s8544_s20 = sld [smem:[%s8944_s0 + %s8385_s7]]   ;;  %s8389_s7 = smov 26  }
  0x1f   :  { %s8554_s6 = sld [smem:[%s8944_s0 + %s8387_s22]]   ;;  %s8391_s22 = smov 28  }
  0x20   :  { %8957 = sst [smem:[#allocation56_spill]] %s8529_s13 }
  0x21   :  { %s8549_s13 = sld [smem:[%s8944_s0 + %s8386_s15]]   ;;  %s8390_s15 = smov 27  }
  0x22   :  { %s8569_s24 = sld [smem:[%s8944_s0 + %s8390_s15]]  }
  0x23   :  { %8958 = sst [smem:[#allocation57_spill]] %s8539_s4 }
  0x24   :  { %8959 = sst [smem:[#allocation58_spill]] %s8544_s20 }
  0x25   :  { %8960 = sst [smem:[#allocation59_spill]] %s8554_s6 }
  0x26   :  { %s8559_s4 = sld [smem:[%s8944_s0 + %s8388_s28]]   ;;  %s8392_s28 = smov 29  }
  0x27   :  { %s8564_s20 = sld [smem:[%s8944_s0 + %s8389_s7]]   ;;  %s8393_s7 = smov 30  }
  0x28   :  { %s8574_s6 = sld [smem:[%s8944_s0 + %s8391_s22]]  }
  0x2c   :  { %8961 = sst [smem:[#allocation60_spill]] %s8559_s4 }
  0x2d   :  { %8962 = sst [smem:[#allocation61_spill]] %s8564_s20 }
  0x2e   :  { %s8579_s4 = sld [smem:[%s8944_s0 + %s8392_s28]]  }
  0x2f   :  { %s8584_s20 = sld [smem:[%s8944_s0 + %s8393_s7]]  }
  0x30   :  { %66 = vsyncpa [#allocation3], 0 }
  0x31   :  { %67 = vsyncpa [#allocation5], 0 }
  0x32   :  { %68 = vsyncpa [#allocation8], 0 }
  0x33   :  { %69 = vsyncpa [#allocation11], 0 }
  0x34   :  { %70 = vsyncpa [#allocation14], 0 }
  0x35   :  { %71 = vsyncpa [#allocation17], 0 }
  0x36   :  { %72 = vsyncpa [#allocation20], 0 }
  0x37   :  { %73 = vsyncpa [#allocation23], 0 }
  0x38   :  { %74 = vsyncpa [#allocation26], 0 }
  0x39   :  { %75 = vsyncpa [#allocation29], 0 }
  0x3a   :  { %76 = vsyncpa [#allocation32], 0 }
  0x3b   :  { %77 = vsyncpa [#allocation35], 0  ;;  %s8394_s15 = smov [#allocation4]   ;;  %s8395_s18 = smov [#allocation7]  }
  0x3c   :  { %s101_s16 = sshll.u32 %s8394_s15, 4  ;;  %s124_s22 = sshll.u32 %s8395_s18, 4  ;;  %s102_s16 = int_to_ptr.vmem [resolvable:$true] %s101_s16  ;;  %s125_s22 = int_to_ptr.vmem [resolvable:$true] %s124_s22 }
  0x3d   :  { %s7888_s0 = scalar_lea.vmem %s102_s16, 32768  ;;  %p7893_p1 = scmp.lt.s32.totalorder %s102_s16, %s102_s16 }
  0x3e   :  { %p7889_p0 = scmp.ne.s32.totalorder %s102_s16, %s7888_s0  ;;  %p7894_p2 = scmp.lt.s32.totalorder %s7888_s0, %s7888_s0 }
  0x40   :  { %p7895_p3 = por %p7894_p2, %p7893_p1 }
  0x42   :  { %p7896_p4 = pnand %p7895_p3, %p7889_p0 }
  0x44   :  { %7899 = shalt.err (!%p7896_p4)
}
  0x45   :  { %s8396_s23 = smov 256   ;;  %s8397_s26 = smov 16  }
  0x46   :  { %107 = dma.hbm_to_vmem [thread:$0]  %s8454_s21, 32768, %s102_s16, [#allocation5], %s8396_s23, %s8396_s23, %s8397_s26  }
  0x47   :  { %s7908_s28 = scalar_lea.vmem %s125_s22, 64  ;;  %p7913_p6 = scmp.lt.s32.totalorder %s125_s22, %s125_s22 }
  0x48   :  { %p7909_p5 = scmp.ne.s32.totalorder %s125_s22, %s7908_s28  ;;  %p7914_p7 = scmp.lt.s32.totalorder %s7908_s28, %s7908_s28 }
  0x4a   :  { %p7915_p8 = por %p7914_p7, %p7913_p6 }
  0x4c   :  { %p7916_p9 = pnand %p7915_p8, %p7909_p5 }
  0x4e   :  { %7919 = shalt.err (!%p7916_p9)
}
  0x4f   :  { %127 = dma.hbm_to_vmem [thread:$0]  %s8464_s29, 64, %s125_s22, [#allocation8]  }
  0x50   :  { %s8398_s1 = smov [#allocation10]   ;;  %s8399_s7 = smov [#allocation13]  }
  0x51   :  { %s144_s2 = sshll.u32 %s8398_s1, 4  ;;  %s163_s10 = sshll.u32 %s8399_s7, 4  ;;  %s145_s2 = int_to_ptr.vmem [resolvable:$true] %s144_s2  ;;  %s164_s10 = int_to_ptr.vmem [resolvable:$true] %s163_s10 }
  0x52   :  { %s7928_s11 = scalar_lea.vmem %s145_s2, 64  ;;  %p7933_p11 = scmp.lt.s32.totalorder %s145_s2, %s145_s2 }
  0x53   :  { %p7929_p10 = scmp.ne.s32.totalorder %s145_s2, %s7928_s11  ;;  %p7934_p12 = scmp.lt.s32.totalorder %s7928_s11, %s7928_s11 }
  0x55   :  { %p7935_p13 = por %p7934_p12, %p7933_p11 }
  0x57   :  { %p7936_p0 = pnand %p7935_p13, %p7929_p10 }
  0x59   :  { %7939 = shalt.err (!%p7936_p0)
}
  0x5a   :  { %147 = dma.hbm_to_vmem [thread:$0]  %s8474_s8, 64, %s145_s2, [#allocation11]  }
  0x5b   :  { %s7948_s21 = scalar_lea.vmem %s164_s10, 256  ;;  %p7953_p2 = scmp.lt.s32.totalorder %s164_s10, %s164_s10 }
  0x5c   :  { %p7949_p1 = scmp.ne.s32.totalorder %s164_s10, %s7948_s21  ;;  %p7954_p3 = scmp.lt.s32.totalorder %s7948_s21, %s7948_s21 }
  0x5e   :  { %p7955_p4 = por %p7954_p3, %p7953_p2 }
  0x60   :  { %p7956_p5 = pnand %p7955_p4, %p7949_p1 }
  0x62   :  { %7959 = shalt.err (!%p7956_p5)
}
  0x63   :  { %s8400_s29 = smov 64   ;;  %s8401_s15 = smov 4  }
  0x64   :  { %169 = dma.hbm_to_vmem [thread:$0]  %s8484_s19, 256, %s164_s10, [#allocation14], %s8400_s29, %s8400_s29, %s8401_s15  }
  0x65   :  { %s8402_s16 = smov [#allocation16]   ;;  %s8403_s22 = smov [#allocation19]  }
  0x66   :  { %s185_s18 = sshll.u32 %s8402_s16, 4  ;;  %s208_s0 = sshll.u32 %s8403_s22, 4  ;;  %s186_s18 = int_to_ptr.vmem [resolvable:$true] %s185_s18  ;;  %s209_s0 = int_to_ptr.vmem [resolvable:$true] %s208_s0 }
  0x67   :  { %s7968_s28 = scalar_lea.vmem %s186_s18, 512  ;;  %p7973_p7 = scmp.lt.s32.totalorder %s186_s18, %s186_s18 }
  0x68   :  { %p7969_p6 = scmp.ne.s32.totalorder %s186_s18, %s7968_s28  ;;  %p7974_p8 = scmp.lt.s32.totalorder %s7968_s28, %s7968_s28 }
  0x6a   :  { %p7975_p9 = por %p7974_p8, %p7973_p7 }
  0x6c   :  { %p7976_p10 = pnand %p7975_p9, %p7969_p6 }
  0x6e   :  { %7979 = shalt.err (!%p7976_p10)
}
  0x6f   :  { %191 = dma.hbm_to_vmem [thread:$0]  %s8494_s30, 512, %s186_s18, [#allocation17], %s8400_s29, %s8400_s29, %s8401_s15  }
  0x70   :  { %s7988_s8 = scalar_lea.vmem %s209_s0, 16  ;;  %s7992_s1 = scalar_lea.vmem %s209_s0, 32 }
  0x71   :  { %p7989_p11 = scmp.ne.s32.totalorder %s209_s0, %s7988_s8  ;;  %p7993_p12 = scmp.lt.s32.totalorder %s209_s0, %s209_s0 }
  0x72   :  { %p7994_p13 = scmp.lt.s32.totalorder %s7992_s1, %s7988_s8 }
  0x74   :  { %p7995_p0 = por %p7994_p13, %p7993_p12 }
  0x76   :  { %p7996_p1 = pnand %p7995_p0, %p7989_p11 }
  0x78   :  { %7999 = shalt.err (!%p7996_p1)
}
  0x79   :  { %211 = dma.hbm_to_vmem [thread:$0]  %s8504_s12, 16, %s209_s0, [#allocation20]  }
  0x7a   :  { %s8404_s19 = smov [#allocation22]   ;;  %s8405_s7 = smov [#allocation25]  }
  0x7b   :  { %s227_s2 = sshll.u32 %s8404_s19, 4  ;;  %s251_s10 = sshll.u32 %s8405_s7, 4  ;;  %s228_s2 = int_to_ptr.vmem [resolvable:$true] %s227_s2  ;;  %s252_s10 = int_to_ptr.vmem [resolvable:$true] %s251_s10 }
  0x7c   :  { %s8008_s11 = scalar_lea.vmem %s228_s2, 16384  ;;  %p8013_p3 = scmp.lt.s32.totalorder %s228_s2, %s228_s2 }
  0x7d   :  { %p8009_p2 = scmp.ne.s32.totalorder %s228_s2, %s8008_s11  ;;  %p8014_p4 = scmp.lt.s32.totalorder %s8008_s11, %s8008_s11 }
  0x7f   :  { %p8015_p5 = por %p8014_p4, %p8013_p3 }
  0x81   :  { %p8016_p6 = pnand %p8015_p5, %p8009_p2 }
  0x83   :  { %8019 = shalt.err (!%p8016_p6)
}
  0x84   :  { %233 = dma.hbm_to_vmem [thread:$0]  %s8514_s27, 16384, %s228_s2, [#allocation23], %s8396_s23, %s8396_s23, %s8397_s26  }
  0x85   :  { %s8028_s30 = scalar_lea.vmem %s252_s10, 4096  ;;  %p8033_p8 = scmp.lt.s32.totalorder %s252_s10, %s252_s10 }
  0x86   :  { %p8029_p7 = scmp.ne.s32.totalorder %s252_s10, %s8028_s30  ;;  %p8034_p9 = scmp.lt.s32.totalorder %s8028_s30, %s8028_s30 }
  0x88   :  { %p8035_p10 = por %p8034_p9, %p8033_p8 }
  0x8a   :  { %p8036_p11 = pnand %p8035_p10, %p8029_p7 }
  0x8c   :  { %8039 = shalt.err (!%p8036_p11)
}
  0x8d   :  { %257 = dma.hbm_to_vmem [thread:$0]  %s8524_s9, 4096, %s252_s10, [#allocation26], %s8396_s23, %s8396_s23, %s8397_s26  }
  0x8e   :  { %s8406_s12 = smov [#allocation28]  }
  0x8f   :  { %s273_s21 = sshll.u32 %s8406_s12, 4  ;;  %s274_s21 = int_to_ptr.vmem [resolvable:$true] %s273_s21 }
  0x90   :  { %s8048_s29 = scalar_lea.vmem %s274_s21, 8192  ;;  %p8053_p13 = scmp.lt.s32.totalorder %s274_s21, %s274_s21 }
  0x91   :  { %p8049_p12 = scmp.ne.s32.totalorder %s274_s21, %s8048_s29  ;;  %p8054_p0 = scmp.lt.s32.totalorder %s8048_s29, %s8048_s29 }
  0x93   :  { %p8055_p1 = por %p8054_p0, %p8053_p13 }
  0x95   :  { %p8056_p2 = pnand %p8055_p1, %p8049_p12 }
  0x97   :  { %8059 = shalt.err (!%p8056_p2)
}
  0x98   :  { %s8407_s27 = smov 128   ;;  %s8408_s15 = smov 8  }
  0x99   :  { %279 = dma.hbm_to_vmem [thread:$0]  %s8534_s5, 8192, %s274_s21, [#allocation29], %s8407_s27, %s8407_s27, %s8408_s15  }
  0x9a   :  { %s8409_s16 = smov [#allocation31]   ;;  %s8410_s22 = smov [#allocation34]  }
  0x9b   :  { %s298_s18 = sshll.u32 %s8409_s16, 4  ;;  %s322_s0 = sshll.u32 %s8410_s22, 4  ;;  %s299_s18 = int_to_ptr.vmem [resolvable:$true] %s298_s18  ;;  %s323_s0 = int_to_ptr.vmem [resolvable:$true] %s322_s0 }
  0x9c   :  { %s8068_s9 = scalar_lea.vmem %s299_s18, 16  ;;  %s8072_s28 = scalar_lea.vmem %s299_s18, 32 }
  0x9d   :  { %p8069_p3 = scmp.ne.s32.totalorder %s299_s18, %s8068_s9  ;;  %p8073_p4 = scmp.lt.s32.totalorder %s299_s18, %s299_s18 }
  0x9e   :  { %p8074_p5 = scmp.lt.s32.totalorder %s8072_s28, %s8068_s9 }
  0xa0   :  { %p8075_p6 = por %p8074_p5, %p8073_p4 }
  0xa2   :  { %p8076_p7 = pnand %p8075_p6, %p8069_p3 }
  0xa4   :  { %8079 = shalt.err (!%p8076_p7)
}
  0xa5   :  { %301 = dma.hbm_to_vmem [thread:$0]  %s8549_s13, 16, %s299_s18, [#allocation32]  }
  0xa6   :  { %s8088_s8 = scalar_lea.vmem %s323_s0, 16  ;;  %s8092_s1 = scalar_lea.vmem %s323_s0, 32 }
  0xa7   :  { %p8089_p8 = scmp.ne.s32.totalorder %s323_s0, %s8088_s8  ;;  %p8093_p9 = scmp.lt.s32.totalorder %s323_s0, %s323_s0 }
  0xa8   :  { %p8094_p10 = scmp.lt.s32.totalorder %s8092_s1, %s8088_s8 }
  0xaa   :  { %p8095_p11 = por %p8094_p10, %p8093_p9 }
  0xac   :  { %p8096_p12 = pnand %p8095_p11, %p8089_p8 }
  0xae   :  { %8099 = shalt.err (!%p8096_p12)
}
  0xaf   :  { %325 = dma.hbm_to_vmem [thread:$0]  %s8569_s24, 16, %s323_s0, [#allocation35]  }
  0xb0   :  { %s8411_s5 = smov [#allocation2]   ;;  %s8412_s2 = smov [#allocation6]  }
  0xb1   :  { %s89_s19 = sshll.u32 %s8411_s5, 4  ;;  %s114_s7 = sshll.u32 %s8412_s2, 4  ;;  %s90_s19 = int_to_ptr.vmem [resolvable:$true] %s89_s19  ;;  %s115_s7 = int_to_ptr.vmem [resolvable:$true] %s114_s7 }
  0xb2   :  { %s8108_s10 = scalar_lea.vmem %s90_s19, 512  ;;  %p8113_p0 = scmp.lt.s32.totalorder %s90_s19, %s90_s19 }
  0xb3   :  { %p8109_p13 = scmp.ne.s32.totalorder %s90_s19, %s8108_s10  ;;  %p8114_p1 = scmp.lt.s32.totalorder %s8108_s10, %s8108_s10 }
  0xb5   :  { %p8115_p2 = por %p8114_p1, %p8113_p0 }
  0xb7   :  { %p8116_p3 = pnand %p8115_p2, %p8109_p13 }
  0xb9   :  { %8119 = shalt.err (!%p8116_p3)
}
  0xba   :  { %95 = dma.hbm_to_vmem [thread:$0]  %s8449_s17, 512, %s90_s19, [#allocation3], %s8396_s23, %s8396_s23, %s8397_s26  }
  0xbb   :  { %s8128_s13 = scalar_lea.vmem %s115_s7, 64  ;;  %p8133_p5 = scmp.lt.s32.totalorder %s115_s7, %s115_s7 }
  0xbc   :  { %p8129_p4 = scmp.ne.s32.totalorder %s115_s7, %s8128_s13  ;;  %p8134_p6 = scmp.lt.s32.totalorder %s8128_s13, %s8128_s13 }
  0xbe   :  { %p8135_p7 = por %p8134_p6, %p8133_p5 }
  0xc0   :  { %p8136_p8 = pnand %p8135_p7, %p8129_p4 }
  0xc2   :  { %8139 = shalt.err (!%p8136_p8)
}
  0xc3   :  { %117 = dma.hbm_to_vmem [thread:$0]  %s8459_s25, 64, %s115_s7, [#allocation5]  }
  0xc4   :  { %s8413_s24 = smov [#allocation9]   ;;  %s8414_s30 = smov [#allocation12]  }
  0xc5   :  { %s134_s11 = sshll.u32 %s8413_s24, 4  ;;  %s154_s12 = sshll.u32 %s8414_s30, 4  ;;  %s135_s11 = int_to_ptr.vmem [resolvable:$true] %s134_s11  ;;  %s155_s12 = int_to_ptr.vmem [resolvable:$true] %s154_s12 }
  0xc6   :  { %s8148_s21 = scalar_lea.vmem %s135_s11, 64  ;;  %p8153_p10 = scmp.lt.s32.totalorder %s135_s11, %s135_s11 }
  0xc7   :  { %p8149_p9 = scmp.ne.s32.totalorder %s135_s11, %s8148_s21  ;;  %p8154_p11 = scmp.lt.s32.totalorder %s8148_s21, %s8148_s21 }
  0xc9   :  { %p8155_p12 = por %p8154_p11, %p8153_p10 }
  0xcb   :  { %p8156_p13 = pnand %p8155_p12, %p8149_p9 }
  0xcd   :  { %8159 = shalt.err (!%p8156_p13)
}
  0xce   :  { %137 = dma.hbm_to_vmem [thread:$0]  %s8469_s3, 64, %s135_s11, [#allocation8]  }
  0xcf   :  { %s8168_s17 = scalar_lea.vmem %s155_s12, 16  ;;  %s8172_s29 = scalar_lea.vmem %s155_s12, 32 }
  0xd0   :  { %p8169_p0 = scmp.ne.s32.totalorder %s155_s12, %s8168_s17  ;;  %p8173_p1 = scmp.lt.s32.totalorder %s155_s12, %s155_s12 }
  0xd1   :  { %p8174_p2 = scmp.lt.s32.totalorder %s8172_s29, %s8168_s17 }
  0xd3   :  { %p8175_p3 = por %p8174_p2, %p8173_p1 }
  0xd5   :  { %p8176_p4 = pnand %p8175_p3, %p8169_p0 }
  0xd7   :  { %8179 = shalt.err (!%p8176_p4)
}
  0xd8   :  { %157 = dma.hbm_to_vmem [thread:$0]  %s8479_s14, 16, %s155_s12, [#allocation11]  }
  0xd9   :  { %s8415_s25 = smov [#allocation15]   ;;  %s8416_s15 = smov [#allocation18]  }
  0xda   :  { %s176_s27 = sshll.u32 %s8415_s25, 4  ;;  %s198_s16 = sshll.u32 %s8416_s15, 4  ;;  %s177_s27 = int_to_ptr.vmem [resolvable:$true] %s176_s27  ;;  %s199_s16 = int_to_ptr.vmem [resolvable:$true] %s198_s16 }
  0xdb   :  { %s8188_s18 = scalar_lea.vmem %s177_s27, 16  ;;  %s8192_s22 = scalar_lea.vmem %s177_s27, 32 }
  0xdc   :  { %p8189_p5 = scmp.ne.s32.totalorder %s177_s27, %s8188_s18  ;;  %p8193_p6 = scmp.lt.s32.totalorder %s177_s27, %s177_s27 }
  0xdd   :  { %p8194_p7 = scmp.lt.s32.totalorder %s8192_s22, %s8188_s18 }
  0xdf   :  { %p8195_p8 = por %p8194_p7, %p8193_p6 }
  0xe1   :  { %p8196_p9 = pnand %p8195_p8, %p8189_p5 }
  0xe3   :  { %8199 = shalt.err (!%p8196_p9)
}
  0xe4   :  { %s8963_s3 = sld [smem:[#allocation52_spill]]  ;;  %s8208_s0 = scalar_lea.vmem %s199_s16, 16 }
  0xe5   :  { %p8209_p10 = scmp.ne.s32.totalorder %s199_s16, %s8208_s0  ;;  %s8212_s9 = scalar_lea.vmem %s199_s16, 32 }
  0xe6   :  { %p8213_p11 = scmp.lt.s32.totalorder %s199_s16, %s199_s16  ;;  %p8214_p12 = scmp.lt.s32.totalorder %s8212_s9, %s8208_s0 }
  0xe8   :  { %p8215_p13 = por %p8214_p12, %p8213_p11 }
  0xea   :  { %179 = dma.hbm_to_vmem [thread:$0]  %s8963_s3, 16, %s177_s27, [#allocation14]  }
  0xeb   :  { %p8216_p0 = pnand %p8215_p13, %p8209_p10 }
  0xed   :  { %8219 = shalt.err (!%p8216_p0)
}
  0xee   :  { %s8964_s14 = sld [smem:[#allocation53_spill]]  ;;  %s8417_s28 = smov [#allocation21]  }
  0xef   :  { %s218_s8 = sshll.u32 %s8417_s28, 4  ;;  %s8418_s1 = smov [#allocation24]   ;;  %s219_s8 = int_to_ptr.vmem [resolvable:$true] %s218_s8 }
  0xf0   :  { %s239_s5 = sshll.u32 %s8418_s1, 4  ;;  %s8228_s19 = scalar_lea.vmem %s219_s8, 16  ;;  %s240_s5 = int_to_ptr.vmem [resolvable:$true] %s239_s5 }
  0xf1   :  { %p8229_p1 = scmp.ne.s32.totalorder %s219_s8, %s8228_s19  ;;  %s8232_s2 = scalar_lea.vmem %s219_s8, 32 }
  0xf2   :  { %p8233_p2 = scmp.lt.s32.totalorder %s219_s8, %s219_s8  ;;  %p8234_p3 = scmp.lt.s32.totalorder %s8232_s2, %s8228_s19 }
  0xf4   :  { %201 = dma.hbm_to_vmem [thread:$0]  %s8964_s14, 16, %s199_s16, [#allocation17]  }
  0xf5   :  { %p8235_p4 = por %p8234_p3, %p8233_p2 }
  0xf7   :  { %p8236_p5 = pnand %p8235_p4, %p8229_p1 }
  0xf9   :  { %8239 = shalt.err (!%p8236_p5)
}
  0xfa   :  { %s8965_s7 = sld [smem:[#allocation54_spill]]  ;;  %s8248_s10 = scalar_lea.vmem %s240_s5, 16384 }
  0xfb   :  { %p8249_p6 = scmp.ne.s32.totalorder %s240_s5, %s8248_s10  ;;  %p8253_p7 = scmp.lt.s32.totalorder %s240_s5, %s240_s5 }
  0xfc   :  { %p8254_p8 = scmp.lt.s32.totalorder %s8248_s10, %s8248_s10 }
  0xfe   :  { %p8255_p9 = por %p8254_p8, %p8253_p7 }
 0x100   :  { %221 = dma.hbm_to_vmem [thread:$0]  %s8965_s7, 16, %s219_s8, [#allocation20]  }
 0x101   :  { %p8256_p10 = pnand %p8255_p9, %p8249_p6 }
 0x103   :  { %8259 = shalt.err (!%p8256_p10)
}
 0x104   :  { %s8966_s13 = sld [smem:[#allocation55_spill]]  ;;  %s8419_s24 = smov [#allocation27]  }
 0x105   :  { %s264_s11 = sshll.u32 %s8419_s24, 4  ;;  %s8420_s30 = smov [#allocation30]   ;;  %s265_s11 = int_to_ptr.vmem [resolvable:$true] %s264_s11 }
 0x106   :  { %s286_s12 = sshll.u32 %s8420_s30, 4  ;;  %s8268_s21 = scalar_lea.vmem %s265_s11, 64  ;;  %s287_s12 = int_to_ptr.vmem [resolvable:$true] %s286_s12 }
 0x107   :  { %p8269_p11 = scmp.ne.s32.totalorder %s265_s11, %s8268_s21  ;;  %p8273_p12 = scmp.lt.s32.totalorder %s265_s11, %s265_s11 }
 0x108   :  { %p8274_p13 = scmp.lt.s32.totalorder %s8268_s21, %s8268_s21 }
 0x10a   :  { %245 = dma.hbm_to_vmem [thread:$0]  %s8966_s13, 16384, %s240_s5, [#allocation23], %s8396_s23, %s8396_s23, %s8397_s26  }
 0x10b   :  { %p8275_p0 = por %p8274_p13, %p8273_p12 }
 0x10d   :  { %p8276_p1 = pnand %p8275_p0, %p8269_p11 }
 0x10f   :  { %8279 = shalt.err (!%p8276_p1)
}
 0x110   :  { %s8967_s17 = sld [smem:[#allocation56_spill]]  ;;  %s8288_s29 = scalar_lea.vmem %s287_s12, 32 }
 0x111   :  { %p8289_p2 = scmp.ne.s32.totalorder %s287_s12, %s8288_s29  ;;  %p8293_p3 = scmp.lt.s32.totalorder %s287_s12, %s287_s12 }
 0x112   :  { %p8294_p4 = scmp.lt.s32.totalorder %s8288_s29, %s8288_s29 }
 0x114   :  { %p8295_p5 = por %p8294_p4, %p8293_p3 }
 0x116   :  { %267 = dma.hbm_to_vmem [thread:$0]  %s8967_s17, 64, %s265_s11, [#allocation26]  }
 0x117   :  { %p8296_p6 = pnand %p8295_p5, %p8289_p2 }
 0x119   :  { %8299 = shalt.err (!%p8296_p6)
}
 0x11a   :  { %s8968_s23 = sld [smem:[#allocation57_spill]]  ;;  %s8421_s26 = smov [#allocation33]  }
 0x11b   :  { %s310_s25 = sshll.u32 %s8421_s26, 4  ;;  %s8422_s27 = smov [#allocation36]   ;;  %s311_s25 = int_to_ptr.vmem [resolvable:$true] %s310_s25 }
 0x11c   :  { %s334_s15 = sshll.u32 %s8422_s27, 4  ;;  %s8308_s16 = scalar_lea.vmem %s311_s25, 16  ;;  %s335_s15 = int_to_ptr.vmem [resolvable:$true] %s334_s15 }
 0x11d   :  { %p8309_p7 = scmp.ne.s32.totalorder %s311_s25, %s8308_s16  ;;  %s8312_s18 = scalar_lea.vmem %s311_s25, 32 }
 0x11e   :  { %p8313_p8 = scmp.lt.s32.totalorder %s311_s25, %s311_s25  ;;  %p8314_p9 = scmp.lt.s32.totalorder %s8312_s18, %s8308_s16 }
 0x120   :  { %289 = dma.hbm_to_vmem [thread:$0]  %s8968_s23, 32, %s287_s12, [#allocation29]  }
 0x121   :  { %p8315_p10 = por %p8314_p9, %p8313_p8 }
 0x123   :  { %p8316_p11 = pnand %p8315_p10, %p8309_p7 }
 0x125   :  { %8319 = shalt.err (!%p8316_p11)
}
 0x126   :  { %s8969_s22 = sld [smem:[#allocation60_spill]]  ;;  %s8328_s3 = scalar_lea.vmem %s335_s15, 16 }
 0x127   :  { %p8329_p12 = scmp.ne.s32.totalorder %s335_s15, %s8328_s3  ;;  %s8332_s0 = scalar_lea.vmem %s335_s15, 32 }
 0x128   :  { %p8333_p13 = scmp.lt.s32.totalorder %s335_s15, %s335_s15  ;;  %p8334_p0 = scmp.lt.s32.totalorder %s8332_s0, %s8328_s3 }
 0x12a   :  { %p8335_p1 = por %p8334_p0, %p8333_p13 }
 0x12c   :  { %313 = dma.hbm_to_vmem [thread:$0]  %s8969_s22, 16, %s311_s25, [#allocation32]  }
 0x12d   :  { %p8336_p2 = pnand %p8335_p1, %p8329_p12 }
 0x12f   :  { %8339 = shalt.err (!%p8336_p2)
}
 0x130   :  { %337 = dma.hbm_to_vmem [thread:$0]  %s8579_s4, 16, %s335_s15, [#allocation35]  }
 0x131   :  { %8340 = dma.done.wait [#allocation3], 512  }
 0x132   :  { %8341 = vsyncadd [#allocation3], 4294966784 }
 0x133   :  { %8342 = dma.done.wait [#allocation5], 32832  }
 0x134   :  { %8343 = vsyncadd [#allocation5], 4294934464 }
 0x135   :  { %8344 = dma.done.wait [#allocation8], 128  }
 0x136   :  { %8345 = vsyncadd [#allocation8], 4294967168 }
 0x137   :  { %8346 = dma.done.wait [#allocation11], 80  }
 0x138   :  { %8347 = vsyncadd [#allocation11], 4294967216 }
 0x139   :  { %8348 = dma.done.wait [#allocation14], 272  }
 0x13a   :  { %8349 = vsyncadd [#allocation14], 4294967024 }
 0x13b   :  { %8350 = dma.done.wait [#allocation17], 528  }
 0x13c   :  { %8351 = vsyncadd [#allocation17], 4294966768 }
 0x13d   :  { %8352 = dma.done.wait [#allocation20], 32  }
 0x13e   :  { %8353 = vsyncadd [#allocation20], 4294967264 }
 0x13f   :  { %8354 = dma.done.wait [#allocation23], 32768  }
 0x140   :  { %8355 = vsyncadd [#allocation23], 4294934528 }
 0x141   :  { %8356 = dma.done.wait [#allocation26], 4160  }
 0x142   :  { %8357 = vsyncadd [#allocation26], 4294963136 }
 0x143   :  { %8358 = dma.done.wait [#allocation29], 8224  }
 0x144   :  { %8359 = vsyncadd [#allocation29], 4294959072 }
 0x145   :  { %8360 = dma.done.wait [#allocation32], 32  }
 0x146   :  { %8361 = vsyncadd [#allocation32], 4294967264 }
 0x147   :  { %8362 = dma.done.wait [#allocation35], 32  }
 0x148   :  { %8363 = vsyncadd [#allocation35], 4294967264  ;;  %v6917_v0 = vld [vmem:[#allocation4 + $0xe4] ss:$16 sps:$4 sm:$0xff]   ;;  %v8423_v2 = vmov 0   ;;  %s8970_s4 = sld [smem:[#allocation49_spill]] }
 0x149   :  { %v6919_v1 = vld [vmem:[#allocation4 + $0x2e4] ss:$16 sps:$4 sm:$0xff]   ;;  %6916 = vset.pattern.permute.xlu0 %v8423_v2  ;;  %2014 = vmatprep.subr.bf16.mxu0 %v6917_v0  ;;  %v6921_v3 = vld [vmem:[#allocation4 + $0xe0] ss:$16 sps:$4 sm:$0xff]   ;;  %s8971_s9 = sld [smem:[#allocation51_spill]]  ;;  %vm2629_vm2 = vcmask 1043456  }
 0x14a   :  { %v6922_v4 = vld [vmem:[#allocation4 + $0x2e0] ss:$16 sps:$4 sm:$0xff]   ;;  %2057 = vmatprep.subr.bf16.mxu1 %v6919_v1  ;;  %v6923_v5 = vld [vmem:[#allocation4 + $0xc4] ss:$16 sps:$4 sm:$0xff]   ;;  %2015 = vmatpush1.bf16.msra.mxu0 %v6921_v3  ;;  %s8972_s14 = sld [smem:[#allocation50_spill]]  ;;  %vm2520_vm3 = vcmask 130048  }
 0x14b   :  { %2058 = vmatpush1.bf16.msra.mxu1 %v6922_v4  ;;  %v6925_v6 = vld [vmem:[#allocation4 + $0x2c4] ss:$16 sps:$4 sm:$0xff]   ;;  %v6927_v7 = vld [vmem:[#allocation4 + $0xc0] ss:$16 sps:$4 sm:$0xff]   ;;  %2016 = vmatprep.subr.bf16.mxu0 %v6923_v5  ;;  %vm8425_vm4 = vmmov 0   ;;  %vm2625_vm5 = vcmask 64512  }
 0x14c   :  { %v6928_v8 = vld [vmem:[#allocation4 + $0x2c0] ss:$16 sps:$4 sm:$0xff]   ;;  %2059 = vmatprep.subr.bf16.mxu1 %v6925_v6  ;;  %v6929_v9 = vld [vmem:[#allocation4 + $0xa4] ss:$16 sps:$4 sm:$0xff]   ;;  %vm2699_vm6 = vcmask 261120   ;;  %vm2785_vm7 = vcmask 523264  }
 0x14d   :  { %v6931_v10 = vld [vmem:[#allocation4 + $0x2a4] ss:$16 sps:$4 sm:$0xff]   ;;  %v6933_v11 = vld [vmem:[#allocation4 + $0xa0] ss:$16 sps:$4 sm:$0xff]   ;;  %s8973_s28 = sld [smem:[#allocation58_spill]] }
 0x14e   :  { %v6934_v12 = vld [vmem:[#allocation4 + $0x2a0] ss:$16 sps:$4 sm:$0xff]   ;;  %2017 = vmatpush1.bf16.msra.mxu0 %v6927_v7  ;;  %v6935_v13 = vld [vmem:[#allocation4 + $0x84] ss:$16 sps:$4 sm:$0xff]   ;;  %v409_v51 = vld [vmem:[%s8970_s4 + $0x8] sm:$0xff]  ;;  %s8974_s8 = sld [smem:[#allocation59_spill]] }
 0x14f   :  { %2060 = vmatpush1.bf16.msra.mxu1 %v6928_v8  ;;  %2018 = vmatprep.subr.bf16.mxu0 %v6929_v9  ;;  %v6937_v14 = vld [vmem:[#allocation4 + $0x284] ss:$16 sps:$4 sm:$0xff]   ;;  %v6939_v15 = vld [vmem:[#allocation4 + $0x80] ss:$16 sps:$4 sm:$0xff]   ;;  %v413_v52 = vld [vmem:[%s8970_s4 + $0x28] sm:$0xff]  ;;  %s8975_s1 = sld [smem:[#allocation61_spill]] }
 0x150   :  { %2061 = vmatprep.subr.bf16.mxu1 %v6931_v10  ;;  %v6940_v16 = vld [vmem:[#allocation4 + $0x280] ss:$16 sps:$4 sm:$0xff]   ;;  %v6941_v17 = vld [vmem:[#allocation4 + $0x64] ss:$16 sps:$4 sm:$0xff]   ;;  %v8631_v56 = vcombine.high %v409_v51, %v413_v52 }
 0x151   :  { %v6943_v18 = vld [vmem:[#allocation4 + $0x264] ss:$16 sps:$4 sm:$0xff]   ;;  %v6945_v19 = vld [vmem:[#allocation4 + $0x60] ss:$16 sps:$4 sm:$0xff]  }
 0x152   :  { %2019 = vmatpush1.bf16.msra.mxu0 %v6933_v11  ;;  %v6946_v20 = vld [vmem:[#allocation4 + $0x260] ss:$16 sps:$4 sm:$0xff]   ;;  %v6947_v21 = vld [vmem:[#allocation4 + $0x44] ss:$16 sps:$4 sm:$0xff]   ;;  %2089 = vmatprep.mubr.bf16.mxu1 %v8631_v56  ;;  %v8637_v11 = vcombine.low %v409_v51, %v413_v52  ;;  %v2480_v51 = vld [vmem:[%s8971_s9 + $0x8] sm:$0xff] }
 0x153   :  { %2062 = vmatpush1.bf16.msra.mxu1 %v6934_v12  ;;  %2020 = vmatprep.subr.bf16.mxu0 %v6935_v13  ;;  %v6949_v22 = vld [vmem:[#allocation4 + $0x244] ss:$16 sps:$4 sm:$0xff]   ;;  %v6951_v23 = vld [vmem:[#allocation4 + $0x40] ss:$16 sps:$4 sm:$0xff]  }
 0x154   :  { %2063 = vmatprep.subr.bf16.mxu1 %v6937_v14  ;;  %v6952_v24 = vld [vmem:[#allocation4 + $0x240] ss:$16 sps:$4 sm:$0xff]   ;;  %v6953_v25 = vld [vmem:[#allocation4 + $0x24] ss:$16 sps:$4 sm:$0xff]  }
 0x155   :  { %v6955_v26 = vld [vmem:[#allocation4 + $0x224] ss:$16 sps:$4 sm:$0xff]   ;;  %v6957_v27 = vld [vmem:[#allocation4 + $0x20] ss:$16 sps:$4 sm:$0xff]  }
 0x156   :  { %2021 = vmatpush1.bf16.msra.mxu0 %v6939_v15  ;;  %v6958_v28 = vld [vmem:[#allocation4 + $0x220] ss:$16 sps:$4 sm:$0xff]   ;;  %v6959_v29 = vld [vmem:[#allocation4 + $0x4] ss:$16 sps:$4 sm:$0xff]  }
 0x157   :  { %2064 = vmatpush1.bf16.msra.mxu1 %v6940_v16  ;;  %2022 = vmatprep.subr.bf16.mxu0 %v6941_v17  ;;  %v6961_v30 = vld [vmem:[#allocation4 + $0x204] ss:$16 sps:$4 sm:$0xff]   ;;  %v6963_v31 = vld [vmem:[#allocation4] ss:$16 sps:$4 sm:$0xff]  }
 0x158   :  { %2065 = vmatprep.subr.bf16.mxu1 %v6943_v18  ;;  %v6964_v32 = vld [vmem:[#allocation4 + $0x200] ss:$16 sps:$4 sm:$0xff]   ;;  %v6965_v33 = vld [vmem:[#allocation4 + $0x1e4] ss:$16 sps:$4 sm:$0xff]  }
 0x159   :  { %v6967_v34 = vld [vmem:[#allocation4 + $0x3e4] ss:$16 sps:$4 sm:$0xff]   ;;  %v6969_v35 = vld [vmem:[#allocation4 + $0x1e0] ss:$16 sps:$4 sm:$0xff]  }
 0x15a   :  { %2023 = vmatpush1.bf16.msra.mxu0 %v6945_v19  ;;  %v6970_v36 = vld [vmem:[#allocation4 + $0x3e0] ss:$16 sps:$4 sm:$0xff]   ;;  %v6971_v37 = vld [vmem:[#allocation4 + $0x1c4] ss:$16 sps:$4 sm:$0xff]  }
 0x15b   :  { %2066 = vmatpush1.bf16.msra.mxu1 %v6946_v20  ;;  %2024 = vmatprep.subr.bf16.mxu0 %v6947_v21  ;;  %v6973_v38 = vld [vmem:[#allocation4 + $0x3c4] ss:$16 sps:$4 sm:$0xff]   ;;  %v6975_v39 = vld [vmem:[#allocation4 + $0x1c0] ss:$16 sps:$4 sm:$0xff]  }
 0x15c   :  { %2067 = vmatprep.subr.bf16.mxu1 %v6949_v22  ;;  %v6976_v40 = vld [vmem:[#allocation4 + $0x3c0] ss:$16 sps:$4 sm:$0xff]   ;;  %v6977_v41 = vld [vmem:[#allocation4 + $0x1a4] ss:$16 sps:$4 sm:$0xff]  }
 0x15d   :  { %v6979_v42 = vld [vmem:[#allocation4 + $0x3a4] ss:$16 sps:$4 sm:$0xff]   ;;  %v6981_v43 = vld [vmem:[#allocation4 + $0x1a0] ss:$16 sps:$4 sm:$0xff]  }
 0x15e   :  { %2025 = vmatpush1.bf16.msra.mxu0 %v6951_v23  ;;  %v6982_v44 = vld [vmem:[#allocation4 + $0x3a0] ss:$16 sps:$4 sm:$0xff]   ;;  %v6983_v45 = vld [vmem:[#allocation4 + $0x184] ss:$16 sps:$4 sm:$0xff]  }
 0x15f   :  { %2068 = vmatpush1.bf16.msra.mxu1 %v6952_v24  ;;  %2026 = vmatprep.subr.bf16.mxu0 %v6953_v25  ;;  %v6985_v46 = vld [vmem:[#allocation4 + $0x384] ss:$16 sps:$4 sm:$0xff]   ;;  %v6987_v47 = vld [vmem:[#allocation4 + $0x180] ss:$16 sps:$4 sm:$0xff]  }
 0x160   :  { %2069 = vmatprep.subr.bf16.mxu1 %v6955_v26  ;;  %v6988_v48 = vld [vmem:[#allocation4 + $0x380] ss:$16 sps:$4 sm:$0xff]   ;;  %v6989_v53 = vld [vmem:[#allocation4 + $0x164] ss:$16 sps:$4 sm:$0xff]  }
 0x161   :  { %v408_v49 = vld [vmem:[%s8970_s4] sm:$0xff] }
 0x162   :  { %2027 = vmatpush1.bf16.msra.mxu0 %v6957_v27  ;;  %v412_v50 = vld [vmem:[%s8970_s4 + $0x20] sm:$0xff] }
 0x163   :  { %2070 = vmatpush1.bf16.msra.mxu1 %v6958_v28  ;;  %2028 = vmatprep.subr.bf16.mxu0 %v6959_v29  ;;  %v8629_v54 = vcombine.high %v408_v49, %v412_v50  ;;  %v6991_v55 = vld [vmem:[#allocation4 + $0x364] ss:$16 sps:$4 sm:$0xff]   ;;  %v6993_v57 = vld [vmem:[#allocation4 + $0x160] ss:$16 sps:$4 sm:$0xff]   ;;  %v8635_v10 = vcombine.low %v408_v49, %v412_v50 }
 0x164   :  { %2071 = vmatprep.subr.bf16.mxu1 %v6961_v30  ;;  %v6994_v58 = vld [vmem:[#allocation4 + $0x360] ss:$16 sps:$4 sm:$0xff]   ;;  %v6995_v59 = vld [vmem:[#allocation4 + $0x144] ss:$16 sps:$4 sm:$0xff]  }
 0x165   :  { %2046 = vmatprep.mubr.bf16.mxu0 %v8629_v54  ;;  %v6997_v60 = vld [vmem:[#allocation4 + $0x344] ss:$16 sps:$4 sm:$0xff]   ;;  %v6999_v61 = vld [vmem:[#allocation4 + $0x140] ss:$16 sps:$4 sm:$0xff]  }
 0x166   :  { %2029 = vmatpush1.bf16.msra.mxu0 %v6963_v31  ;;  %v7000_v62 = vld [vmem:[#allocation4 + $0x340] ss:$16 sps:$4 sm:$0xff]   ;;  %v7001_v63 = vld [vmem:[#allocation4 + $0x124] ss:$16 sps:$4 sm:$0xff]  }
 0x167   :  { %2072 = vmatpush1.bf16.msra.mxu1 %v6964_v32  ;;  %2030 = vmatprep.subr.bf16.mxu0 %v6965_v33  ;;  %v7003_v0 = vld [vmem:[#allocation4 + $0x324] ss:$16 sps:$4 sm:$0xff]   ;;  %v7005_v1 = vld [vmem:[#allocation4 + $0x120] ss:$16 sps:$4 sm:$0xff]  }
 0x168   :  { %2073 = vmatprep.subr.bf16.mxu1 %v6967_v34  ;;  %v7006_v3 = vld [vmem:[#allocation4 + $0x320] ss:$16 sps:$4 sm:$0xff]   ;;  %v7007_v4 = vld [vmem:[#allocation4 + $0x104] ss:$16 sps:$4 sm:$0xff]  }
 0x169   :  { %v7009_v5 = vld [vmem:[#allocation4 + $0x304] ss:$16 sps:$4 sm:$0xff]   ;;  %v7011_v6 = vld [vmem:[#allocation4 + $0x100] ss:$16 sps:$4 sm:$0xff]  }
 0x16a   :  { %2031 = vmatpush2.bf16.msra.mxu0 %v6969_v35  ;;  %v7012_v7 = vld [vmem:[#allocation4 + $0x300] ss:$16 sps:$4 sm:$0xff]   ;;  %v7015_v8 = vld [vmem:[#allocation4 + $0x4e4] ss:$16 sps:$4 sm:$0xff]  }
 0x16b   :  { %2074 = vmatpush2.bf16.msra.mxu1 %v6970_v36  ;;  %2032 = vmatprep.subr.bf16.mxu0 %v6971_v37  ;;  %v7018_v9 = vld [vmem:[#allocation4 + $0x6e4] ss:$16 sps:$4 sm:$0xff]   ;;  %v7013_v12 = vld [vmem:[#allocation4 + $0x4e0] ss:$16 sps:$4 sm:$0xff]  }
 0x16c   :  { %2075 = vmatprep.subr.bf16.mxu1 %v6973_v38  ;;  %v7016_v13 = vld [vmem:[#allocation4 + $0x6e0] ss:$16 sps:$4 sm:$0xff]   ;;  %v7021_v14 = vld [vmem:[#allocation4 + $0x4c4] ss:$16 sps:$4 sm:$0xff]  }
 0x16d   :  { %v7024_v15 = vld [vmem:[#allocation4 + $0x6c4] ss:$16 sps:$4 sm:$0xff]   ;;  %v7019_v16 = vld [vmem:[#allocation4 + $0x4c0] ss:$16 sps:$4 sm:$0xff]  }
 0x16e   :  { %2033 = vmatpush2.bf16.msra.mxu0 %v6975_v39  ;;  %v7022_v17 = vld [vmem:[#allocation4 + $0x6c0] ss:$16 sps:$4 sm:$0xff]   ;;  %v7027_v18 = vld [vmem:[#allocation4 + $0x4a4] ss:$16 sps:$4 sm:$0xff]  }
 0x16f   :  { %2076 = vmatpush2.bf16.msra.mxu1 %v6976_v40  ;;  %2034 = vmatprep.subr.bf16.mxu0 %v6977_v41  ;;  %v7030_v19 = vld [vmem:[#allocation4 + $0x6a4] ss:$16 sps:$4 sm:$0xff]   ;;  %v7025_v20 = vld [vmem:[#allocation4 + $0x4a0] ss:$16 sps:$4 sm:$0xff]   ;;  %v8648_v40 = vld [vmem:[%s8970_s4 + $0x18] sm:$0xff] }
 0x170   :  { %2077 = vmatprep.subr.bf16.mxu1 %v6979_v42  ;;  %v7028_v21 = vld [vmem:[#allocation4 + $0x6a0] ss:$16 sps:$4 sm:$0xff]   ;;  %v7033_v22 = vld [vmem:[#allocation4 + $0x484] ss:$16 sps:$4 sm:$0xff]   ;;  %v8651_v41 = vld [vmem:[%s8970_s4 + $0x38] sm:$0xff] }
 0x171   :  { %v7036_v23 = vld [vmem:[#allocation4 + $0x684] ss:$16 sps:$4 sm:$0xff]   ;;  %v7031_v24 = vld [vmem:[#allocation4 + $0x480] ss:$16 sps:$4 sm:$0xff]  }
 0x172   :  { %2035 = vmatpush2.bf16.msra.mxu0 %v6981_v43  ;;  %v7034_v25 = vld [vmem:[#allocation4 + $0x680] ss:$16 sps:$4 sm:$0xff]   ;;  %v7039_v26 = vld [vmem:[#allocation4 + $0x464] ss:$16 sps:$4 sm:$0xff]  }
 0x173   :  { %2078 = vmatpush2.bf16.msra.mxu1 %v6982_v44  ;;  %2036 = vmatprep.subr.bf16.mxu0 %v6983_v45  ;;  %v7042_v27 = vld [vmem:[#allocation4 + $0x664] ss:$16 sps:$4 sm:$0xff]   ;;  %v7037_v28 = vld [vmem:[#allocation4 + $0x460] ss:$16 sps:$4 sm:$0xff]   ;;  %v8659_v45 = vcombine.high %v8648_v40, %v8651_v41 }
 0x174   :  { %2079 = vmatprep.subr.bf16.mxu1 %v6985_v46  ;;  %v7040_v29 = vld [vmem:[#allocation4 + $0x660] ss:$16 sps:$4 sm:$0xff]   ;;  %v7045_v30 = vld [vmem:[#allocation4 + $0x444] ss:$16 sps:$4 sm:$0xff]  }
 0x175   :  { %v7048_v31 = vld [vmem:[#allocation4 + $0x644] ss:$16 sps:$4 sm:$0xff]   ;;  %v7043_v32 = vld [vmem:[#allocation4 + $0x440] ss:$16 sps:$4 sm:$0xff]  }
 0x176   :  { %2037 = vmatpush2.bf16.msra.mxu0 %v6987_v47  ;;  %v7046_v33 = vld [vmem:[#allocation4 + $0x640] ss:$16 sps:$4 sm:$0xff]   ;;  %v7051_v34 = vld [vmem:[#allocation4 + $0x424] ss:$16 sps:$4 sm:$0xff]  }
 0x177   :  { %2080 = vmatpush2.bf16.msra.mxu1 %v6988_v48  ;;  %2038 = vmatprep.subr.bf16.mxu0 %v6989_v53  ;;  %v7054_v35 = vld [vmem:[#allocation4 + $0x624] ss:$16 sps:$4 sm:$0xff]   ;;  %v7049_v36 = vld [vmem:[#allocation4 + $0x420] ss:$16 sps:$4 sm:$0xff]  }
 0x178   :  { %2081 = vmatprep.subr.bf16.mxu1 %v6991_v55  ;;  %v7052_v37 = vld [vmem:[#allocation4 + $0x620] ss:$16 sps:$4 sm:$0xff]   ;;  %v7057_v42 = vld [vmem:[#allocation4 + $0x404] ss:$16 sps:$4 sm:$0xff]  }
 0x179   :  { %v8642_v38 = vld [vmem:[%s8970_s4 + $0x10] sm:$0xff]  ;;  %v2479_v46 = vld [vmem:[%s8971_s9] sm:$0xff] }
 0x17a   :  { %2039 = vmatpush2.bf16.msra.mxu0 %v6993_v57  ;;  %v8645_v39 = vld [vmem:[%s8970_s4 + $0x30] sm:$0xff]  ;;  %2484 = vperm.xlu0 %6916, %v2479_v46   ;;  %v7144_v46 = vld [vmem:[#allocation4 + $0x24c] ss:$16 sps:$4 sm:$0xff]  }
 0x17b   :  { %2082 = vmatpush2.bf16.msra.mxu1 %v6994_v58  ;;  %2040 = vmatprep.subr.bf16.mxu0 %v6995_v59  ;;  %v8655_v43 = vcombine.high %v8642_v38, %v8645_v39  ;;  %v7060_v44 = vld [vmem:[#allocation4 + $0x604] ss:$16 sps:$4 sm:$0xff]   ;;  %v7055_v47 = vld [vmem:[#allocation4 + $0x400] ss:$16 sps:$4 sm:$0xff]  }
 0x17c   :  { %2083 = vmatprep.subr.bf16.mxu1 %v6997_v60  ;;  %v7058_v48 = vld [vmem:[#allocation4 + $0x600] ss:$16 sps:$4 sm:$0xff]   ;;  %v7063_v49 = vld [vmem:[#allocation4 + $0x5e4] ss:$16 sps:$4 sm:$0xff]  }
 0x17d   :  { %v7066_v50 = vld [vmem:[#allocation4 + $0x7e4] ss:$16 sps:$4 sm:$0xff]   ;;  %v7061_v52 = vld [vmem:[#allocation4 + $0x5e0] ss:$16 sps:$4 sm:$0xff]  }
 0x17e   :  { %2041 = vmatpush2.bf16.msra.mxu0 %v6999_v61  ;;  %2487 = vperm.xlu0 %6916, %v2480_v51   ;;  %v7064_v53 = vld [vmem:[#allocation4 + $0x7e0] ss:$16 sps:$4 sm:$0xff]   ;;  %v7069_v55 = vld [vmem:[#allocation4 + $0x5c4] ss:$16 sps:$4 sm:$0xff]   ;;  %v7145_v51 = vld [vmem:[#allocation4 + $0x28] ss:$16 sps:$4 sm:$0xff]  }
 0x17f   :  { %2084 = vmatpush2.bf16.msra.mxu1 %v7000_v62  ;;  %2042 = vmatprep.subr.bf16.mxu0 %v7001_v63  ;;  %v7072_v57 = vld [vmem:[#allocation4 + $0x7c4] ss:$16 sps:$4 sm:$0xff]   ;;  %v7067_v58 = vld [vmem:[#allocation4 + $0x5c0] ss:$16 sps:$4 sm:$0xff]  }
 0x180   :  { %2085 = vmatprep.subr.bf16.mxu1 %v7003_v0  ;;  %v7070_v59 = vld [vmem:[#allocation4 + $0x7c0] ss:$16 sps:$4 sm:$0xff]   ;;  %v7075_v60 = vld [vmem:[#allocation4 + $0x5a4] ss:$16 sps:$4 sm:$0xff]  }
 0x181   :  { %v7078_v61 = vld [vmem:[#allocation4 + $0x7a4] ss:$16 sps:$4 sm:$0xff]   ;;  %v7073_v62 = vld [vmem:[#allocation4 + $0x5a0] ss:$16 sps:$4 sm:$0xff]  }
 0x182   :  { %2043 = vmatpush2.bf16.msra.mxu0 %v7005_v1  ;;  %v7076_v63 = vld [vmem:[#allocation4 + $0x7a0] ss:$16 sps:$4 sm:$0xff]   ;;  %v7081_v0 = vld [vmem:[#allocation4 + $0x584] ss:$16 sps:$4 sm:$0xff]  }
 0x183   :  { %2086 = vmatpush2.bf16.msra.mxu1 %v7006_v3  ;;  %2044 = vmatprep.subr.bf16.mxu0 %v7007_v4  ;;  %v7084_v1 = vld [vmem:[#allocation4 + $0x784] ss:$16 sps:$4 sm:$0xff]   ;;  %v7079_v3 = vld [vmem:[#allocation4 + $0x580] ss:$16 sps:$4 sm:$0xff]  }
 0x184   :  { %2087 = vmatprep.subr.bf16.mxu1 %v7009_v5  ;;  %v7082_v4 = vld [vmem:[#allocation4 + $0x780] ss:$16 sps:$4 sm:$0xff]   ;;  %v7087_v5 = vld [vmem:[#allocation4 + $0x564] ss:$16 sps:$4 sm:$0xff]  }
 0x186   :  { %2045 = vmatpush2.bf16.msra.mxu0 %v7011_v6  ;;  %v7090_v6 = vld [vmem:[#allocation4 + $0x764] ss:$16 sps:$4 sm:$0xff]  }
 0x187   :  { %2088 = vmatpush2.bf16.msra.mxu1 %v7012_v7  ;;  %2100 = vmatprep.subr.bf16.mxu0 %v7015_v8  ;;  %v7085_v7 = vld [vmem:[#allocation4 + $0x560] ss:$16 sps:$4 sm:$0xff]  }
 0x188   :  { %2143 = vmatprep.subr.bf16.mxu1 %v7018_v9  ;;  %v7088_v8 = vld [vmem:[#allocation4 + $0x760] ss:$16 sps:$4 sm:$0xff]   ;;  %v7093_v9 = vld [vmem:[#allocation4 + $0x544] ss:$16 sps:$4 sm:$0xff]  }
 0x189   :  { %2047 = vmatmul.mubr.bf16.vlgmr.msra.gmra.mxu0 %v8635_v10 }
 0x18a   :  { %2090 = vmatmul.mubr.bf16.vlgmr.msra.gmra.mxu1 %v8637_v11  ;;  %2101 = vmatpush1.bf16.msra.mxu0 %v7013_v12  ;;  %v7096_v12 = vld [vmem:[#allocation4 + $0x744] ss:$16 sps:$4 sm:$0xff]  }
 0x18b   :  { %2144 = vmatpush1.bf16.msra.mxu1 %v7016_v13  ;;  %2102 = vmatprep.subr.bf16.mxu0 %v7021_v14  ;;  %v7091_v13 = vld [vmem:[#allocation4 + $0x540] ss:$16 sps:$4 sm:$0xff]  }
 0x18c   :  { %2145 = vmatprep.subr.bf16.mxu1 %v7024_v15  ;;  %2132 = vmatprep.mubr.bf16.mxu0 %v8655_v43  ;;  %v7094_v14 = vld [vmem:[#allocation4 + $0x740] ss:$16 sps:$4 sm:$0xff]   ;;  %v7099_v15 = vld [vmem:[#allocation4 + $0x524] ss:$16 sps:$4 sm:$0xff]  }
 0x18d   :  { %2175 = vmatprep.mubr.bf16.mxu1 %v8659_v45 }
 0x18e   :  { %2103 = vmatpush1.bf16.msra.mxu0 %v7019_v16  ;;  %v7102_v16 = vld [vmem:[#allocation4 + $0x724] ss:$16 sps:$4 sm:$0xff]  }
 0x18f   :  { %2146 = vmatpush1.bf16.msra.mxu1 %v7022_v17  ;;  %2104 = vmatprep.subr.bf16.mxu0 %v7027_v18  ;;  %v7097_v17 = vld [vmem:[#allocation4 + $0x520] ss:$16 sps:$4 sm:$0xff]  }
 0x190   :  { %2147 = vmatprep.subr.bf16.mxu1 %v7030_v19  ;;  %v7100_v18 = vld [vmem:[#allocation4 + $0x720] ss:$16 sps:$4 sm:$0xff]   ;;  %v7105_v19 = vld [vmem:[#allocation4 + $0x504] ss:$16 sps:$4 sm:$0xff]  }
 0x192   :  { %2105 = vmatpush1.bf16.msra.mxu0 %v7025_v20  ;;  %v7108_v20 = vld [vmem:[#allocation4 + $0x704] ss:$16 sps:$4 sm:$0xff]  }
 0x193   :  { %2148 = vmatpush1.bf16.msra.mxu1 %v7028_v21  ;;  %2106 = vmatprep.subr.bf16.mxu0 %v7033_v22  ;;  %v7103_v21 = vld [vmem:[#allocation4 + $0x500] ss:$16 sps:$4 sm:$0xff]  }
 0x194   :  { %2149 = vmatprep.subr.bf16.mxu1 %v7036_v23  ;;  %v7106_v22 = vld [vmem:[#allocation4 + $0x700] ss:$16 sps:$4 sm:$0xff]   ;;  %v7111_v23 = vld [vmem:[#allocation4 + $0xec] ss:$16 sps:$4 sm:$0xff]  }
 0x196   :  { %2107 = vmatpush1.bf16.msra.mxu0 %v7031_v24  ;;  %v7114_v24 = vld [vmem:[#allocation4 + $0x2ec] ss:$16 sps:$4 sm:$0xff]  }
 0x197   :  { %2150 = vmatpush1.bf16.msra.mxu1 %v7034_v25  ;;  %2108 = vmatprep.subr.bf16.mxu0 %v7039_v26  ;;  %v8667_v25 = vcombine.low %v8642_v38, %v8645_v39  ;;  %v8671_v26 = vcombine.low %v8648_v40, %v8651_v41  ;;  %v7132_v38 = vld [vmem:[#allocation4 + $0x28c] ss:$16 sps:$4 sm:$0xff]   ;;  %v7127_v39 = vld [vmem:[#allocation4 + $0x88] ss:$16 sps:$4 sm:$0xff]  }
 0x198   :  { %2151 = vmatprep.subr.bf16.mxu1 %v7042_v27  ;;  %v7109_v27 = vld [vmem:[#allocation4 + $0xe8] ss:$16 sps:$4 sm:$0xff]   ;;  %v7135_v41 = vld [vmem:[#allocation4 + $0x6c] ss:$16 sps:$4 sm:$0xff]  }
 0x199   :  { %v7130_v40 = vld [vmem:[#allocation4 + $0x288] ss:$16 sps:$4 sm:$0xff]  }
 0x19a   :  { %2109 = vmatpush1.bf16.msra.mxu0 %v7037_v28  ;;  %v7112_v28 = vld [vmem:[#allocation4 + $0x2e8] ss:$16 sps:$4 sm:$0xff]  }
 0x19b   :  { %2152 = vmatpush1.bf16.msra.mxu1 %v7040_v29  ;;  %2110 = vmatprep.subr.bf16.mxu0 %v7045_v30  ;;  %v7117_v29 = vld [vmem:[#allocation4 + $0xcc] ss:$16 sps:$4 sm:$0xff]  }
 0x19c   :  { %2153 = vmatprep.subr.bf16.mxu1 %v7048_v31  ;;  %v7120_v30 = vld [vmem:[#allocation4 + $0x2cc] ss:$16 sps:$4 sm:$0xff]   ;;  %v7115_v31 = vld [vmem:[#allocation4 + $0xc8] ss:$16 sps:$4 sm:$0xff]  }
 0x19e   :  { %2111 = vmatpush1.bf16.msra.mxu0 %v7043_v32  ;;  %v7118_v32 = vld [vmem:[#allocation4 + $0x2c8] ss:$16 sps:$4 sm:$0xff]  }
 0x19f   :  { %2154 = vmatpush1.bf16.msra.mxu1 %v7046_v33  ;;  %2112 = vmatprep.subr.bf16.mxu0 %v7051_v34  ;;  %v7123_v33 = vld [vmem:[#allocation4 + $0xac] ss:$16 sps:$4 sm:$0xff]  }
 0x1a0   :  { %2155 = vmatprep.subr.bf16.mxu1 %v7054_v35  ;;  %v7126_v34 = vld [vmem:[#allocation4 + $0x2ac] ss:$16 sps:$4 sm:$0xff]   ;;  %v7121_v35 = vld [vmem:[#allocation4 + $0xa8] ss:$16 sps:$4 sm:$0xff]  }
 0x1a2   :  { %2113 = vmatpush1.bf16.msra.mxu0 %v7049_v36  ;;  %v7124_v36 = vld [vmem:[#allocation4 + $0x2a8] ss:$16 sps:$4 sm:$0xff]  }
 0x1a3   :  { %2156 = vmatpush1.bf16.msra.mxu1 %v7052_v37  ;;  %2114 = vmatprep.subr.bf16.mxu0 %v7057_v42  ;;  %v7129_v37 = vld [vmem:[#allocation4 + $0x8c] ss:$16 sps:$4 sm:$0xff]  }
 0x1a4   :  { %2157 = vmatprep.subr.bf16.mxu1 %v7060_v44  ;;  %v7138_v42 = vld [vmem:[#allocation4 + $0x26c] ss:$16 sps:$4 sm:$0xff]  }
 0x1a5   :  { %v7141_v44 = vld [vmem:[#allocation4 + $0x4c] ss:$16 sps:$4 sm:$0xff]  }
 0x1a6   :  { %2115 = vmatpush1.bf16.msra.mxu0 %v7055_v47  ;;  %v7139_v47 = vld [vmem:[#allocation4 + $0x48] ss:$16 sps:$4 sm:$0xff]  }
 0x1a7   :  { %2158 = vmatpush1.bf16.msra.mxu1 %v7058_v48  ;;  %2116 = vmatprep.subr.bf16.mxu0 %v7063_v49  ;;  %v7142_v48 = vld [vmem:[#allocation4 + $0x248] ss:$16 sps:$4 sm:$0xff]   ;;  %v7147_v49 = vld [vmem:[#allocation4 + $0x2c] ss:$16 sps:$4 sm:$0xff]  }
 0x1a8   :  { %2159 = vmatprep.subr.bf16.mxu1 %v7066_v50  ;;  %v7150_v50 = vld [vmem:[#allocation4 + $0x22c] ss:$16 sps:$4 sm:$0xff]  }
 0x1aa   :  { %2117 = vmatpush2.bf16.msra.mxu0 %v7061_v52  ;;  %v7148_v52 = vld [vmem:[#allocation4 + $0x228] ss:$16 sps:$4 sm:$0xff]  }
 0x1ab   :  { %2160 = vmatpush2.bf16.msra.mxu1 %v7064_v53  ;;  %2118 = vmatprep.subr.bf16.mxu0 %v7069_v55  ;;  %v7153_v53 = vld [vmem:[#allocation4 + $0xc] ss:$16 sps:$4 sm:$0xff]  }
 0x1ac   :  { %2161 = vmatprep.subr.bf16.mxu1 %v7072_v57  ;;  %v7156_v55 = vld [vmem:[#allocation4 + $0x20c] ss:$16 sps:$4 sm:$0xff]   ;;  %v7151_v57 = vld [vmem:[#allocation4 + $0x8] ss:$16 sps:$4 sm:$0xff]  }
 0x1ae   :  { %2119 = vmatpush2.bf16.msra.mxu0 %v7067_v58  ;;  %v7154_v58 = vld [vmem:[#allocation4 + $0x208] ss:$16 sps:$4 sm:$0xff]  }
 0x1af   :  { %2162 = vmatpush2.bf16.msra.mxu1 %v7070_v59  ;;  %2120 = vmatprep.subr.bf16.mxu0 %v7075_v60  ;;  %v7159_v59 = vld [vmem:[#allocation4 + $0x1ec] ss:$16 sps:$4 sm:$0xff]  }
 0x1b0   :  { %2163 = vmatprep.subr.bf16.mxu1 %v7078_v61  ;;  %v7162_v60 = vld [vmem:[#allocation4 + $0x3ec] ss:$16 sps:$4 sm:$0xff]   ;;  %v7157_v61 = vld [vmem:[#allocation4 + $0x1e8] ss:$16 sps:$4 sm:$0xff]  }
 0x1b2   :  { %2121 = vmatpush2.bf16.msra.mxu0 %v7073_v62  ;;  %v7160_v62 = vld [vmem:[#allocation4 + $0x3e8] ss:$16 sps:$4 sm:$0xff]  }
 0x1b3   :  { %2164 = vmatpush2.bf16.msra.mxu1 %v7076_v63  ;;  %2122 = vmatprep.subr.bf16.mxu0 %v7081_v0  ;;  %v7165_v63 = vld [vmem:[#allocation4 + $0x1cc] ss:$16 sps:$4 sm:$0xff]  }
 0x1b4   :  { %2165 = vmatprep.subr.bf16.mxu1 %v7084_v1  ;;  %v7168_v0 = vld [vmem:[#allocation4 + $0x3cc] ss:$16 sps:$4 sm:$0xff]   ;;  %v7163_v1 = vld [vmem:[#allocation4 + $0x1c8] ss:$16 sps:$4 sm:$0xff]  }
 0x1b6   :  { %2123 = vmatpush2.bf16.msra.mxu0 %v7079_v3  ;;  %v7166_v3 = vld [vmem:[#allocation4 + $0x3c8] ss:$16 sps:$4 sm:$0xff]  }
 0x1b7   :  { %2166 = vmatpush2.bf16.msra.mxu1 %v7082_v4  ;;  %2124 = vmatprep.subr.bf16.mxu0 %v7087_v5  ;;  %v7171_v4 = vld [vmem:[#allocation4 + $0x1ac] ss:$16 sps:$4 sm:$0xff]  }
 0x1b8   :  { %2167 = vmatprep.subr.bf16.mxu1 %v7090_v6  ;;  %v7174_v5 = vld [vmem:[#allocation4 + $0x3ac] ss:$16 sps:$4 sm:$0xff]   ;;  %v7169_v6 = vld [vmem:[#allocation4 + $0x1a8] ss:$16 sps:$4 sm:$0xff]  }
 0x1ba   :  { %2125 = vmatpush2.bf16.msra.mxu0 %v7085_v7  ;;  %v7172_v7 = vld [vmem:[#allocation4 + $0x3a8] ss:$16 sps:$4 sm:$0xff]  }
 0x1bb   :  { %2168 = vmatpush2.bf16.msra.mxu1 %v7088_v8  ;;  %2126 = vmatprep.subr.bf16.mxu0 %v7093_v9  ;;  %v7177_v8 = vld [vmem:[#allocation4 + $0x18c] ss:$16 sps:$4 sm:$0xff]  }
 0x1bc   :  { %2169 = vmatprep.subr.bf16.mxu1 %v7096_v12  ;;  %v7180_v9 = vld [vmem:[#allocation4 + $0x38c] ss:$16 sps:$4 sm:$0xff]   ;;  %v7175_v12 = vld [vmem:[#allocation4 + $0x188] ss:$16 sps:$4 sm:$0xff]  }
 0x1be   :  { %2127 = vmatpush2.bf16.msra.mxu0 %v7091_v13  ;;  %v7178_v13 = vld [vmem:[#allocation4 + $0x388] ss:$16 sps:$4 sm:$0xff]  }
 0x1bf   :  { %2170 = vmatpush2.bf16.msra.mxu1 %v7094_v14  ;;  %2128 = vmatprep.subr.bf16.mxu0 %v7099_v15  ;;  %v7183_v14 = vld [vmem:[#allocation4 + $0x16c] ss:$16 sps:$4 sm:$0xff]  }
 0x1c0   :  { %2171 = vmatprep.subr.bf16.mxu1 %v7102_v16  ;;  %v7186_v15 = vld [vmem:[#allocation4 + $0x36c] ss:$16 sps:$4 sm:$0xff]   ;;  %v7181_v16 = vld [vmem:[#allocation4 + $0x168] ss:$16 sps:$4 sm:$0xff]  }
 0x1c2   :  { %2129 = vmatpush2.bf16.msra.mxu0 %v7097_v17  ;;  %v7184_v17 = vld [vmem:[#allocation4 + $0x368] ss:$16 sps:$4 sm:$0xff]  }
 0x1c3   :  { %2172 = vmatpush2.bf16.msra.mxu1 %v7100_v18  ;;  %2130 = vmatprep.subr.bf16.mxu0 %v7105_v19  ;;  %v7189_v18 = vld [vmem:[#allocation4 + $0x14c] ss:$16 sps:$4 sm:$0xff]  }
 0x1c4   :  { %2173 = vmatprep.subr.bf16.mxu1 %v7108_v20  ;;  %v7192_v19 = vld [vmem:[#allocation4 + $0x34c] ss:$16 sps:$4 sm:$0xff]   ;;  %v7187_v20 = vld [vmem:[#allocation4 + $0x148] ss:$16 sps:$4 sm:$0xff]  }
 0x1c6   :  { %2131 = vmatpush2.bf16.msra.mxu0 %v7103_v21  ;;  %v7190_v21 = vld [vmem:[#allocation4 + $0x348] ss:$16 sps:$4 sm:$0xff]  }
 0x1c7   :  { %2174 = vmatpush2.bf16.msra.mxu1 %v7106_v22  ;;  %2186 = vmatprep.subr.bf16.mxu0 %v7111_v23  ;;  %v7195_v22 = vld [vmem:[#allocation4 + $0x12c] ss:$16 sps:$4 sm:$0xff]  }
 0x1c8   :  { %2229 = vmatprep.subr.bf16.mxu1 %v7114_v24  ;;  %v7198_v23 = vld [vmem:[#allocation4 + $0x32c] ss:$16 sps:$4 sm:$0xff]   ;;  %v7193_v24 = vld [vmem:[#allocation4 + $0x128] ss:$16 sps:$4 sm:$0xff]  }
 0x1c9   :  { %2133 = vmatmul.mubr.bf16.vlgmr.msra.gmra.mxu0 %v8667_v25 }
 0x1ca   :  { %2176 = vmatmul.mubr.bf16.vlgmr.msra.gmra.mxu1 %v8671_v26  ;;  %2187 = vmatpush1.bf16.msra.mxu0 %v7109_v27  ;;  %v7196_v27 = vld [vmem:[#allocation4 + $0x328] ss:$16 sps:$4 sm:$0xff]  }
 0x1cb   :  { %2230 = vmatpush1.bf16.msra.mxu1 %v7112_v28  ;;  %2188 = vmatprep.subr.bf16.mxu0 %v7117_v29  ;;  %v7201_v28 = vld [vmem:[#allocation4 + $0x10c] ss:$16 sps:$4 sm:$0xff]  }
 0x1cc   :  { %2231 = vmatprep.subr.bf16.mxu1 %v7120_v30  ;;  %2218 = vmatprep.mubr.bf16.mxu0 %v8629_v54  ;;  %v7133_v54 = vld [vmem:[#allocation4 + $0x68] ss:$16 sps:$4 sm:$0xff]   ;;  %v7204_v29 = vld [vmem:[#allocation4 + $0x30c] ss:$16 sps:$4 sm:$0xff]  }
 0x1cd   :  { %2261 = vmatprep.mubr.bf16.mxu1 %v8631_v56  ;;  %v7136_v56 = vld [vmem:[#allocation4 + $0x268] ss:$16 sps:$4 sm:$0xff]  }
 0x1ce   :  { %2189 = vmatpush1.bf16.msra.mxu0 %v7115_v31  ;;  %v7199_v30 = vld [vmem:[#allocation4 + $0x108] ss:$16 sps:$4 sm:$0xff]  }
 0x1cf   :  { %2232 = vmatpush1.bf16.msra.mxu1 %v7118_v32  ;;  %2190 = vmatprep.subr.bf16.mxu0 %v7123_v33  ;;  %v7202_v31 = vld [vmem:[#allocation4 + $0x308] ss:$16 sps:$4 sm:$0xff]   ;;  %v7207_v32 = vld [vmem:[#allocation4 + $0x4ec] ss:$16 sps:$4 sm:$0xff]  }
 0x1d0   :  { %2233 = vmatprep.subr.bf16.mxu1 %v7126_v34  ;;  %v7210_v33 = vld [vmem:[#allocation4 + $0x6ec] ss:$16 sps:$4 sm:$0xff]   ;;  %v7205_v34 = vld [vmem:[#allocation4 + $0x4e8] ss:$16 sps:$4 sm:$0xff]  }
 0x1d2   :  { %2191 = vmatpush1.bf16.msra.mxu0 %v7121_v35  ;;  %v7208_v35 = vld [vmem:[#allocation4 + $0x6e8] ss:$16 sps:$4 sm:$0xff]  }
 0x1d3   :  { %2234 = vmatpush1.bf16.msra.mxu1 %v7124_v36  ;;  %2192 = vmatprep.subr.bf16.mxu0 %v7129_v37  ;;  %v7213_v36 = vld [vmem:[#allocation4 + $0x4cc] ss:$16 sps:$4 sm:$0xff]  }
 0x1d4   :  { %2235 = vmatprep.subr.bf16.mxu1 %v7132_v38  ;;  %v7216_v37 = vld [vmem:[#allocation4 + $0x6cc] ss:$16 sps:$4 sm:$0xff]   ;;  %v7211_v38 = vld [vmem:[#allocation4 + $0x4c8] ss:$16 sps:$4 sm:$0xff]  }
 0x1d6   :  { %2193 = vmatpush1.bf16.msra.mxu0 %v7127_v39  ;;  %v7214_v39 = vld [vmem:[#allocation4 + $0x6c8] ss:$16 sps:$4 sm:$0xff]  }
 0x1d7   :  { %2236 = vmatpush1.bf16.msra.mxu1 %v7130_v40  ;;  %2194 = vmatprep.subr.bf16.mxu0 %v7135_v41  ;;  %v7219_v40 = vld [vmem:[#allocation4 + $0x4ac] ss:$16 sps:$4 sm:$0xff]  }
 0x1d8   :  { %2237 = vmatprep.subr.bf16.mxu1 %v7138_v42  ;;  %v7222_v41 = vld [vmem:[#allocation4 + $0x6ac] ss:$16 sps:$4 sm:$0xff]   ;;  %v7217_v42 = vld [vmem:[#allocation4 + $0x4a8] ss:$16 sps:$4 sm:$0xff]  }
 0x1da   :  { %2195 = vmatpush1.bf16.msra.mxu0 %v7133_v54  ;;  %v7220_v54 = vld [vmem:[#allocation4 + $0x6a8] ss:$16 sps:$4 sm:$0xff]  }
 0x1db   :  { %2238 = vmatpush1.bf16.msra.mxu1 %v7136_v56  ;;  %2196 = vmatprep.subr.bf16.mxu0 %v7141_v44  ;;  %v7225_v56 = vld [vmem:[#allocation4 + $0x48c] ss:$16 sps:$4 sm:$0xff]  }
 0x1dc   :  { %2239 = vmatprep.subr.bf16.mxu1 %v7144_v46  ;;  %v7228_v44 = vld [vmem:[#allocation4 + $0x68c] ss:$16 sps:$4 sm:$0xff]  }
 0x1dd   :  { %v7231_v46 = vld [vmem:[#allocation4 + $0x46c] ss:$16 sps:$4 sm:$0xff]  }
 0x1de   :  { %2197 = vmatpush1.bf16.msra.mxu0 %v7139_v47  ;;  %v7234_v47 = vld [vmem:[#allocation4 + $0x66c] ss:$16 sps:$4 sm:$0xff]  }
 0x1df   :  { %2240 = vmatpush1.bf16.msra.mxu1 %v7142_v48  ;;  %2198 = vmatprep.subr.bf16.mxu0 %v7147_v49  ;;  %v7229_v48 = vld [vmem:[#allocation4 + $0x468] ss:$16 sps:$4 sm:$0xff]  }
 0x1e0   :  { %2241 = vmatprep.subr.bf16.mxu1 %v7150_v50  ;;  %v7232_v49 = vld [vmem:[#allocation4 + $0x668] ss:$16 sps:$4 sm:$0xff]   ;;  %v7237_v50 = vld [vmem:[#allocation4 + $0x44c] ss:$16 sps:$4 sm:$0xff]  }
 0x1e2   :  { %2199 = vmatpush1.bf16.msra.mxu0 %v7145_v51  ;;  %v7238_v51 = vld [vmem:[#allocation4 + $0x648] ss:$16 sps:$4 sm:$0xff]  }
 0x1e3   :  { %2242 = vmatpush1.bf16.msra.mxu1 %v7148_v52  ;;  %2200 = vmatprep.subr.bf16.mxu0 %v7153_v53  ;;  %v7243_v52 = vld [vmem:[#allocation4 + $0x42c] ss:$16 sps:$4 sm:$0xff]  }
 0x1e4   :  { %2243 = vmatprep.subr.bf16.mxu1 %v7156_v55  ;;  %v7246_v53 = vld [vmem:[#allocation4 + $0x62c] ss:$16 sps:$4 sm:$0xff]   ;;  %v7241_v55 = vld [vmem:[#allocation4 + $0x428] ss:$16 sps:$4 sm:$0xff]  }
 0x1e6   :  { %2201 = vmatpush1.bf16.msra.mxu0 %v7151_v57  ;;  %v7244_v57 = vld [vmem:[#allocation4 + $0x628] ss:$16 sps:$4 sm:$0xff]  }
 0x1e7   :  { %2244 = vmatpush1.bf16.msra.mxu1 %v7154_v58  ;;  %2202 = vmatprep.subr.bf16.mxu0 %v7159_v59  ;;  %v7249_v58 = vld [vmem:[#allocation4 + $0x40c] ss:$16 sps:$4 sm:$0xff]  }
 0x1e8   :  { %2245 = vmatprep.subr.bf16.mxu1 %v7162_v60  ;;  %v7252_v59 = vld [vmem:[#allocation4 + $0x60c] ss:$16 sps:$4 sm:$0xff]   ;;  %v7247_v60 = vld [vmem:[#allocation4 + $0x408] ss:$16 sps:$4 sm:$0xff]  }
 0x1ea   :  { %2203 = vmatpush2.bf16.msra.mxu0 %v7157_v61  ;;  %v7250_v61 = vld [vmem:[#allocation4 + $0x608] ss:$16 sps:$4 sm:$0xff]  }
 0x1eb   :  { %2246 = vmatpush2.bf16.msra.mxu1 %v7160_v62  ;;  %2204 = vmatprep.subr.bf16.mxu0 %v7165_v63  ;;  %v7255_v62 = vld [vmem:[#allocation4 + $0x5ec] ss:$16 sps:$4 sm:$0xff]  }
 0x1ec   :  { %2247 = vmatprep.subr.bf16.mxu1 %v7168_v0  ;;  %v7258_v63 = vld [vmem:[#allocation4 + $0x7ec] ss:$16 sps:$4 sm:$0xff]   ;;  %v7253_v0 = vld [vmem:[#allocation4 + $0x5e8] ss:$16 sps:$4 sm:$0xff]  }
 0x1ee   :  { %2205 = vmatpush2.bf16.msra.mxu0 %v7163_v1  ;;  %v7256_v1 = vld [vmem:[#allocation4 + $0x7e8] ss:$16 sps:$4 sm:$0xff]  }
 0x1ef   :  { %2248 = vmatpush2.bf16.msra.mxu1 %v7166_v3  ;;  %2206 = vmatprep.subr.bf16.mxu0 %v7171_v4  ;;  %v7261_v3 = vld [vmem:[#allocation4 + $0x5cc] ss:$16 sps:$4 sm:$0xff]  }
 0x1f0   :  { %2249 = vmatprep.subr.bf16.mxu1 %v7174_v5  ;;  %v7264_v4 = vld [vmem:[#allocation4 + $0x7cc] ss:$16 sps:$4 sm:$0xff]   ;;  %v7259_v5 = vld [vmem:[#allocation4 + $0x5c8] ss:$16 sps:$4 sm:$0xff]  }
 0x1f2   :  { %2207 = vmatpush2.bf16.msra.mxu0 %v7169_v6  ;;  %v7262_v6 = vld [vmem:[#allocation4 + $0x7c8] ss:$16 sps:$4 sm:$0xff]  }
 0x1f3   :  { %2250 = vmatpush2.bf16.msra.mxu1 %v7172_v7  ;;  %2208 = vmatprep.subr.bf16.mxu0 %v7177_v8  ;;  %v7267_v7 = vld [vmem:[#allocation4 + $0x5ac] ss:$16 sps:$4 sm:$0xff]  }
 0x1f4   :  { %2251 = vmatprep.subr.bf16.mxu1 %v7180_v9  ;;  %v7270_v8 = vld [vmem:[#allocation4 + $0x7ac] ss:$16 sps:$4 sm:$0xff]   ;;  %v7265_v9 = vld [vmem:[#allocation4 + $0x5a8] ss:$16 sps:$4 sm:$0xff]  }
 0x1f6   :  { %2209 = vmatpush2.bf16.msra.mxu0 %v7175_v12  ;;  %v7268_v12 = vld [vmem:[#allocation4 + $0x7a8] ss:$16 sps:$4 sm:$0xff]  }
 0x1f7   :  { %2252 = vmatpush2.bf16.msra.mxu1 %v7178_v13  ;;  %2210 = vmatprep.subr.bf16.mxu0 %v7183_v14  ;;  %v7273_v13 = vld [vmem:[#allocation4 + $0x58c] ss:$16 sps:$4 sm:$0xff]  }
 0x1f8   :  { %2253 = vmatprep.subr.bf16.mxu1 %v7186_v15  ;;  %v7276_v14 = vld [vmem:[#allocation4 + $0x78c] ss:$16 sps:$4 sm:$0xff]   ;;  %v7271_v15 = vld [vmem:[#allocation4 + $0x588] ss:$16 sps:$4 sm:$0xff]  }
 0x1fa   :  { %2211 = vmatpush2.bf16.msra.mxu0 %v7181_v16  ;;  %v7274_v16 = vld [vmem:[#allocation4 + $0x788] ss:$16 sps:$4 sm:$0xff]  }
 0x1fb   :  { %2254 = vmatpush2.bf16.msra.mxu1 %v7184_v17  ;;  %2212 = vmatprep.subr.bf16.mxu0 %v7189_v18  ;;  %v7279_v17 = vld [vmem:[#allocation4 + $0x56c] ss:$16 sps:$4 sm:$0xff]  }
 0x1fc   :  { %2255 = vmatprep.subr.bf16.mxu1 %v7192_v19  ;;  %v7282_v18 = vld [vmem:[#allocation4 + $0x76c] ss:$16 sps:$4 sm:$0xff]   ;;  %v7277_v19 = vld [vmem:[#allocation4 + $0x568] ss:$16 sps:$4 sm:$0xff]  }
 0x1fe   :  { %2213 = vmatpush2.bf16.msra.mxu0 %v7187_v20  ;;  %v7280_v20 = vld [vmem:[#allocation4 + $0x768] ss:$16 sps:$4 sm:$0xff]  }
 0x1ff   :  { %2256 = vmatpush2.bf16.msra.mxu1 %v7190_v21  ;;  %2214 = vmatprep.subr.bf16.mxu0 %v7195_v22  ;;  %v7285_v21 = vld [vmem:[#allocation4 + $0x54c] ss:$16 sps:$4 sm:$0xff]  }
 0x200   :  { %2257 = vmatprep.subr.bf16.mxu1 %v7198_v23  ;;  %v7288_v22 = vld [vmem:[#allocation4 + $0x74c] ss:$16 sps:$4 sm:$0xff]   ;;  %v7283_v23 = vld [vmem:[#allocation4 + $0x548] ss:$16 sps:$4 sm:$0xff]  }
 0x202   :  { %2215 = vmatpush2.bf16.msra.mxu0 %v7193_v24  ;;  %v7286_v24 = vld [vmem:[#allocation4 + $0x748] ss:$16 sps:$4 sm:$0xff]  }
 0x203   :  { %2258 = vmatpush2.bf16.msra.mxu1 %v7196_v27  ;;  %2216 = vmatprep.subr.bf16.mxu0 %v7201_v28  ;;  %v7291_v27 = vld [vmem:[#allocation4 + $0x52c] ss:$16 sps:$4 sm:$0xff]  }
 0x204   :  { %2259 = vmatprep.subr.bf16.mxu1 %v7204_v29  ;;  %v7294_v28 = vld [vmem:[#allocation4 + $0x72c] ss:$16 sps:$4 sm:$0xff]   ;;  %v7289_v29 = vld [vmem:[#allocation4 + $0x528] ss:$16 sps:$4 sm:$0xff]  }
 0x206   :  { %2217 = vmatpush2.bf16.msra.mxu0 %v7199_v30  ;;  %v7292_v30 = vld [vmem:[#allocation4 + $0x728] ss:$16 sps:$4 sm:$0xff]  }
 0x207   :  { %2260 = vmatpush2.bf16.msra.mxu1 %v7202_v31  ;;  %2272 = vmatprep.subr.bf16.mxu0 %v7207_v32  ;;  %v7297_v31 = vld [vmem:[#allocation4 + $0x50c] ss:$16 sps:$4 sm:$0xff]  }
 0x208   :  { %2315 = vmatprep.subr.bf16.mxu1 %v7210_v33  ;;  %v7300_v32 = vld [vmem:[#allocation4 + $0x70c] ss:$16 sps:$4 sm:$0xff]   ;;  %v2485_v33 = vpop.permute.xlu0 %2484 }
 0x209   :  { %2219 = vmatmul.mubr.bf16.vlgmr.msra.gmra.mxu0 %v8635_v10  ;;  %v7223_v10 = vld [vmem:[#allocation4 + $0x488] ss:$16 sps:$4 sm:$0xff]  }
 0x20a   :  { %2262 = vmatmul.mubr.bf16.vlgmr.msra.gmra.mxu1 %v8637_v11  ;;  %2273 = vmatpush1.bf16.msra.mxu0 %v7205_v34  ;;  %v7226_v11 = vld [vmem:[#allocation4 + $0x688] ss:$16 sps:$4 sm:$0xff]  }
 0x20b   :  { %2316 = vmatpush1.bf16.msra.mxu1 %v7208_v35  ;;  %2274 = vmatprep.subr.bf16.mxu0 %v7213_v36  ;;  %v7295_v34 = vld [vmem:[#allocation4 + $0x508] ss:$16 sps:$4 sm:$0xff]   ;;  %v7303_v36 = vld [vmem:[#allocation2 + $0x4] ss:$16 sps:$4 sm:$0xff]  }
 0x20c   :  { %2317 = vmatprep.subr.bf16.mxu1 %v7216_v37  ;;  %2304 = vmatprep.mubr.bf16.mxu0 %v8655_v43  ;;  %v7240_v43 = vld [vmem:[#allocation4 + $0x64c] ss:$16 sps:$4 sm:$0xff]   ;;  %v7298_v35 = vld [vmem:[#allocation4 + $0x708] ss:$16 sps:$4 sm:$0xff]  }
 0x20d   :  { %2347 = vmatprep.mubr.bf16.mxu1 %v8659_v45  ;;  %v7235_v45 = vld [vmem:[#allocation4 + $0x448] ss:$16 sps:$4 sm:$0xff]   ;;  %v7306_v37 = vld [vmem:[#allocation2 + $0xc] ss:$16 sps:$4 sm:$0xff]  }
 0x20e   :  { %2275 = vmatpush1.bf16.msra.mxu0 %v7211_v38  ;;  %v674_v38 = vlaneseq }
 0x20f   :  { %2318 = vmatpush1.bf16.msra.mxu1 %v7214_v39  ;;  %2276 = vmatprep.subr.bf16.mxu0 %v7219_v40  ;;  %v7301_v39 = vld [vmem:[#allocation2] ss:$16 sps:$4 sm:$0xff]   ;;  %v7304_v40 = vld [vmem:[#allocation2 + $0x8] ss:$16 sps:$4 sm:$0xff]  }
 0x210   :  { %2319 = vmatprep.subr.bf16.mxu1 %v7222_v41  ;;  %v2482_v41 = vand.u32 127, %v674_v38 }
 0x212   :  { %2277 = vmatpush1.bf16.msra.mxu0 %v7217_v42  ;;  %v2488_v42 = vpop.permute.xlu0 %2487  ;;  %vm2489_vm0 = vcmp.eq.s32.totalorder %v2482_v41, %v2485_v33 }
 0x213   :  { %2320 = vmatpush1.bf16.msra.mxu1 %v7220_v54  ;;  %2278 = vmatprep.subr.bf16.mxu0 %v7225_v56  ;;  %vm2490_vm1 = vcmp.eq.s32.totalorder %v2482_v41, %v2488_v42  ;;  %v2612_v54 = vld [vmem:[#allocation10] sm:$0xf]  ;;  %v8424_v56 = vmov 0.0  }
 0x214   :  { %2321 = vmatprep.subr.bf16.mxu1 %v7228_v44  ;;  %v6328_v44 = vsel %vm2489_vm0, 1.0, %v8424_v56 }
 0x216   :  { %2279 = vmatpush1.bf16.msra.mxu0 %v7223_v10  ;;  %v6329_v10 = vsel %vm2490_vm1, 1.0, %v8424_v56 }
 0x217   :  { %2322 = vmatpush1.bf16.msra.mxu1 %v7226_v11  ;;  %2280 = vmatprep.subr.bf16.mxu0 %v7231_v46  ;;  %v7307_v11 = vld [vmem:[%s8972_s14] sm:$0xff]  }
 0x218   :  { %2323 = vmatprep.subr.bf16.mxu1 %v7234_v47  ;;  %v7308_v46 = vld [vmem:[#allocation13 + $0x8] sm:$0xff]   ;;  %v7309_v47 = vld [vmem:[#allocation13] sm:$0xff]  }
 0x21a   :  { %2281 = vmatpush1.bf16.msra.mxu0 %v7229_v48  ;;  %v7312_v48 = vld [vmem:[#allocation24 + $0xe4] ss:$16 sps:$4 sm:$0xff]  }
 0x21b   :  { %2324 = vmatpush1.bf16.msra.mxu1 %v7232_v49  ;;  %2282 = vmatprep.subr.bf16.mxu0 %v7237_v50 }
 0x21c   :  { %2325 = vmatprep.subr.bf16.mxu1 %v7240_v43 }
 0x21e   :  { %2283 = vmatpush1.bf16.msra.mxu0 %v7235_v45 }
 0x21f   :  { %2326 = vmatpush1.bf16.msra.mxu1 %v7238_v51  ;;  %2284 = vmatprep.subr.bf16.mxu0 %v7243_v52 }
 0x220   :  { %2327 = vmatprep.subr.bf16.mxu1 %v7246_v53 }
 0x222   :  { %2285 = vmatpush1.bf16.msra.mxu0 %v7241_v55 }
 0x223   :  { %2328 = vmatpush1.bf16.msra.mxu1 %v7244_v57  ;;  %2286 = vmatprep.subr.bf16.mxu0 %v7249_v58 }
 0x224   :  { %2329 = vmatprep.subr.bf16.mxu1 %v7252_v59  ;;  %v675_v59 = vshrl.u32 %v674_v38, 7 }
 0x226   :  { %2287 = vmatpush1.bf16.msra.mxu0 %v7247_v60 }
 0x227   :  { %2330 = vmatpush1.bf16.msra.mxu1 %v7250_v61  ;;  %2288 = vmatprep.subr.bf16.mxu0 %v7255_v62  ;;  %v8699_v62 = vsub.s32 1, %v675_v59 }
 0x228   :  { %2331 = vmatprep.subr.bf16.mxu1 %v7258_v63 }
 0x22a   :  { %2289 = vmatpush2.bf16.msra.mxu0 %v7253_v0 }
 0x22b   :  { %2332 = vmatpush2.bf16.msra.mxu1 %v7256_v1  ;;  %2290 = vmatprep.subr.bf16.mxu0 %v7261_v3  ;;  %v672_v1 = vld [vmem:[#allocation6] sm:$0xf]  ;;  %v8701_v3 = vsub.s32 0, %v675_v59 }
 0x22c   :  { %2333 = vmatprep.subr.bf16.mxu1 %v7264_v4  ;;  %v681_v4 = vrot.slane %v672_v1, %v8699_v62 }
 0x22e   :  { %2291 = vmatpush2.bf16.msra.mxu0 %v7259_v5 }
 0x22f   :  { %2334 = vmatpush2.bf16.msra.mxu1 %v7262_v6  ;;  %2292 = vmatprep.subr.bf16.mxu0 %v7267_v7  ;;  %v677_v7 = vrot.slane %v672_v1, %v8701_v3 }
 0x230   :  { %2335 = vmatprep.subr.bf16.mxu1 %v7270_v8 }
 0x232   :  { %2293 = vmatpush2.bf16.msra.mxu0 %v7265_v9 }
 0x233   :  { %2336 = vmatpush2.bf16.msra.mxu1 %v7268_v12  ;;  %2294 = vmatprep.subr.bf16.mxu0 %v7273_v13  ;;  %v8705_v12 = vsub.s32 2, %v675_v59 }
 0x234   :  { %2337 = vmatprep.subr.bf16.mxu1 %v7276_v14  ;;  %v8707_v14 = vsub.s32 3, %v675_v59 }
 0x236   :  { %2295 = vmatpush2.bf16.msra.mxu0 %v7271_v15 }
 0x237   :  { %2338 = vmatpush2.bf16.msra.mxu1 %v7274_v16  ;;  %2296 = vmatprep.subr.bf16.mxu0 %v7279_v17 }
 0x238   :  { %2339 = vmatprep.subr.bf16.mxu1 %v7282_v18  ;;  %v685_v18 = vrot.slane %v672_v1, %v8705_v12 }
 0x23a   :  { %2297 = vmatpush2.bf16.msra.mxu0 %v7277_v19 }
 0x23b   :  { %2340 = vmatpush2.bf16.msra.mxu1 %v7280_v20  ;;  %2298 = vmatprep.subr.bf16.mxu0 %v7285_v21  ;;  %v689_v21 = vrot.slane %v672_v1, %v8707_v14 }
 0x23c   :  { %2341 = vmatprep.subr.bf16.mxu1 %v7288_v22 }
 0x23e   :  { %2299 = vmatpush2.bf16.msra.mxu0 %v7283_v23 }
 0x23f   :  { %2342 = vmatpush2.bf16.msra.mxu1 %v7286_v24  ;;  %2300 = vmatprep.subr.bf16.mxu0 %v7291_v27 }
 0x240   :  { %2343 = vmatprep.subr.bf16.mxu1 %v7294_v28 }
 0x242   :  { %2301 = vmatpush2.bf16.msra.mxu0 %v7289_v29 }
 0x243   :  { %2344 = vmatpush2.bf16.msra.mxu1 %v7292_v30  ;;  %2302 = vmatprep.subr.bf16.mxu0 %v7297_v31 }
 0x244   :  { %2345 = vmatprep.subr.bf16.mxu1 %v7300_v32 }
 0x246   :  { %2303 = vmatpush2.bf16.msra.mxu0 %v7295_v34 }
 0x247   :  { %2346 = vmatpush2.bf16.msra.mxu1 %v7298_v35  ;;  %2538 = vmatprep.subr.bf16.mxu0 %v7303_v36 }
 0x248   :  { %2581 = vmatprep.subr.bf16.mxu1 %v7306_v37 }
 0x249   :  { %2305 = vmatmul.mubr.bf16.vlgmr.msra.gmra.mxu0 %v8667_v25  ;;  %v2495_v25 = vpack.c.bf16 %v6329_v10, %v6328_v44  ;;  %v2048_v49 = vpop.f32.mrf.mxu0 }
 0x24a   :  { %2348 = vmatmul.mubr.bf16.vlgmr.msra.gmra.mxu1 %v8671_v26  ;;  %2539 = vmatpush1.bf16.msra.mxu0 %v7301_v39  ;;  %v2631_v26 = vsel %vm2629_vm2, %v2612_v54, 0  ;;  %v2091_v50 = vpop.f32.mrf.mxu1  ;;  %v2049_v15 = vadd.f32 %v2048_v49, %v677_v7 }
 0x24b   :  { %2582 = vmatpush1.bf16.msra.mxu1 %v7304_v40  ;;  %2556 = vmatprep.mubr.bf16.mxu0 %v8423_v2  ;;  %v2050_v43 = vpop.f32.mrf.mxu0 }
 0x24c   :  { %2599 = vmatprep.mubr.bf16.mxu1 %v8423_v2  ;;  %6788 = vmatprep.subr.bf16.mxu0 %v8424_v56  ;;  %v2093_v45 = vpop.f32.mrf.mxu1  ;;  %v2051_v13 = vadd.f32 %v2050_v43, %v681_v4  ;;  %v2092_v22 = vadd.f32 %v2091_v50, %v2049_v15 }
 0x24d   :  { %6794 = vmatprep.subr.bf16.mxu1 %v8424_v56  ;;  %v2052_v51 = vpop.f32.mrf.mxu0 }
 0x24e   :  { %v2095_v52 = vpop.f32.mrf.mxu1  ;;  %v2094_v19 = vadd.f32 %v2093_v45, %v2051_v13  ;;  %v2053_v23 = vadd.f32 %v2052_v51, %v677_v7 }
 0x24f   :  { %v2054_v53 = vpop.f32.mrf.mxu0 }
 0x250   :  { %v2097_v55 = vpop.f32.mrf.mxu1  ;;  %v2055_v20 = vadd.f32 %v2054_v53, %v681_v4  ;;  %v2096_v33 = vadd.f32 %v2095_v52, %v2053_v23 }
 0x251   :  { %6334 = vmatmul.mubr.msk.bf16.vlgmr.msra.gmra.mxu0 %vm2520_vm3, %v2495_v25 }
 0x252   :  { %6335 = vmatmul.mubr.msk.bf16.vlgmr.msra.gmra.mxu1 %vm2520_vm3, %v2495_v25  ;;  %6789 = vmatpush3.bf16.msra.mxu0 %v2631_v26  ;;  %v2098_v31 = vadd.f32 %v2097_v55, %v2055_v20  ;;  %v6336_v20 = vld [vmem:[#allocation12] ss:$0 sm:$0xff] }
 0x253   :  { %6790 = vmatprep.mubr.msk.bf16.mxu0 %vm8425_vm4, %v8424_v56  ;;  %6798 = vmatprep.mubr.msk.bf16.mxu1 %vm8425_vm4, %v8424_v56 }
 0x254   :  { %6802 = vmatprep.subr.bf16.mxu0 %v8424_v56  ;;  %6795 = vmatpush3.bf16.msra.mxu1 %v7308_v46 }
 0x255   :  { %6796 = vmatprep.subr.bf16.mxu1 %v8424_v56 }
 0x258   :  { %6797 = vmatpush3.bf16.msra.mxu1 %v7309_v47 }
 0x259   :  { %6791 = vmatmul.mubr.msk.bf16.vlgmr.msra.gmra.mxu0 %vm2625_vm5, %v7307_v11  ;;  %3777 = vmatprep.subr.bf16.mxu1 %v7312_v48 }
 0x25a   :  { %6810 = vmatprep.mubr.msk.bf16.mxu0 %vm8425_vm4, %v8424_v56 }
 0x289   :  { %v2134_v57 = vpop.f32.mrf.mxu0 }
 0x28a   :  { %v2177_v58 = vpop.f32.mrf.mxu1  ;;  %v2135_v30 = vadd.f32 %v2134_v57, %v2092_v22 }
 0x28b   :  { %v2136_v60 = vpop.f32.mrf.mxu0 }
 0x28c   :  { %v2179_v61 = vpop.f32.mrf.mxu1  ;;  %v2137_v24 = vadd.f32 %v2136_v60, %v2094_v19  ;;  %v8713_v40 = vadd.f32 %v2177_v58, %v2135_v30 }
 0x28d   :  { %v2138_v63 = vpop.f32.mrf.mxu0 }
 0x28e   :  { %v2181_v0 = vpop.f32.mrf.mxu1  ;;  %v8711_v34 = vadd.f32 %v2179_v61, %v2137_v24  ;;  %v2139_v41 = vadd.f32 %v2138_v63, %v2096_v33  ;;  %v7313_v33 = vld [vmem:[#allocation24 + $0xc0] ss:$16 sps:$4 sm:$0xff]  }
 0x28f   :  { %v2140_v5 = vpop.f32.mrf.mxu0 }
 0x290   :  { %v2183_v6 = vpop.f32.mrf.mxu1  ;;  %v2141_v37 = vadd.f32 %v2140_v5, %v2098_v31  ;;  %v2360_v26 = vadd.f32 %v8711_v34, %v8713_v40  ;;  %v8721_v43 = vadd.f32 %v2181_v0, %v2139_v41  ;;  %v7315_v31 = vld [vmem:[#allocation24 + $0xc4] ss:$16 sps:$4 sm:$0xff]  }
 0x291   :  { %v7324_v41 = vld [vmem:[#allocation24 + $0x64] ss:$16 sps:$4 sm:$0xff]  }
 0x292   :  { %v8717_v47 = vadd.f32 %v2183_v6, %v2141_v37  ;;  %v7321_v37 = vld [vmem:[#allocation24 + $0x84] ss:$16 sps:$4 sm:$0xff]  }
 0x294   :  { %v2365_v60 = vadd.f32 %v8717_v47, %v8721_v43 }
 0x2c9   :  { %v2220_v8 = vpop.f32.mrf.mxu0 }
 0x2ca   :  { %v2263_v9 = vpop.f32.mrf.mxu1  ;;  %v2221_v29 = vadd.f32 %v2220_v8, %v685_v18 }
 0x2cb   :  { %v2222_v16 = vpop.f32.mrf.mxu0 }
 0x2cc   :  { %v2265_v17 = vpop.f32.mrf.mxu1  ;;  %v2223_v32 = vadd.f32 %v2222_v16, %v689_v21  ;;  %v2264_v38 = vadd.f32 %v2263_v9, %v2221_v29  ;;  %v7310_v29 = vld [vmem:[#allocation24 + $0xe0] ss:$16 sps:$4 sm:$0xff]  }
 0x2cd   :  { %v2224_v27 = vpop.f32.mrf.mxu0 }
 0x2ce   :  { %v2267_v28 = vpop.f32.mrf.mxu1  ;;  %v2225_v39 = vadd.f32 %v2224_v27, %v685_v18  ;;  %v2266_v44 = vadd.f32 %v2265_v17, %v2223_v32 }
 0x2cf   :  { %v2226_v35 = vpop.f32.mrf.mxu0 }
 0x2d0   :  { %v2269_v36 = vpop.f32.mrf.mxu1  ;;  %v2227_v10 = vadd.f32 %v2226_v35, %v689_v21  ;;  %v2268_v48 = vadd.f32 %v2267_v28, %v2225_v39  ;;  %v7318_v35 = vld [vmem:[#allocation24 + $0xa4] ss:$16 sps:$4 sm:$0xff]   ;;  %v7319_v39 = vld [vmem:[#allocation24 + $0x80] ss:$16 sps:$4 sm:$0xff]  }
 0x2d2   :  { %v2270_v52 = vadd.f32 %v2269_v36, %v2227_v10  ;;  %v7316_v36 = vld [vmem:[#allocation24 + $0xa0] ss:$16 sps:$4 sm:$0xff]  }
 0x2d3   :  { %v7325_v10 = vld [vmem:[#allocation24 + $0x40] ss:$16 sps:$4 sm:$0xff]  }
 0x309   :  { %v2306_v42 = vpop.f32.mrf.mxu0 }
 0x30a   :  { %v2349_v54 = vpop.f32.mrf.mxu1  ;;  %v2307_v25 = vadd.f32 %v2306_v42, %v2264_v38  ;;  %v7406_v38 = vld [vmem:[#allocation16 + $0x18] sm:$0xff]   ;;  %v7407_v42 = vld [vmem:[#allocation16 + $0x10] sm:$0xff]  }
 0x30b   :  { %v2308_v11 = vpop.f32.mrf.mxu0  ;;  %6803 = vmatpush3.bf16.msra.mxu0 %v7406_v38  ;;  %v7382_v38 = vld [vmem:[#allocation24 + $0x1e8] ss:$16 sps:$4 sm:$0xff]  }
 0x30c   :  { %v2351_v46 = vpop.f32.mrf.mxu1  ;;  %v8719_v49 = vadd.f32 %v2349_v54, %v2307_v25  ;;  %v2309_v50 = vadd.f32 %v2308_v11, %v2266_v44  ;;  %6804 = vmatprep.subr.bf16.mxu0 %v8424_v56  ;;  %v7322_v54 = vld [vmem:[#allocation24 + $0x60] ss:$16 sps:$4 sm:$0xff]   ;;  %v7327_v44 = vld [vmem:[#allocation24 + $0x44] ss:$16 sps:$4 sm:$0xff]  }
 0x30d   :  { %v2310_v45 = vpop.f32.mrf.mxu0  ;;  %v7330_v25 = vld [vmem:[#allocation24 + $0x24] ss:$16 sps:$4 sm:$0xff]  }
 0x30e   :  { %v2353_v51 = vpop.f32.mrf.mxu1  ;;  %v8723_v53 = vadd.f32 %v2351_v46, %v2309_v50  ;;  %v2311_v55 = vadd.f32 %v2310_v45, %v2268_v48  ;;  %v2361_v57 = vadd.f32 %v2360_v26, %v8719_v49  ;;  %v7328_v26 = vld [vmem:[#allocation24 + $0x20] ss:$16 sps:$4 sm:$0xff]   ;;  %v7333_v11 = vld [vmem:[#allocation24 + $0x4] ss:$16 sps:$4 sm:$0xff]  }
 0x30f   :  { %v2312_v58 = vpop.f32.mrf.mxu0  ;;  %6805 = vmatpush3.bf16.msra.mxu0 %v7407_v42  ;;  %v7331_v46 = vld [vmem:[#allocation24] ss:$16 sps:$4 sm:$0xff]   ;;  %v7336_v48 = vld [vmem:[#allocation24 + $0x1e4] ss:$16 sps:$4 sm:$0xff]   ;;  %v7390_v42 = vld [vmem:[#allocation24 + $0x1ac] ss:$16 sps:$4 sm:$0xff]  }
 0x310   :  { %v2355_v59 = vpop.f32.mrf.mxu1  ;;  %v8728_v61 = vadd.f32 %v2353_v51, %v2311_v55  ;;  %v2313_v63 = vadd.f32 %v2312_v58, %v2270_v52  ;;  %v2362_v1 = vadd.f32 %v2361_v57, %v8723_v53  ;;  %6806 = vmatprep.subr.bf16.mxu0 %v8424_v56  ;;  %v7334_v50 = vld [vmem:[#allocation24 + $0x1e0] ss:$16 sps:$4 sm:$0xff]   ;;  %v7339_v45 = vld [vmem:[#allocation24 + $0x1c4] ss:$16 sps:$4 sm:$0xff]  }
 0x311   :  { %v2558_v0 = vpop.f32.mrf.mxu0  ;;  %v7337_v51 = vld [vmem:[#allocation24 + $0x1c0] ss:$16 sps:$4 sm:$0xff]   ;;  %v7342_v52 = vld [vmem:[#allocation24 + $0x1a4] ss:$16 sps:$4 sm:$0xff]  }
 0x312   :  { %v2601_v4 = vpop.f32.mrf.mxu1  ;;  %v2366_v5 = vadd.f32 %v2365_v60, %v8728_v61  ;;  %v8732_v6 = vadd.f32 %v2355_v59, %v2313_v63  ;;  %2363 = vadd.xlane.f32.xlu1 %v2362_v1  ;;  %v7340_v55 = vld [vmem:[#allocation24 + $0x1a0] ss:$16 sps:$4 sm:$0xff]   ;;  %v7345_v57 = vld [vmem:[#allocation24 + $0x184] ss:$16 sps:$4 sm:$0xff]  }
 0x313   :  { %v2560_v7 = vpop.f32.mrf.mxu0  ;;  %v7343_v58 = vld [vmem:[#allocation24 + $0x180] ss:$16 sps:$4 sm:$0xff]   ;;  %v7348_v59 = vld [vmem:[#allocation24 + $0x164] ss:$16 sps:$4 sm:$0xff]  }
 0x314   :  { %v8734_v8 = vpop.f32.mrf.mxu1  ;;  %v2367_v9 = vadd.f32 %v2366_v5, %v8732_v6  ;;  %v7346_v60 = vld [vmem:[#allocation24 + $0x160] ss:$16 sps:$4 sm:$0xff]   ;;  %v7351_v63 = vld [vmem:[#allocation24 + $0x144] ss:$16 sps:$4 sm:$0xff]  }
 0x315   :  { %v2562_v13 = vpop.f32.mrf.mxu0  ;;  %v7349_v1 = vld [vmem:[#allocation24 + $0x140] ss:$16 sps:$4 sm:$0xff]   ;;  %v7357_v5 = vld [vmem:[#allocation24 + $0x104] ss:$16 sps:$4 sm:$0xff]  }
 0x316   :  { %v2605_v15 = vpop.f32.mrf.mxu1  ;;  %v8737_v16 = vpack.c.bf16 %v2562_v13, %v2558_v0  ;;  %2368 = vadd.xlane.f32.xlu1 %v2367_v9  ;;  %v7354_v0 = vld [vmem:[#allocation24 + $0x124] ss:$16 sps:$4 sm:$0xff]   ;;  %v7360_v9 = vld [vmem:[#allocation24 + $0xec] ss:$16 sps:$4 sm:$0xff]   ;;  %v7358_v13 = vld [vmem:[#allocation24 + $0xe8] ss:$16 sps:$4 sm:$0xff]  }
 0x317   :  { %v8739_v17 = vpack.c.bf16 %v2605_v15, %v2601_v4  ;;  %v2564_v18 = vpop.f32.mrf.mxu0  ;;  %v7352_v4 = vld [vmem:[#allocation24 + $0x120] ss:$16 sps:$4 sm:$0xff]   ;;  %v7363_v15 = vld [vmem:[#allocation24 + $0xcc] ss:$16 sps:$4 sm:$0xff]  }
 0x318   :  { %v8742_v32 = vpack.c.bf16 %v2564_v18, %v2560_v7  ;;  %v7355_v7 = vld [vmem:[#allocation24 + $0x100] ss:$16 sps:$4 sm:$0xff]   ;;  %v7361_v18 = vld [vmem:[#allocation24 + $0xc8] ss:$16 sps:$4 sm:$0xff]  }
 0x319   :  { %v2667_v19 = vpop.f32.mrf.mxu0 }
 0x31a   :  { %v2668_v23 = vadd.f32 %v6336_v20, %v2667_v19  ;;  %v7366_v19 = vld [vmem:[#allocation24 + $0xac] ss:$16 sps:$4 sm:$0xff]  }
 0x31b   :  { %v6792_v21 = vpop.f32.mrf.mxu0 }
 0x31c   :  { %v7364_v21 = vld [vmem:[#allocation24 + $0xa8] ss:$16 sps:$4 sm:$0xff]  }
 0x31d   :  { %v2670_v22 = vpop.f32.mrf.mxu0 }
 0x31e   :  { %v2671_v24 = vadd.f32 %v6336_v20, %v2670_v22  ;;  %v7408_v20 = vld [vmem:[#allocation16 + $0x8] sm:$0xff]   ;;  %v7369_v22 = vld [vmem:[#allocation24 + $0x8c] ss:$16 sps:$4 sm:$0xff]  }
 0x31f   :  { %v6793_v27 = vpop.f32.mrf.mxu0  ;;  %6807 = vmatpush3.bf16.msra.mxu0 %v7408_v20 }
 0x320   :  { %v2674_v28 = vpack.c.bf16 %v2671_v24, %v2668_v23  ;;  %6808 = vmatprep.subr.bf16.mxu0 %v8424_v56  ;;  %v7409_v23 = vld [vmem:[#allocation16] sm:$0xff]   ;;  %v7412_v27 = vld [vmem:[#allocation24 + $0x2e4] ss:$16 sps:$4 sm:$0xff]  }
 0x321   :  { %v7367_v24 = vld [vmem:[#allocation24 + $0x88] ss:$16 sps:$4 sm:$0xff]  }
 0x322   :  { %v2675_v30 = vmax.bf16 %v8423_v2, %v2674_v28  ;;  %v7372_v28 = vld [vmem:[#allocation24 + $0x6c] ss:$16 sps:$4 sm:$0xff]  }
 0x323   :  { %6809 = vmatpush3.bf16.msra.mxu0 %v7409_v23  ;;  %v7454_v23 = vld [vmem:[#allocation22 + $0xa4] ss:$16 sps:$4 sm:$0xff]  }
 0x324   :  { %6799 = vmatmul.mubr.msk.bf16.vlgmr.msra.gmra.mxu1 %vm2699_vm6, %v2675_v30  ;;  %3820 = vmatprep.subr.bf16.mxu0 %v7412_v27  ;;  %v7375_v30 = vld [vmem:[#allocation24 + $0x4c] ss:$16 sps:$4 sm:$0xff]  }
 0x325   :  { %3778 = vmatpush1.bf16.msra.mxu1 %v7310_v29  ;;  %3809 = vmatprep.mubr.bf16.mxu1 %v8742_v32  ;;  %v7370_v29 = vld [vmem:[#allocation24 + $0x68] ss:$16 sps:$4 sm:$0xff]  }
 0x326   :  { %3779 = vmatprep.subr.bf16.mxu1 %v7315_v31  ;;  %v7373_v31 = vld [vmem:[#allocation24 + $0x48] ss:$16 sps:$4 sm:$0xff]  }
 0x329   :  { %3780 = vmatpush1.bf16.msra.mxu1 %v7313_v33  ;;  %v7376_v33 = vld [vmem:[#allocation24 + $0x28] ss:$16 sps:$4 sm:$0xff]  }
 0x32a   :  { %3781 = vmatprep.subr.bf16.mxu1 %v7318_v35  ;;  %v7381_v35 = vld [vmem:[#allocation24 + $0xc] ss:$16 sps:$4 sm:$0xff]  }
 0x32d   :  { %3782 = vmatpush1.bf16.msra.mxu1 %v7316_v36  ;;  %v7379_v36 = vld [vmem:[#allocation24 + $0x8] ss:$16 sps:$4 sm:$0xff]  }
 0x32e   :  { %3783 = vmatprep.subr.bf16.mxu1 %v7321_v37  ;;  %v7384_v37 = vld [vmem:[#allocation24 + $0x1ec] ss:$16 sps:$4 sm:$0xff]  }
 0x331   :  { %3784 = vmatpush1.bf16.msra.mxu1 %v7319_v39  ;;  %v7387_v39 = vld [vmem:[#allocation24 + $0x1cc] ss:$16 sps:$4 sm:$0xff]  }
 0x332   :  { %3785 = vmatprep.subr.bf16.mxu1 %v7324_v41  ;;  %v7385_v41 = vld [vmem:[#allocation24 + $0x1c8] ss:$16 sps:$4 sm:$0xff]  }
 0x335   :  { %3786 = vmatpush1.bf16.msra.mxu1 %v7322_v54  ;;  %v7388_v54 = vld [vmem:[#allocation24 + $0x1a8] ss:$16 sps:$4 sm:$0xff]  }
 0x336   :  { %3787 = vmatprep.subr.bf16.mxu1 %v7327_v44  ;;  %v7393_v44 = vld [vmem:[#allocation24 + $0x18c] ss:$16 sps:$4 sm:$0xff]  }
 0x339   :  { %3788 = vmatpush1.bf16.msra.mxu1 %v7325_v10  ;;  %v7391_v10 = vld [vmem:[#allocation24 + $0x188] ss:$16 sps:$4 sm:$0xff]  }
 0x33a   :  { %3789 = vmatprep.subr.bf16.mxu1 %v7330_v25  ;;  %v7396_v25 = vld [vmem:[#allocation24 + $0x16c] ss:$16 sps:$4 sm:$0xff]  }
 0x33d   :  { %3790 = vmatpush1.bf16.msra.mxu1 %v7328_v26  ;;  %v7394_v26 = vld [vmem:[#allocation24 + $0x168] ss:$16 sps:$4 sm:$0xff]  }
 0x33e   :  { %3791 = vmatprep.subr.bf16.mxu1 %v7333_v11  ;;  %v7399_v11 = vld [vmem:[#allocation24 + $0x14c] ss:$16 sps:$4 sm:$0xff]  }
 0x341   :  { %3792 = vmatpush1.bf16.msra.mxu1 %v7331_v46  ;;  %v7397_v46 = vld [vmem:[#allocation24 + $0x148] ss:$16 sps:$4 sm:$0xff]  }
 0x342   :  { %3793 = vmatprep.subr.bf16.mxu1 %v7336_v48  ;;  %v7402_v48 = vld [vmem:[#allocation24 + $0x12c] ss:$16 sps:$4 sm:$0xff]  }
 0x345   :  { %3794 = vmatpush2.bf16.msra.mxu1 %v7334_v50  ;;  %v7400_v50 = vld [vmem:[#allocation24 + $0x128] ss:$16 sps:$4 sm:$0xff]  }
 0x346   :  { %3795 = vmatprep.subr.bf16.mxu1 %v7339_v45  ;;  %v7405_v45 = vld [vmem:[#allocation24 + $0x10c] ss:$16 sps:$4 sm:$0xff]  }
 0x349   :  { %3796 = vmatpush2.bf16.msra.mxu1 %v7337_v51 }
 0x34a   :  { %3797 = vmatprep.subr.bf16.mxu1 %v7342_v52 }
 0x34d   :  { %3798 = vmatpush2.bf16.msra.mxu1 %v7340_v55  ;;  %v7403_v55 = vld [vmem:[#allocation24 + $0x108] ss:$16 sps:$4 sm:$0xff]  }
 0x34e   :  { %3799 = vmatprep.subr.bf16.mxu1 %v7345_v57 }
 0x351   :  { %3800 = vmatpush2.bf16.msra.mxu1 %v7343_v58 }
 0x352   :  { %3801 = vmatprep.subr.bf16.mxu1 %v7348_v59 }
 0x355   :  { %3802 = vmatpush2.bf16.msra.mxu1 %v7346_v60  ;;  %v7442_v60 = vld [vmem:[#allocation22 + $0xe4] ss:$16 sps:$4 sm:$0xff]  }
 0x356   :  { %3803 = vmatprep.subr.bf16.mxu1 %v7351_v63 }
 0x359   :  { %3804 = vmatpush2.bf16.msra.mxu1 %v7349_v1 }
 0x35a   :  { %3805 = vmatprep.subr.bf16.mxu1 %v7354_v0 }
 0x35d   :  { %3806 = vmatpush2.bf16.msra.mxu1 %v7352_v4 }
 0x35e   :  { %3807 = vmatprep.subr.bf16.mxu1 %v7357_v5  ;;  %v7440_v5 = vld [vmem:[#allocation22 + $0xe0] ss:$16 sps:$4 sm:$0xff]  }
 0x361   :  { %3808 = vmatpush2.bf16.msra.mxu1 %v7355_v7 }
 0x362   :  { %3863 = vmatprep.subr.bf16.mxu1 %v7360_v9 }
 0x364   :  { %3810 = vmatmul.mubr.bf16.vlgmr.msra.gmra.mxu1 %v8737_v16 }
 0x365   :  { %3864 = vmatpush1.bf16.msra.mxu1 %v7358_v13  ;;  %3895 = vmatprep.mubr.bf16.mxu1 %v8742_v32  ;;  %v7378_v32 = vld [vmem:[#allocation24 + $0x2c] ss:$16 sps:$4 sm:$0xff]   ;;  %v7448_v13 = vld [vmem:[#allocation22 + $0xc4] ss:$16 sps:$4 sm:$0xff]  }
 0x366   :  { %3865 = vmatprep.subr.bf16.mxu1 %v7363_v15 }
 0x369   :  { %3866 = vmatpush1.bf16.msra.mxu1 %v7361_v18 }
 0x36a   :  { %3867 = vmatprep.subr.bf16.mxu1 %v7366_v19 }
 0x36d   :  { %3868 = vmatpush1.bf16.msra.mxu1 %v7364_v21 }
 0x36e   :  { %3869 = vmatprep.subr.bf16.mxu1 %v7369_v22 }
 0x371   :  { %3870 = vmatpush1.bf16.msra.mxu1 %v7367_v24  ;;  %v7452_v24 = vld [vmem:[#allocation22 + $0xa0] ss:$16 sps:$4 sm:$0xff]  }
 0x372   :  { %3871 = vmatprep.subr.bf16.mxu1 %v7372_v28  ;;  %v7460_v28 = vld [vmem:[#allocation22 + $0x84] ss:$16 sps:$4 sm:$0xff]  }
 0x375   :  { %3872 = vmatpush1.bf16.msra.mxu1 %v7370_v29  ;;  %v7458_v29 = vld [vmem:[#allocation22 + $0x80] ss:$16 sps:$4 sm:$0xff]  }
 0x376   :  { %3873 = vmatprep.subr.bf16.mxu1 %v7375_v30  ;;  %v7466_v30 = vld [vmem:[#allocation22 + $0x64] ss:$16 sps:$4 sm:$0xff]  }
 0x379   :  { %3874 = vmatpush1.bf16.msra.mxu1 %v7373_v31  ;;  %v7464_v31 = vld [vmem:[#allocation22 + $0x60] ss:$16 sps:$4 sm:$0xff]  }
 0x37a   :  { %3875 = vmatprep.subr.bf16.mxu1 %v7378_v32  ;;  %v7472_v32 = vld [vmem:[#allocation22 + $0x44] ss:$16 sps:$4 sm:$0xff]  }
 0x37d   :  { %3876 = vmatpush1.bf16.msra.mxu1 %v7376_v33  ;;  %v7470_v33 = vld [vmem:[#allocation22 + $0x40] ss:$16 sps:$4 sm:$0xff]  }
 0x37e   :  { %3877 = vmatprep.subr.bf16.mxu1 %v7381_v35  ;;  %v7478_v35 = vld [vmem:[#allocation22 + $0x24] ss:$16 sps:$4 sm:$0xff]  }
 0x381   :  { %3878 = vmatpush1.bf16.msra.mxu1 %v7379_v36  ;;  %v7476_v36 = vld [vmem:[#allocation22 + $0x20] ss:$16 sps:$4 sm:$0xff]  }
 0x382   :  { %3879 = vmatprep.subr.bf16.mxu1 %v7384_v37  ;;  %v7484_v37 = vld [vmem:[#allocation22 + $0x4] ss:$16 sps:$4 sm:$0xff]  }
 0x385   :  { %3880 = vmatpush2.bf16.msra.mxu1 %v7382_v38  ;;  %v7482_v38 = vld [vmem:[#allocation22] ss:$16 sps:$4 sm:$0xff]  }
 0x386   :  { %3881 = vmatprep.subr.bf16.mxu1 %v7387_v39  ;;  %v7490_v39 = vld [vmem:[#allocation22 + $0x1e4] ss:$16 sps:$4 sm:$0xff]  }
 0x389   :  { %3882 = vmatpush2.bf16.msra.mxu1 %v7385_v41  ;;  %v7488_v41 = vld [vmem:[#allocation22 + $0x1e0] ss:$16 sps:$4 sm:$0xff]  }
 0x38a   :  { %3883 = vmatprep.subr.bf16.mxu1 %v7390_v42  ;;  %v7496_v42 = vld [vmem:[#allocation22 + $0x1c4] ss:$16 sps:$4 sm:$0xff]  }
 0x38d   :  { %3884 = vmatpush2.bf16.msra.mxu1 %v7388_v54  ;;  %v7494_v54 = vld [vmem:[#allocation22 + $0x1c0] ss:$16 sps:$4 sm:$0xff]  }
 0x38e   :  { %3885 = vmatprep.subr.bf16.mxu1 %v7393_v44  ;;  %v7502_v44 = vld [vmem:[#allocation22 + $0x1a4] ss:$16 sps:$4 sm:$0xff]  }
 0x391   :  { %3886 = vmatpush2.bf16.msra.mxu1 %v7391_v10  ;;  %v7500_v10 = vld [vmem:[#allocation22 + $0x1a0] ss:$16 sps:$4 sm:$0xff]  }
 0x392   :  { %3887 = vmatprep.subr.bf16.mxu1 %v7396_v25  ;;  %v7508_v25 = vld [vmem:[#allocation22 + $0x184] ss:$16 sps:$4 sm:$0xff]  }
 0x395   :  { %3888 = vmatpush2.bf16.msra.mxu1 %v7394_v26  ;;  %v7506_v26 = vld [vmem:[#allocation22 + $0x180] ss:$16 sps:$4 sm:$0xff]  }
 0x396   :  { %3889 = vmatprep.subr.bf16.mxu1 %v7399_v11  ;;  %v7514_v11 = vld [vmem:[#allocation22 + $0x164] ss:$16 sps:$4 sm:$0xff]  }
 0x399   :  { %3890 = vmatpush2.bf16.msra.mxu1 %v7397_v46  ;;  %v7512_v46 = vld [vmem:[#allocation22 + $0x160] ss:$16 sps:$4 sm:$0xff]  }
 0x39a   :  { %3891 = vmatprep.subr.bf16.mxu1 %v7402_v48  ;;  %v7520_v48 = vld [vmem:[#allocation22 + $0x144] ss:$16 sps:$4 sm:$0xff]  }
 0x39b   :  { %v2364_v51 = vpop.xlane.xlu1 %2363 }
 0x39c   :  { %v2371_v52 = vmul.f32 0.001953125, %v2364_v51  ;;  %v7524_v51 = vld [vmem:[#allocation22 + $0x120] ss:$16 sps:$4 sm:$0xff]  }
 0x39d   :  { %3892 = vmatpush2.bf16.msra.mxu1 %v7400_v50  ;;  %v7518_v50 = vld [vmem:[#allocation22 + $0x140] ss:$16 sps:$4 sm:$0xff]  }
 0x39e   :  { %v8752_v57 = vsub.f32 %v8713_v40, %v2371_v52  ;;  %v8755_v58 = vsub.f32 %v8711_v34, %v2371_v52  ;;  %3893 = vmatprep.subr.bf16.mxu1 %v7405_v45  ;;  %v8758_v59 = vsub.f32 %v8719_v49, %v2371_v52  ;;  %v8761_v1 = vsub.f32 %v8723_v53, %v2371_v52  ;;  %v7526_v45 = vld [vmem:[#allocation22 + $0x124] ss:$16 sps:$4 sm:$0xff]  }
 0x39f   :  { %v2369_v63 = vpop.xlane.xlu1 %2368  ;;  %v7532_v52 = vld [vmem:[#allocation22 + $0x104] ss:$16 sps:$4 sm:$0xff]  }
 0x3a0   :  { %v2372_v0 = vmul.f32 0.001953125, %v2369_v63  ;;  %v2381_v4 = vmul.f32 %v8752_v57, %v8752_v57  ;;  %v2382_v40 = vmul.f32 %v8755_v58, %v8755_v58  ;;  %v2383_v34 = vmul.f32 %v8758_v59, %v8758_v59  ;;  %v2607_v63 = vpop.f32.mrf.mxu1 }
 0x3a1   :  { %3894 = vmatpush2.bf16.msra.mxu1 %v7403_v55  ;;  %v2384_v15 = vmul.f32 %v8761_v1, %v8761_v1  ;;  %v7530_v55 = vld [vmem:[#allocation22 + $0x100] ss:$16 sps:$4 sm:$0xff]  }
 0x3a2   :  { %v8770_v49 = vsub.f32 %v8721_v43, %v2372_v0  ;;  %v8773_v7 = vsub.f32 %v8717_v47, %v2372_v0  ;;  %v2389_v53 = vadd.f32 %v2382_v40, %v2381_v4  ;;  %v8776_v9 = vsub.f32 %v8728_v61, %v2372_v0  ;;  %4589 = vmatprep.subr.bf16.mxu1 %v7442_v60  ;;  %v7446_v61 = vld [vmem:[#allocation22 + $0xc0] ss:$16 sps:$4 sm:$0xff]   ;;  %v7538_v60 = vld [vmem:[#allocation22 + $0xec] ss:$16 sps:$4 sm:$0xff]   ;;  %v6339_v4 = vld [vmem:[#allocation15] ss:$0 sm:$0xff] }
 0x3a3   :  { %v8782_v19 = vsub.f32 %v8732_v6, %v2372_v0 }
 0x3a4   :  { %3896 = vmatmul.mubr.bf16.vlgmr.msra.gmra.mxu1 %v8737_v16  ;;  %v2390_v18 = vadd.f32 %v2389_v53, %v2383_v34  ;;  %v2385_v43 = vmul.f32 %v8770_v49, %v8770_v49  ;;  %v2386_v47 = vmul.f32 %v8773_v7, %v8773_v7  ;;  %v2387_v21 = vmul.f32 %v8776_v9, %v8776_v9 }
 0x3a5   :  { %4590 = vmatpush1.bf16.msra.mxu1 %v7440_v5  ;;  %v2388_v6 = vmul.f32 %v8782_v19, %v8782_v19 }
 0x3a6   :  { %v2391_v20 = vadd.f32 %v2390_v18, %v2384_v15  ;;  %v2394_v22 = vadd.f32 %v2386_v47, %v2385_v43  ;;  %4591 = vmatprep.subr.bf16.mxu1 %v7448_v13  ;;  %v7410_v18 = vld [vmem:[#allocation24 + $0x2e0] ss:$16 sps:$4 sm:$0xff]   ;;  %v7415_v47 = vld [vmem:[#allocation24 + $0x2c4] ss:$16 sps:$4 sm:$0xff]  }
 0x3a8   :  { %2392 = vadd.xlane.f32.xlu0 %v2391_v20  ;;  %v2395_v16 = vadd.f32 %v2394_v22, %v2387_v21  ;;  %v7413_v20 = vld [vmem:[#allocation24 + $0x2c0] ss:$16 sps:$4 sm:$0xff]   ;;  %v7418_v21 = vld [vmem:[#allocation24 + $0x2a4] ss:$16 sps:$4 sm:$0xff]  }
 0x3a9   :  { %4592 = vmatpush1.bf16.msra.mxu1 %v7446_v61  ;;  %v8794_v61 = vpack.c.bf16 %v2607_v63, %v8734_v8  ;;  %v7416_v22 = vld [vmem:[#allocation24 + $0x2a0] ss:$16 sps:$4 sm:$0xff]   ;;  %v7427_v8 = vld [vmem:[#allocation24 + $0x244] ss:$16 sps:$4 sm:$0xff]  }
 0x3aa   :  { %v2396_v27 = vadd.f32 %v2395_v16, %v2388_v6  ;;  %4593 = vmatprep.subr.bf16.mxu1 %v7454_v23  ;;  %v7421_v23 = vld [vmem:[#allocation24 + $0x284] ss:$16 sps:$4 sm:$0xff]   ;;  %v7419_v6 = vld [vmem:[#allocation24 + $0x280] ss:$16 sps:$4 sm:$0xff]  }
 0x3ab   :  { %v7424_v16 = vld [vmem:[#allocation24 + $0x264] ss:$16 sps:$4 sm:$0xff]  }
 0x3ac   :  { %2397 = vadd.xlane.f32.xlu1 %v2396_v27  ;;  %v7425_v27 = vld [vmem:[#allocation24 + $0x240] ss:$16 sps:$4 sm:$0xff]  }
 0x3ad   :  { %4594 = vmatpush1.bf16.msra.mxu1 %v7452_v24  ;;  %v7422_v24 = vld [vmem:[#allocation24 + $0x260] ss:$16 sps:$4 sm:$0xff]  }
 0x3ae   :  { %4595 = vmatprep.subr.bf16.mxu1 %v7460_v28  ;;  %v7430_v28 = vld [vmem:[#allocation24 + $0x224] ss:$16 sps:$4 sm:$0xff]  }
 0x3b1   :  { %4596 = vmatpush1.bf16.msra.mxu1 %v7458_v29  ;;  %v7428_v29 = vld [vmem:[#allocation24 + $0x220] ss:$16 sps:$4 sm:$0xff]  }
 0x3b2   :  { %4597 = vmatprep.subr.bf16.mxu1 %v7466_v30  ;;  %v7433_v30 = vld [vmem:[#allocation24 + $0x204] ss:$16 sps:$4 sm:$0xff]  }
 0x3b5   :  { %4598 = vmatpush1.bf16.msra.mxu1 %v7464_v31  ;;  %v7431_v31 = vld [vmem:[#allocation24 + $0x200] ss:$16 sps:$4 sm:$0xff]  }
 0x3b6   :  { %4599 = vmatprep.subr.bf16.mxu1 %v7472_v32  ;;  %v7436_v32 = vld [vmem:[#allocation24 + $0x3e4] ss:$16 sps:$4 sm:$0xff]  }
 0x3b9   :  { %4600 = vmatpush1.bf16.msra.mxu1 %v7470_v33  ;;  %v7434_v33 = vld [vmem:[#allocation24 + $0x3e0] ss:$16 sps:$4 sm:$0xff]  }
 0x3ba   :  { %4601 = vmatprep.subr.bf16.mxu1 %v7478_v35  ;;  %v7439_v35 = vld [vmem:[#allocation24 + $0x3c4] ss:$16 sps:$4 sm:$0xff]  }
 0x3bd   :  { %4602 = vmatpush1.bf16.msra.mxu1 %v7476_v36  ;;  %v7437_v36 = vld [vmem:[#allocation24 + $0x3c0] ss:$16 sps:$4 sm:$0xff]  }
 0x3be   :  { %4603 = vmatprep.subr.bf16.mxu1 %v7484_v37  ;;  %v7445_v37 = vld [vmem:[#allocation24 + $0x3a4] ss:$16 sps:$4 sm:$0xff]  }
 0x3c1   :  { %4604 = vmatpush1.bf16.msra.mxu1 %v7482_v38  ;;  %v7443_v38 = vld [vmem:[#allocation24 + $0x3a0] ss:$16 sps:$4 sm:$0xff]  }
 0x3c2   :  { %4605 = vmatprep.subr.bf16.mxu1 %v7490_v39  ;;  %v7451_v39 = vld [vmem:[#allocation24 + $0x384] ss:$16 sps:$4 sm:$0xff]  }
 0x3c5   :  { %4606 = vmatpush2.bf16.msra.mxu1 %v7488_v41  ;;  %v7449_v41 = vld [vmem:[#allocation24 + $0x380] ss:$16 sps:$4 sm:$0xff]  }
 0x3c6   :  { %4607 = vmatprep.subr.bf16.mxu1 %v7496_v42  ;;  %v7457_v42 = vld [vmem:[#allocation24 + $0x364] ss:$16 sps:$4 sm:$0xff]  }
 0x3c9   :  { %4608 = vmatpush2.bf16.msra.mxu1 %v7494_v54  ;;  %v7455_v54 = vld [vmem:[#allocation24 + $0x360] ss:$16 sps:$4 sm:$0xff]  }
 0x3ca   :  { %4609 = vmatprep.subr.bf16.mxu1 %v7502_v44  ;;  %v7463_v44 = vld [vmem:[#allocation24 + $0x344] ss:$16 sps:$4 sm:$0xff]  }
 0x3cd   :  { %4610 = vmatpush2.bf16.msra.mxu1 %v7500_v10  ;;  %v7461_v10 = vld [vmem:[#allocation24 + $0x340] ss:$16 sps:$4 sm:$0xff]  }
 0x3ce   :  { %4611 = vmatprep.subr.bf16.mxu1 %v7508_v25  ;;  %v7469_v25 = vld [vmem:[#allocation24 + $0x324] ss:$16 sps:$4 sm:$0xff]  }
 0x3d1   :  { %4612 = vmatpush2.bf16.msra.mxu1 %v7506_v26  ;;  %v7467_v26 = vld [vmem:[#allocation24 + $0x320] ss:$16 sps:$4 sm:$0xff]  }
 0x3d2   :  { %4613 = vmatprep.subr.bf16.mxu1 %v7514_v11  ;;  %v7475_v11 = vld [vmem:[#allocation24 + $0x304] ss:$16 sps:$4 sm:$0xff]  }
 0x3d5   :  { %4614 = vmatpush2.bf16.msra.mxu1 %v7512_v46  ;;  %v7473_v46 = vld [vmem:[#allocation24 + $0x300] ss:$16 sps:$4 sm:$0xff]  }
 0x3d6   :  { %4615 = vmatprep.subr.bf16.mxu1 %v7520_v48  ;;  %v7481_v48 = vld [vmem:[#allocation24 + $0x2ec] ss:$16 sps:$4 sm:$0xff]  }
 0x3d9   :  { %4616 = vmatpush2.bf16.msra.mxu1 %v7518_v50  ;;  %v7479_v50 = vld [vmem:[#allocation24 + $0x2e8] ss:$16 sps:$4 sm:$0xff]  }
 0x3da   :  { %4617 = vmatprep.subr.bf16.mxu1 %v7526_v45  ;;  %v7487_v45 = vld [vmem:[#allocation24 + $0x2cc] ss:$16 sps:$4 sm:$0xff]  }
 0x3dd   :  { %4618 = vmatpush2.bf16.msra.mxu1 %v7524_v51  ;;  %v7485_v51 = vld [vmem:[#allocation24 + $0x2c8] ss:$16 sps:$4 sm:$0xff]  }
 0x3de   :  { %4619 = vmatprep.subr.bf16.mxu1 %v7532_v52 }
 0x3e1   :  { %4620 = vmatpush2.bf16.msra.mxu1 %v7530_v55  ;;  %v7493_v55 = vld [vmem:[#allocation24 + $0x2ac] ss:$16 sps:$4 sm:$0xff]  }
 0x3e2   :  { %4675 = vmatprep.subr.bf16.mxu1 %v7538_v60 }
 0x3e4   :  { %v2737_v0 = vpop.f32.mrf.mxu1 }
 0x3e5   :  { %v2738_v5 = vadd.f32 %v6339_v4, %v2737_v0  ;;  %v7491_v0 = vld [vmem:[#allocation24 + $0x2a8] ss:$16 sps:$4 sm:$0xff]  }
 0x3e6   :  { %v6800_v40 = vpop.f32.mrf.mxu1 }
 0x3e7   :  { %v7499_v40 = vld [vmem:[#allocation24 + $0x28c] ss:$16 sps:$4 sm:$0xff]  }
 0x3e8   :  { %v2740_v34 = vpop.f32.mrf.mxu1 }
 0x3e9   :  { %v2741_v53 = vadd.f32 %v6339_v4, %v2740_v34 }
 0x3ea   :  { %v6801_v13 = vpop.f32.mrf.mxu1 }
 0x3eb   :  { %v2744_v15 = vpack.c.bf16 %v2741_v53, %v2738_v5  ;;  %v7497_v53 = vld [vmem:[#allocation24 + $0x288] ss:$16 sps:$4 sm:$0xff]   ;;  %v7505_v13 = vld [vmem:[#allocation24 + $0x26c] ss:$16 sps:$4 sm:$0xff]  }
 0x3ed   :  { %v2745_v43 = vmax.bf16 %v8423_v2, %v2744_v15  ;;  %v7503_v15 = vld [vmem:[#allocation24 + $0x268] ss:$16 sps:$4 sm:$0xff]  }
 0x3ef   :  { %6811 = vmatmul.mubr.msk.bf16.vlgmr.msra.gmra.mxu0 %vm2785_vm7, %v2745_v43  ;;  %v8800_v43 = vld [vmem:[#allocation7] sm:$0xf] }
 0x3f0   :  { %3821 = vmatpush1.bf16.msra.mxu0 %v7410_v18  ;;  %3852 = vmatprep.mubr.bf16.mxu0 %v8794_v61  ;;  %v7511_v18 = vld [vmem:[#allocation24 + $0x24c] ss:$16 sps:$4 sm:$0xff]  }
 0x3f1   :  { %3822 = vmatprep.subr.bf16.mxu0 %v7415_v47  ;;  %v7509_v47 = vld [vmem:[#allocation24 + $0x248] ss:$16 sps:$4 sm:$0xff]  }
 0x3f4   :  { %3823 = vmatpush1.bf16.msra.mxu0 %v7413_v20  ;;  %v8802_v20 = vld [vmem:[#allocation9] sm:$0xf] }
 0x3f5   :  { %3824 = vmatprep.subr.bf16.mxu0 %v7418_v21  ;;  %v2421_v21 = vrot.slane %v8800_v43, %v8699_v62 }
 0x3f8   :  { %3825 = vmatpush1.bf16.msra.mxu0 %v7416_v22  ;;  %v2417_v22 = vrot.slane %v8800_v43, %v8701_v3 }
 0x3f9   :  { %3826 = vmatprep.subr.bf16.mxu0 %v7421_v23  ;;  %v2425_v23 = vrot.slane %v8800_v43, %v8705_v12 }
 0x3fc   :  { %3827 = vmatpush1.bf16.msra.mxu0 %v7419_v6 }
 0x3fd   :  { %3828 = vmatprep.subr.bf16.mxu0 %v7424_v16  ;;  %v7515_v16 = vld [vmem:[#allocation24 + $0x228] ss:$16 sps:$4 sm:$0xff]  }
 0x400   :  { %3829 = vmatpush1.bf16.msra.mxu0 %v7422_v24 }
 0x401   :  { %3830 = vmatprep.subr.bf16.mxu0 %v7427_v8 }
 0x404   :  { %3831 = vmatpush1.bf16.msra.mxu0 %v7425_v27 }
 0x405   :  { %3832 = vmatprep.subr.bf16.mxu0 %v7430_v28  ;;  %v7523_v28 = vld [vmem:[#allocation24 + $0x20c] ss:$16 sps:$4 sm:$0xff]  }
 0x408   :  { %3833 = vmatpush1.bf16.msra.mxu0 %v7428_v29  ;;  %v2450_v29 = vrot.slane %v8802_v20, %v8699_v62 }
 0x409   :  { %3834 = vmatprep.subr.bf16.mxu0 %v7433_v30  ;;  %v2454_v30 = vrot.slane %v8802_v20, %v8705_v12 }
 0x40c   :  { %3835 = vmatpush1.bf16.msra.mxu0 %v7431_v31 }
 0x40d   :  { %3836 = vmatprep.subr.bf16.mxu0 %v7436_v32 }
 0x410   :  { %3837 = vmatpush2.bf16.msra.mxu0 %v7434_v33  ;;  %v2446_v33 = vrot.slane %v8802_v20, %v8701_v3 }
 0x411   :  { %3838 = vmatprep.subr.bf16.mxu0 %v7439_v35 }
 0x414   :  { %3839 = vmatpush2.bf16.msra.mxu0 %v7437_v36 }
 0x415   :  { %3840 = vmatprep.subr.bf16.mxu0 %v7445_v37  ;;  %v7529_v37 = vld [vmem:[#allocation24 + $0x3ec] ss:$16 sps:$4 sm:$0xff]  }
 0x418   :  { %3841 = vmatpush2.bf16.msra.mxu0 %v7443_v38 }
 0x419   :  { %3842 = vmatprep.subr.bf16.mxu0 %v7451_v39 }
 0x41c   :  { %3843 = vmatpush2.bf16.msra.mxu0 %v7449_v41 }
 0x41d   :  { %3844 = vmatprep.subr.bf16.mxu0 %v7457_v42 }
 0x420   :  { %3845 = vmatpush2.bf16.msra.mxu0 %v7455_v54 }
 0x421   :  { %3846 = vmatprep.subr.bf16.mxu0 %v7463_v44 }
 0x424   :  { %3847 = vmatpush2.bf16.msra.mxu0 %v7461_v10 }
 0x425   :  { %3848 = vmatprep.subr.bf16.mxu0 %v7469_v25  ;;  %v7527_v25 = vld [vmem:[#allocation24 + $0x3e8] ss:$16 sps:$4 sm:$0xff]  }
 0x428   :  { %3849 = vmatpush2.bf16.msra.mxu0 %v7467_v26 }
 0x429   :  { %3850 = vmatprep.subr.bf16.mxu0 %v7475_v11 }
 0x42c   :  { %3851 = vmatpush2.bf16.msra.mxu0 %v7473_v46 }
 0x42d   :  { %3906 = vmatprep.subr.bf16.mxu0 %v7481_v48 }
 0x42f   :  { %3853 = vmatmul.mubr.bf16.vlgmr.msra.gmra.mxu0 %v8739_v17 }
 0x430   :  { %3907 = vmatpush1.bf16.msra.mxu0 %v7479_v50  ;;  %3938 = vmatprep.mubr.bf16.mxu0 %v8794_v61  ;;  %v7517_v61 = vld [vmem:[#allocation24 + $0x22c] ss:$16 sps:$4 sm:$0xff]  }
 0x431   :  { %v2393_v52 = vpop.xlane.xlu0 %2392  ;;  %3908 = vmatprep.subr.bf16.mxu0 %v7487_v45 }
 0x432   :  { %v2399_v60 = vmul.f32 0.001953125, %v2393_v52 }
 0x434   :  { %v2401_v63 = vadd.f32 1e-05, %v2399_v60  ;;  %3909 = vmatpush1.bf16.msra.mxu0 %v7485_v51  ;;  %v7536_v60 = vld [vmem:[#allocation22 + $0xe8] ss:$16 sps:$4 sm:$0xff]  }
 0x435   :  { %v2398_v4 = vpop.xlane.xlu1 %2397  ;;  %3910 = vmatprep.subr.bf16.mxu0 %v7493_v55 }
 0x436   :  { %7872 = vrsqrt.f32 %v2401_v63  ;;  %v2400_v34 = vmul.f32 0.001953125, %v2398_v4 }
 0x438   :  { %v2402_v5 = vadd.f32 1e-05, %v2400_v34  ;;  %3911 = vmatpush1.bf16.msra.mxu0 %v7491_v0  ;;  %v7541_v0 = vld [vmem:[#allocation24 + $0x3ac] ss:$16 sps:$4 sm:$0xff]   ;;  %v7539_v34 = vld [vmem:[#allocation24 + $0x3a8] ss:$16 sps:$4 sm:$0xff]  }
 0x439   :  { %3912 = vmatprep.subr.bf16.mxu0 %v7499_v40  ;;  %v7544_v40 = vld [vmem:[#allocation22 + $0xcc] ss:$16 sps:$4 sm:$0xff]  }
 0x43a   :  { %7874 = vrsqrt.f32 %v2402_v5  ;;  %v7542_v5 = vld [vmem:[#allocation22 + $0xc8] ss:$16 sps:$4 sm:$0xff]  }
 0x43c   :  { %3913 = vmatpush1.bf16.msra.mxu0 %v7497_v53  ;;  %v7547_v53 = vld [vmem:[#allocation24 + $0x38c] ss:$16 sps:$4 sm:$0xff]  }
 0x43d   :  { %3914 = vmatprep.subr.bf16.mxu0 %v7505_v13  ;;  %v7550_v13 = vld [vmem:[#allocation22 + $0xac] ss:$16 sps:$4 sm:$0xff]  }
 0x440   :  { %3915 = vmatpush1.bf16.msra.mxu0 %v7503_v15  ;;  %v7545_v15 = vld [vmem:[#allocation24 + $0x388] ss:$16 sps:$4 sm:$0xff]  }
 0x441   :  { %3916 = vmatprep.subr.bf16.mxu0 %v7511_v18  ;;  %v7548_v18 = vld [vmem:[#allocation22 + $0xa8] ss:$16 sps:$4 sm:$0xff]  }
 0x443   :  { %v8810_v6 = vpop.eup %7872 }
 0x444   :  { %3917 = vmatpush1.bf16.msra.mxu0 %v7509_v47  ;;  %v2406_v24 = vmul.f32 %v8810_v6, %v8755_v58  ;;  %v2405_v8 = vmul.f32 %v8810_v6, %v8752_v57  ;;  %v2407_v27 = vmul.f32 %v8810_v6, %v8758_v59  ;;  %v7521_v57 = vld [vmem:[#allocation24 + $0x208] ss:$16 sps:$4 sm:$0xff]   ;;  %v7553_v47 = vld [vmem:[#allocation24 + $0x36c] ss:$16 sps:$4 sm:$0xff]  }
 0x445   :  { %3918 = vmatprep.subr.bf16.mxu0 %v7517_v61  ;;  %v7556_v61 = vld [vmem:[#allocation22 + $0x8c] ss:$16 sps:$4 sm:$0xff]  }
 0x446   :  { %v2435_v31 = vmul.f32 %v2421_v21, %v2406_v24  ;;  %v2434_v32 = vmul.f32 %v2417_v22, %v2405_v8  ;;  %v2436_v58 = vmul.f32 %v2425_v23, %v2407_v27  ;;  %v7557_v8 = vld [vmem:[#allocation24 + $0x348] ss:$16 sps:$4 sm:$0xff]  }
 0x447   :  { %v8824_v35 = vpop.eup %7874  ;;  %v7560_v27 = vld [vmem:[#allocation22 + $0x68] ss:$16 sps:$4 sm:$0xff]  }
 0x448   :  { %3919 = vmatpush1.bf16.msra.mxu0 %v7515_v16  ;;  %v2410_v59 = vmul.f32 %v8824_v35, %v8773_v7  ;;  %v2409_v36 = vmul.f32 %v8824_v35, %v8770_v49  ;;  %v2411_v38 = vmul.f32 %v8824_v35, %v8776_v9  ;;  %v2465_v39 = vadd.f32 %v2454_v30, %v2436_v58  ;;  %v7535_v7 = vld [vmem:[#allocation24 + $0x3cc] ss:$16 sps:$4 sm:$0xff]   ;;  %v7533_v9 = vld [vmem:[#allocation24 + $0x3c8] ss:$16 sps:$4 sm:$0xff]  }
 0x449   :  { %3920 = vmatprep.subr.bf16.mxu0 %v7523_v28  ;;  %v2464_v42 = vadd.f32 %v2450_v29, %v2435_v31  ;;  %v2463_v44 = vadd.f32 %v2446_v33, %v2434_v32  ;;  %v7562_v16 = vld [vmem:[#allocation22 + $0x6c] ss:$16 sps:$4 sm:$0xff]   ;;  %v2412_v24 = vmul.f32 %v8824_v35, %v8782_v19  ;;  %v2408_v28 = vmul.f32 %v8810_v6, %v8761_v1  ;;  %v7566_v58 = vld [vmem:[#allocation22 + $0x48] ss:$16 sps:$4 sm:$0xff]  }
 0x44a   :  { %v2439_v41 = vmul.f32 %v2421_v21, %v2410_v59  ;;  %v2438_v54 = vmul.f32 %v2417_v22, %v2409_v36  ;;  %v2440_v10 = vmul.f32 %v2425_v23, %v2411_v38  ;;  %v2473_v51 = vmax.f32 %v2465_v39, 0.0  ;;  %v7551_v21 = vld [vmem:[#allocation24 + $0x368] ss:$16 sps:$4 sm:$0xff]   ;;  %v7559_v23 = vld [vmem:[#allocation24 + $0x34c] ss:$16 sps:$4 sm:$0xff]  }
 0x44b   :  { %v2472_v48 = vmax.f32 %v2464_v42, 0.0  ;;  %v2471_v50 = vmax.f32 %v2463_v44, 0.0  ;;  %v7554_v22 = vld [vmem:[#allocation22 + $0x88] ss:$16 sps:$4 sm:$0xff]   ;;  %v7568_v31 = vld [vmem:[#allocation22 + $0x4c] ss:$16 sps:$4 sm:$0xff]   ;;  %v2458_v35 = vrot.slane %v8802_v20, %v8707_v14 }
 0x44c   :  { %3921 = vmatpush1.bf16.msra.mxu0 %v7521_v57  ;;  %v2468_v26 = vadd.f32 %v2450_v29, %v2439_v41  ;;  %v2467_v11 = vadd.f32 %v2446_v33, %v2438_v54  ;;  %v2469_v46 = vadd.f32 %v2454_v30, %v2440_v10  ;;  %v2429_v29 = vrot.slane %v8800_v43, %v8707_v14  ;;  %v7565_v30 = vld [vmem:[#allocation24 + $0x32c] ss:$16 sps:$4 sm:$0xff]   ;;  %v7563_v33 = vld [vmem:[#allocation24 + $0x328] ss:$16 sps:$4 sm:$0xff]   ;;  %v7575_v41 = vld [vmem:[#allocation22 + $0x2e0] ss:$16 sps:$4 sm:$0xff]  }
 0x44d   :  { %3922 = vmatprep.subr.bf16.mxu0 %v7529_v37  ;;  %v7571_v57 = vld [vmem:[#allocation24 + $0x30c] ss:$16 sps:$4 sm:$0xff]   ;;  %v7569_v43 = vld [vmem:[#allocation24 + $0x308] ss:$16 sps:$4 sm:$0xff]   ;;  %v7577_v37 = vld [vmem:[#allocation22 + $0x2e4] ss:$16 sps:$4 sm:$0xff]  }
 0x44e   :  { %v2476_v49 = vmax.f32 %v2468_v26, 0.0  ;;  %v2475_v45 = vmax.f32 %v2467_v11, 0.0  ;;  %v2477_v52 = vmax.f32 %v2469_v46, 0.0  ;;  %v2441_v32 = vmul.f32 %v2429_v29, %v2412_v24  ;;  %v7574_v1 = vld [vmem:[#allocation22 + $0x2c] ss:$16 sps:$4 sm:$0xff]  }
 0x44f   :  { %v2437_v19 = vmul.f32 %v2429_v29, %v2408_v28  ;;  %v7572_v59 = vld [vmem:[#allocation22 + $0x28] ss:$16 sps:$4 sm:$0xff]   ;;  %v7580_v38 = vld [vmem:[#allocation22 + $0xc] ss:$16 sps:$4 sm:$0xff]   ;;  %v7583_v54 = vld [vmem:[#allocation22 + $0x2c4] ss:$16 sps:$4 sm:$0xff]  }
 0x450   :  { %3923 = vmatpush2.bf16.msra.mxu0 %v7527_v25  ;;  %v2874_v55 = vpack.c.bf16 %v2476_v49, %v2472_v48  ;;  %v8832_v63 = vpack.c.bf16 %v2475_v45, %v2471_v50  ;;  %v8834_v4 = vpack.c.bf16 %v2477_v52, %v2473_v51  ;;  %v2470_v6 = vadd.f32 %v2458_v35, %v2441_v32  ;;  %v7578_v20 = vld [vmem:[#allocation22 + $0x8] ss:$16 sps:$4 sm:$0xff]   ;;  %v7586_v10 = vld [vmem:[#allocation22 + $0x1ec] ss:$16 sps:$4 sm:$0xff]   ;;  %v7581_v25 = vld [vmem:[#allocation22 + $0x2c0] ss:$16 sps:$4 sm:$0xff]  }
 0x451   :  { %3924 = vmatprep.subr.bf16.mxu0 %v7535_v7  ;;  %v2466_v36 = vadd.f32 %v2458_v35, %v2437_v19  ;;  %v7584_v26 = vld [vmem:[#allocation22 + $0x1e8] ss:$16 sps:$4 sm:$0xff]   ;;  %v7589_v11 = vld [vmem:[#allocation22 + $0x2a4] ss:$16 sps:$4 sm:$0xff]   ;;  %v7592_v7 = vld [vmem:[#allocation22 + $0x1cc] ss:$16 sps:$4 sm:$0xff]  }
 0x452   :  { %4621 = vmatprep.mubr.bf16.mxu1 %v2874_v55  ;;  %v2478_v39 = vmax.f32 %v2470_v6, 0.0  ;;  %v7587_v46 = vld [vmem:[#allocation22 + $0x2a0] ss:$16 sps:$4 sm:$0xff]   ;;  %v7590_v48 = vld [vmem:[#allocation22 + $0x1c8] ss:$16 sps:$4 sm:$0xff]  }
 0x453   :  { %4622 = vmatmul.mubr.bf16.vlgmr.msra.gmra.mxu1 %v8832_v63  ;;  %v2474_v42 = vmax.f32 %v2466_v36, 0.0  ;;  %v7595_v49 = vld [vmem:[#allocation22 + $0x284] ss:$16 sps:$4 sm:$0xff]   ;;  %v7598_v50 = vld [vmem:[#allocation22 + $0x1ac] ss:$16 sps:$4 sm:$0xff]  }
 0x454   :  { %3925 = vmatpush2.bf16.msra.mxu0 %v7533_v9  ;;  %4676 = vmatpush1.bf16.msra.mxu1 %v7536_v60  ;;  %v7596_v45 = vld [vmem:[#allocation22 + $0x1a8] ss:$16 sps:$4 sm:$0xff]   ;;  %v7601_v51 = vld [vmem:[#allocation22 + $0x264] ss:$16 sps:$4 sm:$0xff]   ;;  %v7604_v52 = vld [vmem:[#allocation22 + $0x18c] ss:$16 sps:$4 sm:$0xff]  }
 0x455   :  { %4707 = vmatprep.mubr.bf16.mxu1 %v2874_v55  ;;  %3926 = vmatprep.subr.bf16.mxu0 %v7541_v0  ;;  %v8845_v44 = vpack.c.bf16 %v2478_v39, %v2474_v42  ;;  %v7599_v9 = vld [vmem:[#allocation22 + $0x260] ss:$16 sps:$4 sm:$0xff]   ;;  %v7602_v55 = vld [vmem:[#allocation22 + $0x188] ss:$16 sps:$4 sm:$0xff]   ;;  %v7607_v60 = vld [vmem:[#allocation22 + $0x244] ss:$16 sps:$4 sm:$0xff]  }
 0x456   :  { %4677 = vmatprep.subr.bf16.mxu1 %v7544_v40  ;;  %v7610_v0 = vld [vmem:[#allocation22 + $0x16c] ss:$16 sps:$4 sm:$0xff]   ;;  %v7605_v40 = vld [vmem:[#allocation22 + $0x240] ss:$16 sps:$4 sm:$0xff]   ;;  %v7626_v24 = vld [vmem:[#allocation22 + $0x108] ss:$16 sps:$4 sm:$0xff]  }
 0x457   :  { %v7634_v28 = vld [vmem:[#allocation22 + $0x3a4] ss:$16 sps:$4 sm:$0xff]   ;;  %v7632_v29 = vld [vmem:[#allocation22 + $0x3a0] ss:$16 sps:$4 sm:$0xff]   ;;  %v7652_v6 = vld [vmem:[#allocation22 + $0x2ec] ss:$16 sps:$4 sm:$0xff]  }
 0x458   :  { %3927 = vmatpush2.bf16.msra.mxu0 %v7539_v34  ;;  %4678 = vmatpush1.bf16.msra.mxu1 %v7542_v5  ;;  %v7608_v34 = vld [vmem:[#allocation22 + $0x168] ss:$16 sps:$4 sm:$0xff]   ;;  %v7613_v5 = vld [vmem:[#allocation22 + $0x224] ss:$16 sps:$4 sm:$0xff]   ;;  %v7641_v19 = vld [vmem:[#allocation22 + $0x340] ss:$16 sps:$4 sm:$0xff]  }
 0x459   :  { %3928 = vmatprep.subr.bf16.mxu0 %v7547_v53  ;;  %4679 = vmatprep.subr.bf16.mxu1 %v7550_v13  ;;  %v7616_v53 = vld [vmem:[#allocation22 + $0x14c] ss:$16 sps:$4 sm:$0xff]   ;;  %v7611_v13 = vld [vmem:[#allocation22 + $0x220] ss:$16 sps:$4 sm:$0xff]   ;;  %v7640_v32 = vld [vmem:[#allocation22 + $0x364] ss:$16 sps:$4 sm:$0xff]  }
 0x45a   :  { %v7646_v35 = vld [vmem:[#allocation22 + $0x324] ss:$16 sps:$4 sm:$0xff]   ;;  %v7655_v36 = vld [vmem:[#allocation22 + $0x2cc] ss:$16 sps:$4 sm:$0xff]   ;;  %v7653_v39 = vld [vmem:[#allocation22 + $0x2c8] ss:$16 sps:$4 sm:$0xff]  }
 0x45b   :  { %v7658_v42 = vld [vmem:[#allocation22 + $0x2ac] ss:$16 sps:$4 sm:$0xff]  }
 0x45c   :  { %3929 = vmatpush2.bf16.msra.mxu0 %v7545_v15  ;;  %4680 = vmatpush1.bf16.msra.mxu1 %v7548_v18  ;;  %v7614_v15 = vld [vmem:[#allocation22 + $0x148] ss:$16 sps:$4 sm:$0xff]   ;;  %v7619_v18 = vld [vmem:[#allocation22 + $0x204] ss:$16 sps:$4 sm:$0xff]  }
 0x45d   :  { %3930 = vmatprep.subr.bf16.mxu0 %v7553_v47  ;;  %4681 = vmatprep.subr.bf16.mxu1 %v7556_v61  ;;  %v7622_v47 = vld [vmem:[#allocation22 + $0x12c] ss:$16 sps:$4 sm:$0xff]   ;;  %v7617_v61 = vld [vmem:[#allocation22 + $0x200] ss:$16 sps:$4 sm:$0xff]  }
 0x460   :  { %3931 = vmatpush2.bf16.msra.mxu0 %v7551_v21  ;;  %4682 = vmatpush1.bf16.msra.mxu1 %v7554_v22  ;;  %v7620_v21 = vld [vmem:[#allocation22 + $0x128] ss:$16 sps:$4 sm:$0xff]   ;;  %v7625_v22 = vld [vmem:[#allocation22 + $0x3e4] ss:$16 sps:$4 sm:$0xff]  }
 0x461   :  { %3932 = vmatprep.subr.bf16.mxu0 %v7559_v23  ;;  %4683 = vmatprep.subr.bf16.mxu1 %v7562_v16  ;;  %v7628_v23 = vld [vmem:[#allocation22 + $0x10c] ss:$16 sps:$4 sm:$0xff]   ;;  %v7623_v16 = vld [vmem:[#allocation22 + $0x3e0] ss:$16 sps:$4 sm:$0xff]  }
 0x464   :  { %3933 = vmatpush2.bf16.msra.mxu0 %v7557_v8  ;;  %4684 = vmatpush1.bf16.msra.mxu1 %v7560_v27  ;;  %v7631_v8 = vld [vmem:[#allocation22 + $0x3c4] ss:$16 sps:$4 sm:$0xff]   ;;  %v7629_v27 = vld [vmem:[#allocation22 + $0x3c0] ss:$16 sps:$4 sm:$0xff]  }
 0x465   :  { %3934 = vmatprep.subr.bf16.mxu0 %v7565_v30  ;;  %4685 = vmatprep.subr.bf16.mxu1 %v7568_v31  ;;  %v7637_v30 = vld [vmem:[#allocation22 + $0x384] ss:$16 sps:$4 sm:$0xff]   ;;  %v7635_v31 = vld [vmem:[#allocation22 + $0x380] ss:$16 sps:$4 sm:$0xff]  }
 0x468   :  { %3935 = vmatpush2.bf16.msra.mxu0 %v7563_v33  ;;  %4686 = vmatpush1.bf16.msra.mxu1 %v7566_v58  ;;  %v7638_v33 = vld [vmem:[#allocation22 + $0x360] ss:$16 sps:$4 sm:$0xff]   ;;  %v7643_v58 = vld [vmem:[#allocation22 + $0x344] ss:$16 sps:$4 sm:$0xff]  }
 0x469   :  { %3936 = vmatprep.subr.bf16.mxu0 %v7571_v57  ;;  %4687 = vmatprep.subr.bf16.mxu1 %v7574_v1  ;;  %v7649_v57 = vld [vmem:[#allocation22 + $0x304] ss:$16 sps:$4 sm:$0xff]   ;;  %v7647_v1 = vld [vmem:[#allocation22 + $0x300] ss:$16 sps:$4 sm:$0xff]  }
 0x46c   :  { %3937 = vmatpush2.bf16.msra.mxu0 %v7569_v43  ;;  %4688 = vmatpush1.bf16.msra.mxu1 %v7572_v59  ;;  %v7650_v43 = vld [vmem:[#allocation22 + $0x2e8] ss:$16 sps:$4 sm:$0xff]  }
 0x46d   :  { %4632 = vmatprep.subr.bf16.mxu0 %v7577_v37  ;;  %4689 = vmatprep.subr.bf16.mxu1 %v7580_v38  ;;  %v6343_v59 = vld [vmem:[#allocation18] ss:$0 sm:$0xff] }
 0x46f   :  { %3939 = vmatmul.mubr.bf16.vlgmr.msra.gmra.mxu0 %v8739_v17  ;;  %v7593_v17 = vld [vmem:[#allocation22 + $0x280] ss:$16 sps:$4 sm:$0xff]  }
 0x470   :  { %4633 = vmatpush1.bf16.msra.mxu0 %v7575_v41  ;;  %4664 = vmatprep.mubr.bf16.mxu0 %v8845_v44 }
 0x471   :  { %4690 = vmatpush1.bf16.msra.mxu1 %v7578_v20  ;;  %4634 = vmatprep.subr.bf16.mxu0 %v7583_v54 }
 0x472   :  { %4691 = vmatprep.subr.bf16.mxu1 %v7586_v10  ;;  %v7656_v10 = vld [vmem:[#allocation22 + $0x2a8] ss:$16 sps:$4 sm:$0xff]  }
 0x474   :  { %4635 = vmatpush1.bf16.msra.mxu0 %v7581_v25 }
 0x475   :  { %4692 = vmatpush2.bf16.msra.mxu1 %v7584_v26  ;;  %4636 = vmatprep.subr.bf16.mxu0 %v7589_v11  ;;  %v7661_v26 = vld [vmem:[#allocation22 + $0x28c] ss:$16 sps:$4 sm:$0xff]   ;;  %v7659_v11 = vld [vmem:[#allocation22 + $0x288] ss:$16 sps:$4 sm:$0xff]  }
 0x476   :  { %4693 = vmatprep.subr.bf16.mxu1 %v7592_v7  ;;  %v7662_v7 = vld [vmem:[#allocation22 + $0x268] ss:$16 sps:$4 sm:$0xff]  }
 0x478   :  { %4637 = vmatpush1.bf16.msra.mxu0 %v7587_v46  ;;  %v7667_v46 = vld [vmem:[#allocation22 + $0x24c] ss:$16 sps:$4 sm:$0xff]  }
 0x479   :  { %4694 = vmatpush2.bf16.msra.mxu1 %v7590_v48  ;;  %4638 = vmatprep.subr.bf16.mxu0 %v7595_v49  ;;  %v7665_v48 = vld [vmem:[#allocation22 + $0x248] ss:$16 sps:$4 sm:$0xff]   ;;  %v7670_v49 = vld [vmem:[#allocation22 + $0x22c] ss:$16 sps:$4 sm:$0xff]  }
 0x47a   :  { %4695 = vmatprep.subr.bf16.mxu1 %v7598_v50  ;;  %v7668_v50 = vld [vmem:[#allocation22 + $0x228] ss:$16 sps:$4 sm:$0xff]  }
 0x47c   :  { %4639 = vmatpush1.bf16.msra.mxu0 %v7593_v17  ;;  %v7673_v17 = vld [vmem:[#allocation22 + $0x20c] ss:$16 sps:$4 sm:$0xff]  }
 0x47d   :  { %4696 = vmatpush2.bf16.msra.mxu1 %v7596_v45  ;;  %4640 = vmatprep.subr.bf16.mxu0 %v7601_v51  ;;  %v7671_v45 = vld [vmem:[#allocation22 + $0x208] ss:$16 sps:$4 sm:$0xff]   ;;  %v7676_v51 = vld [vmem:[#allocation22 + $0x3ec] ss:$16 sps:$4 sm:$0xff]  }
 0x47e   :  { %4697 = vmatprep.subr.bf16.mxu1 %v7604_v52  ;;  %v7674_v52 = vld [vmem:[#allocation22 + $0x3e8] ss:$16 sps:$4 sm:$0xff]  }
 0x480   :  { %4641 = vmatpush1.bf16.msra.mxu0 %v7599_v9  ;;  %v7679_v9 = vld [vmem:[#allocation22 + $0x3cc] ss:$16 sps:$4 sm:$0xff]  }
 0x481   :  { %4698 = vmatpush2.bf16.msra.mxu1 %v7602_v55  ;;  %4642 = vmatprep.subr.bf16.mxu0 %v7607_v60  ;;  %v7677_v55 = vld [vmem:[#allocation22 + $0x3c8] ss:$16 sps:$4 sm:$0xff]   ;;  %v7682_v60 = vld [vmem:[#allocation22 + $0x3ac] ss:$16 sps:$4 sm:$0xff]  }
 0x482   :  { %4699 = vmatprep.subr.bf16.mxu1 %v7610_v0  ;;  %v7680_v0 = vld [vmem:[#allocation22 + $0x3a8] ss:$16 sps:$4 sm:$0xff]  }
 0x484   :  { %4643 = vmatpush1.bf16.msra.mxu0 %v7605_v40  ;;  %v7685_v40 = vld [vmem:[#allocation22 + $0x38c] ss:$16 sps:$4 sm:$0xff]  }
 0x485   :  { %4700 = vmatpush2.bf16.msra.mxu1 %v7608_v34  ;;  %4644 = vmatprep.subr.bf16.mxu0 %v7613_v5  ;;  %v7683_v34 = vld [vmem:[#allocation22 + $0x388] ss:$16 sps:$4 sm:$0xff]   ;;  %v7688_v5 = vld [vmem:[#allocation22 + $0x36c] ss:$16 sps:$4 sm:$0xff]  }
 0x486   :  { %4701 = vmatprep.subr.bf16.mxu1 %v7616_v53  ;;  %v7686_v53 = vld [vmem:[#allocation22 + $0x368] ss:$16 sps:$4 sm:$0xff]  }
 0x488   :  { %4645 = vmatpush1.bf16.msra.mxu0 %v7611_v13  ;;  %v7691_v13 = vld [vmem:[#allocation22 + $0x34c] ss:$16 sps:$4 sm:$0xff]  }
 0x489   :  { %4702 = vmatpush2.bf16.msra.mxu1 %v7614_v15  ;;  %4646 = vmatprep.subr.bf16.mxu0 %v7619_v18  ;;  %v7689_v15 = vld [vmem:[#allocation22 + $0x348] ss:$16 sps:$4 sm:$0xff]   ;;  %v7694_v18 = vld [vmem:[#allocation22 + $0x32c] ss:$16 sps:$4 sm:$0xff]  }
 0x48a   :  { %4703 = vmatprep.subr.bf16.mxu1 %v7622_v47  ;;  %v7692_v47 = vld [vmem:[#allocation22 + $0x328] ss:$16 sps:$4 sm:$0xff]  }
 0x48c   :  { %4647 = vmatpush1.bf16.msra.mxu0 %v7617_v61  ;;  %v7697_v61 = vld [vmem:[#allocation22 + $0x30c] ss:$16 sps:$4 sm:$0xff]  }
 0x48d   :  { %4704 = vmatpush2.bf16.msra.mxu1 %v7620_v21  ;;  %4648 = vmatprep.subr.bf16.mxu0 %v7625_v22  ;;  %v7695_v21 = vld [vmem:[#allocation22 + $0x308] ss:$16 sps:$4 sm:$0xff]  }
 0x48e   :  { %4705 = vmatprep.subr.bf16.mxu1 %v7628_v23 }
 0x490   :  { %4649 = vmatpush2.bf16.msra.mxu0 %v7623_v16 }
 0x491   :  { %4706 = vmatpush2.bf16.msra.mxu1 %v7626_v24  ;;  %4650 = vmatprep.subr.bf16.mxu0 %v7631_v8 }
 0x494   :  { %4708 = vmatmul.mubr.bf16.vlgmr.msra.gmra.mxu1 %v8832_v63  ;;  %4651 = vmatpush2.bf16.msra.mxu0 %v7629_v27  ;;  %v7644_v63 = vld [vmem:[#allocation22 + $0x320] ss:$16 sps:$4 sm:$0xff]  }
 0x495   :  { %4652 = vmatprep.subr.bf16.mxu0 %v7634_v28  ;;  %4986 = vmatprep.mubr.bf16.mxu1 %v8423_v2 }
 0x498   :  { %4653 = vmatpush2.bf16.msra.mxu0 %v7632_v29 }
 0x499   :  { %4654 = vmatprep.subr.bf16.mxu0 %v7637_v30  ;;  %v7703_v30 = vld [vmem:[#allocation25 + $0xec] ss:$16 sps:$4 sm:$0xff]  }
 0x49c   :  { %4655 = vmatpush2.bf16.msra.mxu0 %v7635_v31  ;;  %v7698_v31 = vld [vmem:[#allocation25 + $0xe0] ss:$16 sps:$4 sm:$0xff]  }
 0x49d   :  { %4656 = vmatprep.subr.bf16.mxu0 %v7640_v32  ;;  %v7701_v32 = vld [vmem:[#allocation25 + $0xe8] ss:$16 sps:$4 sm:$0xff]  }
 0x4a0   :  { %4657 = vmatpush2.bf16.msra.mxu0 %v7638_v33  ;;  %v7706_v33 = vld [vmem:[#allocation25 + $0xc4] ss:$16 sps:$4 sm:$0xff]  }
 0x4a1   :  { %4658 = vmatprep.subr.bf16.mxu0 %v7643_v58  ;;  %v7709_v58 = vld [vmem:[#allocation25 + $0xcc] ss:$16 sps:$4 sm:$0xff]  }
 0x4a4   :  { %4659 = vmatpush2.bf16.msra.mxu0 %v7641_v19  ;;  %v7704_v19 = vld [vmem:[#allocation25 + $0xc0] ss:$16 sps:$4 sm:$0xff]  }
 0x4a5   :  { %4660 = vmatprep.subr.bf16.mxu0 %v7646_v35  ;;  %v7707_v35 = vld [vmem:[#allocation25 + $0xc8] ss:$16 sps:$4 sm:$0xff]  }
 0x4a8   :  { %4661 = vmatpush2.bf16.msra.mxu0 %v7644_v63  ;;  %v7710_v63 = vld [vmem:[#allocation25 + $0xa0] ss:$16 sps:$4 sm:$0xff]  }
 0x4a9   :  { %4662 = vmatprep.subr.bf16.mxu0 %v7649_v57  ;;  %v7712_v57 = vld [vmem:[#allocation25 + $0xa4] ss:$16 sps:$4 sm:$0xff]  }
 0x4ac   :  { %4663 = vmatpush2.bf16.msra.mxu0 %v7647_v1  ;;  %v7713_v1 = vld [vmem:[#allocation25 + $0xa8] ss:$16 sps:$4 sm:$0xff]  }
 0x4ad   :  { %4718 = vmatprep.subr.bf16.mxu0 %v7652_v6  ;;  %v7715_v6 = vld [vmem:[#allocation25 + $0xac] ss:$16 sps:$4 sm:$0xff]  }
 0x4af   :  { %4665 = vmatmul.mubr.bf16.vlgmr.msra.gmra.mxu0 %v8834_v4  ;;  %v2823_v37 = vpop.f32.mrf.mxu0 }
 0x4b0   :  { %v8852_v38 = vadd.f32 %v6343_v59, %v2823_v37  ;;  %4719 = vmatpush1.bf16.msra.mxu0 %v7650_v43  ;;  %4750 = vmatprep.mubr.bf16.mxu0 %v8845_v44  ;;  %v7664_v44 = vld [vmem:[#allocation22 + $0x26c] ss:$16 sps:$4 sm:$0xff]   ;;  %v7718_v43 = vld [vmem:[#allocation25 + $0x84] ss:$16 sps:$4 sm:$0xff]   ;;  %v7719_v37 = vld [vmem:[#allocation25 + $0x88] ss:$16 sps:$4 sm:$0xff]  }
 0x4b1   :  { %v6812_v41 = vpop.f32.mrf.mxu0  ;;  %4720 = vmatprep.subr.bf16.mxu0 %v7655_v36  ;;  %v7716_v36 = vld [vmem:[#allocation25 + $0x80] ss:$16 sps:$4 sm:$0xff]  }
 0x4b2   :  { %2832 = vadd.xlane.f32.xlu1 %v8852_v38  ;;  %v7722_v41 = vld [vmem:[#allocation25 + $0x60] ss:$16 sps:$4 sm:$0xff]  }
 0x4b3   :  { %v2826_v20 = vpop.f32.mrf.mxu0 }
 0x4b4   :  { %v8856_v54 = vadd.f32 %v6343_v59, %v2826_v20  ;;  %4721 = vmatpush1.bf16.msra.mxu0 %v7653_v39  ;;  %v7721_v59 = vld [vmem:[#allocation25 + $0x8c] ss:$16 sps:$4 sm:$0xff]   ;;  %v7730_v20 = vld [vmem:[#allocation25 + $0x44] ss:$16 sps:$4 sm:$0xff]  }
 0x4b5   :  { %v6813_v25 = vpop.f32.mrf.mxu0  ;;  %4722 = vmatprep.subr.bf16.mxu0 %v7658_v42  ;;  %v7727_v39 = vld [vmem:[#allocation25 + $0x6c] ss:$16 sps:$4 sm:$0xff]   ;;  %v7725_v42 = vld [vmem:[#allocation25 + $0x68] ss:$16 sps:$4 sm:$0xff]  }
 0x4b6   :  { %2834 = vadd.xlane.f32.xlu1 %v8856_v54  ;;  %v7731_v25 = vld [vmem:[#allocation25 + $0x48] ss:$16 sps:$4 sm:$0xff]  }
 0x4b8   :  { %4723 = vmatpush1.bf16.msra.mxu0 %v7656_v10  ;;  %v7728_v10 = vld [vmem:[#allocation25 + $0x40] ss:$16 sps:$4 sm:$0xff]  }
 0x4b9   :  { %4724 = vmatprep.subr.bf16.mxu0 %v7661_v26  ;;  %v7736_v26 = vld [vmem:[#allocation25 + $0x24] ss:$16 sps:$4 sm:$0xff]  }
 0x4bc   :  { %4725 = vmatpush1.bf16.msra.mxu0 %v7659_v11  ;;  %v7739_v11 = vld [vmem:[#allocation25 + $0x2c] ss:$16 sps:$4 sm:$0xff]  }
 0x4bd   :  { %4726 = vmatprep.subr.bf16.mxu0 %v7664_v44  ;;  %v7734_v44 = vld [vmem:[#allocation25 + $0x20] ss:$16 sps:$4 sm:$0xff]  }
 0x4c0   :  { %4727 = vmatpush1.bf16.msra.mxu0 %v7662_v7  ;;  %v7737_v7 = vld [vmem:[#allocation25 + $0x28] ss:$16 sps:$4 sm:$0xff]  }
 0x4c1   :  { %4728 = vmatprep.subr.bf16.mxu0 %v7667_v46  ;;  %v7742_v46 = vld [vmem:[#allocation25 + $0x4] ss:$16 sps:$4 sm:$0xff]  }
 0x4c4   :  { %4729 = vmatpush1.bf16.msra.mxu0 %v7665_v48  ;;  %v7745_v48 = vld [vmem:[#allocation25 + $0xc] ss:$16 sps:$4 sm:$0xff]  }
 0x4c5   :  { %4730 = vmatprep.subr.bf16.mxu0 %v7670_v49  ;;  %v7740_v49 = vld [vmem:[#allocation25] ss:$16 sps:$4 sm:$0xff]  }
 0x4c8   :  { %4731 = vmatpush1.bf16.msra.mxu0 %v7668_v50  ;;  %v7743_v50 = vld [vmem:[#allocation25 + $0x8] ss:$16 sps:$4 sm:$0xff]  }
 0x4c9   :  { %4732 = vmatprep.subr.bf16.mxu0 %v7673_v17  ;;  %v7748_v17 = vld [vmem:[#allocation28 + $0x74] ss:$8 sps:$4 sm:$0xff]  }
 0x4cc   :  { %4733 = vmatpush1.bf16.msra.mxu0 %v7671_v45  ;;  %v7751_v45 = vld [vmem:[#allocation28 + $0x174] ss:$8 sps:$4 sm:$0xff]  }
 0x4cd   :  { %4734 = vmatprep.subr.bf16.mxu0 %v7676_v51 }
 0x4d0   :  { %4735 = vmatpush2.bf16.msra.mxu0 %v7674_v52 }
 0x4d1   :  { %4736 = vmatprep.subr.bf16.mxu0 %v7679_v9 }
 0x4d4   :  { %4737 = vmatpush2.bf16.msra.mxu0 %v7677_v55 }
 0x4d5   :  { %4738 = vmatprep.subr.bf16.mxu0 %v7682_v60 }
 0x4d8   :  { %4739 = vmatpush2.bf16.msra.mxu0 %v7680_v0 }
 0x4d9   :  { %4740 = vmatprep.subr.bf16.mxu0 %v7685_v40 }
 0x4dc   :  { %4741 = vmatpush2.bf16.msra.mxu0 %v7683_v34  ;;  %v6349_v34 = vld [vmem:[#allocation19] ss:$0 sm:$0xff] }
 0x4dd   :  { %4742 = vmatprep.subr.bf16.mxu0 %v7688_v5 }
 0x4e0   :  { %4743 = vmatpush2.bf16.msra.mxu0 %v7686_v53 }
 0x4e1   :  { %4744 = vmatprep.subr.bf16.mxu0 %v7691_v13 }
 0x4e4   :  { %4745 = vmatpush2.bf16.msra.mxu0 %v7689_v15  ;;  %v6350_v15 = vld [vmem:[#allocation21] ss:$0 sm:$0xff] }
 0x4e5   :  { %4746 = vmatprep.subr.bf16.mxu0 %v7694_v18 }
 0x4e8   :  { %4747 = vmatpush2.bf16.msra.mxu0 %v7692_v47 }
 0x4e9   :  { %4748 = vmatprep.subr.bf16.mxu0 %v7697_v61 }
 0x4ec   :  { %4749 = vmatpush2.bf16.msra.mxu0 %v7695_v21 }
 0x4ed   :  { %4997 = vmatprep.subr.bf16.mxu0 %v7703_v30  ;;  %v7755_v30 = vld [vmem:[#allocation28 + $0x160] ss:$8 sps:$4 sm:$0xff]  }
 0x4ef   :  { %4751 = vmatmul.mubr.bf16.vlgmr.msra.gmra.mxu0 %v8834_v4  ;;  %v7700_v4 = vld [vmem:[#allocation25 + $0xe4] ss:$16 sps:$4 sm:$0xff]  }
 0x4f0   :  { %5029 = vmatprep.mubr.bf16.mxu0 %v8423_v2  ;;  %4954 = vmatprep.subr.bf16.mxu1 %v7700_v4  ;;  %v7757_v4 = vld [vmem:[#allocation28 + $0x164] ss:$8 sps:$4 sm:$0xff]  }
 0x4f1   :  { %4955 = vmatpush1.bf16.msra.mxu1 %v7698_v31  ;;  %4998 = vmatpush1.bf16.msra.mxu0 %v7701_v32  ;;  %v7760_v31 = vld [vmem:[#allocation28 + $0x54] ss:$8 sps:$4 sm:$0xff]   ;;  %v7758_v32 = vld [vmem:[#allocation28 + $0x50] ss:$8 sps:$4 sm:$0xff]  }
 0x4f2   :  { %4956 = vmatprep.subr.bf16.mxu1 %v7706_v33  ;;  %4999 = vmatprep.subr.bf16.mxu0 %v7709_v58  ;;  %v7761_v33 = vld [vmem:[#allocation28 + $0x150] ss:$8 sps:$4 sm:$0xff]   ;;  %v7766_v58 = vld [vmem:[#allocation28 + $0x44] ss:$8 sps:$4 sm:$0xff]  }
 0x4f5   :  { %4957 = vmatpush1.bf16.msra.mxu1 %v7704_v19  ;;  %5000 = vmatpush1.bf16.msra.mxu0 %v7707_v35  ;;  %v7769_v19 = vld [vmem:[#allocation28 + $0x144] ss:$8 sps:$4 sm:$0xff]   ;;  %v7764_v35 = vld [vmem:[#allocation28 + $0x40] ss:$8 sps:$4 sm:$0xff]  }
 0x4f6   :  { %4958 = vmatprep.subr.bf16.mxu1 %v7712_v57  ;;  %5001 = vmatprep.subr.bf16.mxu0 %v7715_v6  ;;  %v7772_v57 = vld [vmem:[#allocation28 + $0x34] ss:$8 sps:$4 sm:$0xff]   ;;  %v7770_v6 = vld [vmem:[#allocation28 + $0x30] ss:$8 sps:$4 sm:$0xff]  }
 0x4f9   :  { %4959 = vmatpush1.bf16.msra.mxu1 %v7710_v63  ;;  %5002 = vmatpush1.bf16.msra.mxu0 %v7713_v1  ;;  %v7767_v63 = vld [vmem:[#allocation28 + $0x140] ss:$8 sps:$4 sm:$0xff]   ;;  %v7775_v1 = vld [vmem:[#allocation28 + $0x134] ss:$8 sps:$4 sm:$0xff]  }
 0x4fa   :  { %4960 = vmatprep.subr.bf16.mxu1 %v7718_v43  ;;  %5003 = vmatprep.subr.bf16.mxu0 %v7721_v59  ;;  %v7773_v43 = vld [vmem:[#allocation28 + $0x130] ss:$8 sps:$4 sm:$0xff]   ;;  %v7778_v59 = vld [vmem:[#allocation28 + $0x24] ss:$8 sps:$4 sm:$0xff]  }
 0x4fd   :  { %4961 = vmatpush1.bf16.msra.mxu1 %v7716_v36  ;;  %5004 = vmatpush1.bf16.msra.mxu0 %v7719_v37  ;;  %v7781_v36 = vld [vmem:[#allocation28 + $0x124] ss:$8 sps:$4 sm:$0xff]   ;;  %v7776_v37 = vld [vmem:[#allocation28 + $0x20] ss:$8 sps:$4 sm:$0xff]  }
 0x4fe   :  { %5005 = vmatprep.subr.bf16.mxu0 %v7727_v39  ;;  %v7784_v39 = vld [vmem:[#allocation28 + $0x14] ss:$8 sps:$4 sm:$0xff]  }
 0x501   :  { %5006 = vmatpush1.bf16.msra.mxu0 %v7725_v42  ;;  %v7782_v42 = vld [vmem:[#allocation28 + $0x10] ss:$8 sps:$4 sm:$0xff]  }
 0x53b   :  { %v2833_v22 = vpop.xlane.xlu1 %2832 }
 0x53c   :  { %v2837_v23 = vmul.f32 0.0078125, %v2833_v22 }
 0x53e   :  { %v8862_v16 = vsub.f32 %v8852_v38, %v2837_v23  ;;  %v7724_v38 = vld [vmem:[#allocation25 + $0x64] ss:$16 sps:$4 sm:$0xff]  }
 0x53f   :  { %v2835_v24 = vpop.xlane.xlu1 %2834  ;;  %4962 = vmatprep.subr.bf16.mxu1 %v7724_v38  ;;  %v7779_v38 = vld [vmem:[#allocation28 + $0x120] ss:$8 sps:$4 sm:$0xff]  }
 0x540   :  { %v2838_v8 = vmul.f32 0.0078125, %v2835_v24  ;;  %v2841_v27 = vmul.f32 %v8862_v16, %v8862_v16  ;;  %4963 = vmatpush1.bf16.msra.mxu1 %v7722_v41  ;;  %v7746_v24 = vld [vmem:[#allocation28 + $0x70] ss:$8 sps:$4 sm:$0xff]   ;;  %v7787_v41 = vld [vmem:[#allocation28 + $0x114] ss:$8 sps:$4 sm:$0xff]  }
 0x541   :  { %4964 = vmatprep.subr.bf16.mxu1 %v7730_v20  ;;  %v7785_v20 = vld [vmem:[#allocation28 + $0x110] ss:$8 sps:$4 sm:$0xff]  }
 0x542   :  { %v8867_v28 = vsub.f32 %v8856_v54, %v2838_v8  ;;  %2843 = vadd.xlane.f32.xlu1 %v2841_v27  ;;  %v7733_v54 = vld [vmem:[#allocation25 + $0x4c] ss:$16 sps:$4 sm:$0xff]  }
 0x543   :  { %5007 = vmatprep.subr.bf16.mxu0 %v7733_v54  ;;  %v7749_v8 = vld [vmem:[#allocation28 + $0x170] ss:$8 sps:$4 sm:$0xff]   ;;  %v7790_v54 = vld [vmem:[#allocation28 + $0x4] ss:$8 sps:$4 sm:$0xff]  }
 0x544   :  { %v2842_v29 = vmul.f32 %v8867_v28, %v8867_v28  ;;  %4965 = vmatpush1.bf16.msra.mxu1 %v7728_v10  ;;  %5008 = vmatpush1.bf16.msra.mxu0 %v7731_v25  ;;  %v7793_v10 = vld [vmem:[#allocation28 + $0x104] ss:$8 sps:$4 sm:$0xff]   ;;  %v7788_v25 = vld [vmem:[#allocation28] ss:$8 sps:$4 sm:$0xff]  }
 0x545   :  { %4966 = vmatprep.subr.bf16.mxu1 %v7736_v26  ;;  %5009 = vmatprep.subr.bf16.mxu0 %v7739_v11  ;;  %v7791_v26 = vld [vmem:[#allocation28 + $0x100] ss:$8 sps:$4 sm:$0xff]   ;;  %v7796_v11 = vld [vmem:[#allocation28 + $0xf4] ss:$8 sps:$4 sm:$0xff]  }
 0x546   :  { %2845 = vadd.xlane.f32.xlu1 %v2842_v29  ;;  %v7754_v29 = vld [vmem:[#allocation28 + $0x64] ss:$8 sps:$4 sm:$0xff]  }
 0x548   :  { %4967 = vmatpush1.bf16.msra.mxu1 %v7734_v44  ;;  %5010 = vmatpush1.bf16.msra.mxu0 %v7737_v7  ;;  %v7799_v44 = vld [vmem:[#allocation28 + $0x1f4] ss:$8 sps:$4 sm:$0xff]   ;;  %v7794_v7 = vld [vmem:[#allocation28 + $0xf0] ss:$8 sps:$4 sm:$0xff]  }
 0x549   :  { %4968 = vmatprep.subr.bf16.mxu1 %v7742_v46  ;;  %5011 = vmatprep.subr.bf16.mxu0 %v7745_v48  ;;  %v7797_v46 = vld [vmem:[#allocation28 + $0x1f0] ss:$8 sps:$4 sm:$0xff]   ;;  %v7802_v48 = vld [vmem:[#allocation28 + $0xe4] ss:$8 sps:$4 sm:$0xff]  }
 0x54c   :  { %4969 = vmatpush1.bf16.msra.mxu1 %v7740_v49  ;;  %5012 = vmatpush1.bf16.msra.mxu0 %v7743_v50  ;;  %v7805_v49 = vld [vmem:[#allocation28 + $0x1e4] ss:$8 sps:$4 sm:$0xff]   ;;  %v7800_v50 = vld [vmem:[#allocation28 + $0xe0] ss:$8 sps:$4 sm:$0xff]  }
 0x54d   :  { %5482 = vmatprep.subr.bf16.mxu1 %v7748_v17  ;;  %5525 = vmatprep.subr.bf16.mxu0 %v7751_v45  ;;  %v7803_v17 = vld [vmem:[#allocation28 + $0x1e0] ss:$8 sps:$4 sm:$0xff]   ;;  %v7808_v45 = vld [vmem:[#allocation28 + $0xd4] ss:$8 sps:$4 sm:$0xff]  }
 0x5cb   :  { %v2844_v51 = vpop.xlane.xlu1 %2843 }
 0x5cc   :  { %v2847_v52 = vmul.f32 0.0078125, %v2844_v51  ;;  %v7811_v51 = vld [vmem:[#allocation28 + $0x1d4] ss:$8 sps:$4 sm:$0xff]  }
 0x5ce   :  { %v2849_v9 = vadd.f32 1e-05, %v2847_v52  ;;  %v7806_v52 = vld [vmem:[#allocation28 + $0xd0] ss:$8 sps:$4 sm:$0xff]  }
 0x5cf   :  { %v2846_v55 = vpop.xlane.xlu1 %2845 }
 0x5d0   :  { %7876 = vrsqrt.f32 %v2849_v9  ;;  %v2848_v60 = vmul.f32 0.0078125, %v2846_v55  ;;  %v7809_v9 = vld [vmem:[#allocation28 + $0x1d0] ss:$8 sps:$4 sm:$0xff]   ;;  %v7814_v55 = vld [vmem:[#allocation28 + $0xc4] ss:$8 sps:$4 sm:$0xff]  }
 0x5d2   :  { %v2850_v0 = vadd.f32 1e-05, %v2848_v60  ;;  %v7817_v60 = vld [vmem:[#allocation28 + $0x1c4] ss:$8 sps:$4 sm:$0xff]  }
 0x5d4   :  { %7878 = vrsqrt.f32 %v2850_v0  ;;  %v7812_v0 = vld [vmem:[#allocation28 + $0xc0] ss:$8 sps:$4 sm:$0xff]  }
 0x5dd   :  { %v7877_v40 = vpop.eup %7876 }
 0x5de   :  { %v2853_v5 = vmul.f32 %v7877_v40, %v8862_v16  ;;  %v7752_v16 = vld [vmem:[#allocation28 + $0x60] ss:$8 sps:$4 sm:$0xff]  }
 0x5df   :  { %v7815_v40 = vld [vmem:[#allocation28 + $0x1c0] ss:$8 sps:$4 sm:$0xff]  }
 0x5e0   :  { %v2861_v53 = vmul.f32 %v6349_v34, %v2853_v5  ;;  %v7823_v5 = vld [vmem:[#allocation28 + $0x1b4] ss:$8 sps:$4 sm:$0xff]  }
 0x5e1   :  { %v7879_v13 = vpop.eup %7878 }
 0x5e2   :  { %v2854_v18 = vmul.f32 %v7879_v13, %v8867_v28  ;;  %v2869_v61 = vadd.f32 %v6350_v15, %v2861_v53  ;;  %v7763_v28 = vld [vmem:[#allocation28 + $0x154] ss:$8 sps:$4 sm:$0xff]   ;;  %v7818_v53 = vld [vmem:[#allocation28 + $0xb0] ss:$8 sps:$4 sm:$0xff]  }
 0x5e3   :  { %v7821_v13 = vld [vmem:[#allocation28 + $0x1b0] ss:$8 sps:$4 sm:$0xff]  }
 0x5e4   :  { %v2862_v47 = vmul.f32 %v6349_v34, %v2854_v18  ;;  %v2871_v22 = vmax.f32 %v2869_v61, 0.0  ;;  %v7820_v34 = vld [vmem:[#allocation28 + $0xb4] ss:$8 sps:$4 sm:$0xff]   ;;  %v7829_v18 = vld [vmem:[#allocation28 + $0x1a4] ss:$8 sps:$4 sm:$0xff]  }
 0x5e5   :  { %v7827_v61 = vld [vmem:[#allocation28 + $0x1a0] ss:$8 sps:$4 sm:$0xff]  }
 0x5e6   :  { %v2870_v21 = vadd.f32 %v6350_v15, %v2862_v47  ;;  %v7826_v15 = vld [vmem:[#allocation28 + $0xa4] ss:$8 sps:$4 sm:$0xff]   ;;  %v7824_v47 = vld [vmem:[#allocation28 + $0xa0] ss:$8 sps:$4 sm:$0xff]  }
 0x5e8   :  { %v2872_v23 = vmax.f32 %v2870_v21, 0.0  ;;  %v7832_v21 = vld [vmem:[#allocation28 + $0x94] ss:$8 sps:$4 sm:$0xff]  }
 0x5ea   :  { %v4761_v27 = vpack.c.bf16 %v2872_v23, %v2871_v22  ;;  %v7835_v22 = vld [vmem:[#allocation28 + $0x194] ss:$8 sps:$4 sm:$0xff]   ;;  %v7830_v23 = vld [vmem:[#allocation28 + $0x90] ss:$8 sps:$4 sm:$0xff]  }
 0x5ec   :  { %4987 = vmatmul.mubr.bf16.vlgmr.msra.gmra.mxu1 %v4761_v27  ;;  %5030 = vmatmul.mubr.bf16.vlgmr.msra.gmra.mxu0 %v4761_v27  ;;  %v7838_v27 = vld [vmem:[#allocation28 + $0x84] ss:$8 sps:$4 sm:$0xff]  }
 0x5ed   :  { %5483 = vmatpush1.bf16.msra.mxu1 %v7746_v24  ;;  %5526 = vmatpush1.bf16.msra.mxu0 %v7749_v8  ;;  %v7833_v24 = vld [vmem:[#allocation28 + $0x190] ss:$8 sps:$4 sm:$0xff]   ;;  %v7836_v8 = vld [vmem:[#allocation28 + $0x80] ss:$8 sps:$4 sm:$0xff]  }
 0x5ee   :  { %5484 = vmatprep.subr.bf16.mxu1 %v7754_v29  ;;  %5527 = vmatprep.subr.bf16.mxu0 %v7757_v4  ;;  %v7839_v29 = vld [vmem:[#allocation28 + $0x180] ss:$8 sps:$4 sm:$0xff]   ;;  %v7841_v4 = vld [vmem:[#allocation28 + $0x184] ss:$8 sps:$4 sm:$0xff]  }
 0x5f1   :  { %5485 = vmatpush1.bf16.msra.mxu1 %v7752_v16  ;;  %5528 = vmatpush1.bf16.msra.mxu0 %v7755_v30  ;;  %v7842_v16 = vld [vmem:[%s8973_s28 + $0x78] sm:$0xff]   ;;  %v3811_v30 = vpop.f32.mrf.mxu1 }
 0x5f2   :  { %5486 = vmatprep.subr.bf16.mxu1 %v7760_v31  ;;  %5529 = vmatprep.subr.bf16.mxu0 %v7763_v28  ;;  %v3854_v31 = vpop.f32.mrf.mxu0 }
 0x5f3   :  { %v3813_v28 = vpop.f32.mrf.mxu1 }
 0x5f5   :  { %5487 = vmatpush1.bf16.msra.mxu1 %v7758_v32  ;;  %5530 = vmatpush1.bf16.msra.mxu0 %v7761_v33  ;;  %v3856_v32 = vpop.f32.mrf.mxu0  ;;  %v3815_v33 = vpop.f32.mrf.mxu1 }
 0x5f6   :  { %5488 = vmatprep.subr.bf16.mxu1 %v7766_v58  ;;  %5531 = vmatprep.subr.bf16.mxu0 %v7769_v19 }
 0x5f7   :  { %v3858_v58 = vpop.f32.mrf.mxu0  ;;  %v3817_v19 = vpop.f32.mrf.mxu1 }
 0x5f9   :  { %5489 = vmatpush1.bf16.msra.mxu1 %v7764_v35  ;;  %5532 = vmatpush1.bf16.msra.mxu0 %v7767_v63  ;;  %v3860_v35 = vpop.f32.mrf.mxu0  ;;  %v3897_v63 = vpop.f32.mrf.mxu1 }
 0x5fa   :  { %5490 = vmatprep.subr.bf16.mxu1 %v7772_v57  ;;  %5533 = vmatprep.subr.bf16.mxu0 %v7775_v1 }
 0x5fb   :  { %v3940_v57 = vpop.f32.mrf.mxu0  ;;  %v3899_v1 = vpop.f32.mrf.mxu1 }
 0x5fd   :  { %5491 = vmatpush1.bf16.msra.mxu1 %v7770_v6  ;;  %5534 = vmatpush1.bf16.msra.mxu0 %v7773_v43  ;;  %v3942_v6 = vpop.f32.mrf.mxu0  ;;  %v3901_v43 = vpop.f32.mrf.mxu1 }
 0x5fe   :  { %5492 = vmatprep.subr.bf16.mxu1 %v7778_v59  ;;  %5535 = vmatprep.subr.bf16.mxu0 %v7781_v36 }
 0x5ff   :  { %v3944_v59 = vpop.f32.mrf.mxu0  ;;  %v3903_v36 = vpop.f32.mrf.mxu1 }
 0x601   :  { %5493 = vmatpush1.bf16.msra.mxu1 %v7776_v37  ;;  %5536 = vmatpush1.bf16.msra.mxu0 %v7779_v38  ;;  %v3946_v37 = vpop.f32.mrf.mxu0  ;;  %v4623_v38 = vpop.f32.mrf.mxu1 }
 0x602   :  { %5494 = vmatprep.subr.bf16.mxu1 %v7784_v39  ;;  %5537 = vmatprep.subr.bf16.mxu0 %v7787_v41 }
 0x603   :  { %v4666_v39 = vpop.f32.mrf.mxu0  ;;  %v4625_v41 = vpop.f32.mrf.mxu1 }
 0x605   :  { %5495 = vmatpush1.bf16.msra.mxu1 %v7782_v42  ;;  %5538 = vmatpush1.bf16.msra.mxu0 %v7785_v20  ;;  %v4668_v42 = vpop.f32.mrf.mxu0  ;;  %v4627_v20 = vpop.f32.mrf.mxu1 }
 0x606   :  { %5496 = vmatprep.subr.bf16.mxu1 %v7790_v54  ;;  %5539 = vmatprep.subr.bf16.mxu0 %v7793_v10 }
 0x607   :  { %v4670_v54 = vpop.f32.mrf.mxu0  ;;  %v4629_v10 = vpop.f32.mrf.mxu1 }
 0x609   :  { %5497 = vmatpush1.bf16.msra.mxu1 %v7788_v25  ;;  %5540 = vmatpush1.bf16.msra.mxu0 %v7791_v26  ;;  %v4672_v25 = vpop.f32.mrf.mxu0  ;;  %v4709_v26 = vpop.f32.mrf.mxu1 }
 0x60a   :  { %5498 = vmatprep.subr.bf16.mxu1 %v7796_v11  ;;  %5541 = vmatprep.subr.bf16.mxu0 %v7799_v44 }
 0x60b   :  { %v4752_v11 = vpop.f32.mrf.mxu0  ;;  %v4711_v44 = vpop.f32.mrf.mxu1 }
 0x60d   :  { %5499 = vmatpush2.bf16.msra.mxu1 %v7794_v7  ;;  %5542 = vmatpush2.bf16.msra.mxu0 %v7797_v46  ;;  %v4754_v7 = vpop.f32.mrf.mxu0  ;;  %v4713_v46 = vpop.f32.mrf.mxu1 }
 0x60e   :  { %5500 = vmatprep.subr.bf16.mxu1 %v7802_v48  ;;  %5543 = vmatprep.subr.bf16.mxu0 %v7805_v49  ;;  %v3855_v49 = vadd.f32 %v3854_v31, %v3811_v30 }
 0x60f   :  { %v4756_v48 = vpop.f32.mrf.mxu0 }
 0x611   :  { %5501 = vmatpush2.bf16.msra.mxu1 %v7800_v50  ;;  %5544 = vmatpush2.bf16.msra.mxu0 %v7803_v17  ;;  %v3857_v50 = vadd.f32 %v3856_v32, %v3813_v28  ;;  %v3859_v17 = vadd.f32 %v3858_v58, %v3815_v33 }
 0x612   :  { %5502 = vmatprep.subr.bf16.mxu1 %v7808_v45  ;;  %5545 = vmatprep.subr.bf16.mxu0 %v7811_v51  ;;  %v3861_v45 = vadd.f32 %v3860_v35, %v3817_v19  ;;  %v3941_v51 = vadd.f32 %v3940_v57, %v3897_v63 }
 0x615   :  { %5503 = vmatpush2.bf16.msra.mxu1 %v7806_v52  ;;  %5546 = vmatpush2.bf16.msra.mxu0 %v7809_v9  ;;  %v3943_v52 = vadd.f32 %v3942_v6, %v3899_v1  ;;  %v4715_v9 = vpop.f32.mrf.mxu1 }
 0x616   :  { %5504 = vmatprep.subr.bf16.mxu1 %v7814_v55  ;;  %5547 = vmatprep.subr.bf16.mxu0 %v7817_v60  ;;  %v4758_v55 = vpop.f32.mrf.mxu0  ;;  %v4624_v60 = vadd.f32 %v4623_v38, %v3855_v49 }
 0x619   :  { %5505 = vmatpush2.bf16.msra.mxu1 %v7812_v0  ;;  %5548 = vmatpush2.bf16.msra.mxu0 %v7815_v40  ;;  %v4626_v0 = vadd.f32 %v4625_v41, %v3857_v50  ;;  %v3945_v40 = vadd.f32 %v3944_v59, %v3901_v43  ;;  %v7843_v50 = vld [vmem:[%s8973_s28 + $0x38] sm:$0xff]  }
 0x61a   :  { %5506 = vmatprep.subr.bf16.mxu1 %v7820_v34  ;;  %5549 = vmatprep.subr.bf16.mxu0 %v7823_v5  ;;  %v3947_v34 = vadd.f32 %v3946_v37, %v3903_v36  ;;  %v4628_v5 = vadd.f32 %v4627_v20, %v3859_v17 }
 0x61d   :  { %5507 = vmatpush2.bf16.msra.mxu1 %v7818_v53  ;;  %5550 = vmatpush2.bf16.msra.mxu0 %v7821_v13  ;;  %v4630_v53 = vadd.f32 %v4629_v10, %v3861_v45  ;;  %v4710_v13 = vadd.f32 %v4709_v26, %v3941_v51  ;;  %v7844_v51 = vld [vmem:[%s8973_s28 + $0x70] sm:$0xff]  }
 0x61e   :  { %5508 = vmatprep.subr.bf16.mxu1 %v7826_v15  ;;  %5551 = vmatprep.subr.bf16.mxu0 %v7829_v18  ;;  %v4712_v15 = vadd.f32 %v4711_v44, %v3943_v52  ;;  %v7845_v52 = vld [vmem:[%s8973_s28 + $0x30] sm:$0xff]  }
 0x621   :  { %5509 = vmatpush2.bf16.msra.mxu1 %v7824_v47  ;;  %5552 = vmatpush2.bf16.msra.mxu0 %v7827_v61  ;;  %v5048_v47 = vld [vmem:[#allocation27] sm:$0xf] }
 0x622   :  { %5510 = vmatprep.subr.bf16.mxu1 %v7832_v21  ;;  %5553 = vmatprep.subr.bf16.mxu0 %v7835_v22  ;;  %v4714_v21 = vadd.f32 %v4713_v46, %v3945_v40  ;;  %v4716_v22 = vadd.f32 %v4715_v9, %v3947_v34  ;;  %v5053_v32 = vrot.slane %v5048_v47, %v8701_v3  ;;  %v7846_v9 = vld [vmem:[%s8973_s28 + $0x68] sm:$0xff]   ;;  %v7850_v40 = vld [vmem:[%s8973_s28 + $0x58] sm:$0xff]  }
 0x623   :  { %v5061_v33 = vrot.slane %v5048_v47, %v8705_v12  ;;  %v5057_v35 = vrot.slane %v5048_v47, %v8699_v62  ;;  %v5065_v63 = vrot.slane %v5048_v47, %v8707_v14  ;;  %v7851_v34 = vld [vmem:[%s8973_s28 + $0x18] sm:$0xff]   ;;  %v7857_v47 = vld [vmem:[%s8973_s28] sm:$0xff]  }
 0x624   :  { %v4757_v31 = vadd.f32 %v4756_v48, %v4714_v21  ;;  %v4759_v28 = vadd.f32 %v4758_v55, %v4716_v22  ;;  %v7847_v55 = vld [vmem:[%s8973_s28 + $0x28] sm:$0xff]   ;;  %v7859_v21 = vld [vmem:[%s8974_s8 + $0x30] sm:$0xff]  }
 0x625   :  { %5511 = vmatpush2.bf16.msra.mxu1 %v7830_v23  ;;  %5554 = vmatpush2.bf16.msra.mxu0 %v7833_v24  ;;  %v4667_v23 = vadd.f32 %v4666_v39, %v4624_v60  ;;  %v4669_v24 = vadd.f32 %v4668_v42, %v4626_v0  ;;  %v7848_v60 = vld [vmem:[%s8973_s28 + $0x60] sm:$0xff]   ;;  %v7860_v22 = vld [vmem:[%s8974_s8 + $0x28] sm:$0xff]  }
 0x626   :  { %5512 = vmatprep.subr.bf16.mxu1 %v7838_v27  ;;  %5555 = vmatprep.subr.bf16.mxu0 %v7841_v4  ;;  %v4673_v27 = vadd.f32 %v4672_v25, %v4630_v53  ;;  %v4755_v4 = vadd.f32 %v4754_v7, %v4712_v15  ;;  %v7849_v0 = vld [vmem:[%s8973_s28 + $0x20] sm:$0xff]   ;;  %v7853_v53 = vld [vmem:[%s8973_s28 + $0x10] sm:$0xff]   ;;  %v7855_v15 = vld [vmem:[%s8973_s28 + $0x8] sm:$0xff]  }
 0x629   :  { %5513 = vmatpush2.bf16.msra.mxu1 %v7836_v8  ;;  %5556 = vmatpush2.bf16.msra.mxu0 %v7839_v29  ;;  %v4671_v8 = vadd.f32 %v4670_v54, %v4628_v5  ;;  %v4753_v29 = vadd.f32 %v4752_v11, %v4710_v13  ;;  %v7852_v5 = vld [vmem:[%s8973_s28 + $0x50] sm:$0xff]   ;;  %v7854_v13 = vld [vmem:[%s8973_s28 + $0x48] sm:$0xff]  }
 0x62a   :  { %6814 = vmatprep.subr.bf16.mxu0 %v8424_v56  ;;  %6749 = vmatprep.subr.bf16.mxu1 %v7842_v16 }
 0x6ac   :  { %v4988_v18 = vpop.f32.mrf.mxu1  ;;  %v5031_v61 = vpop.f32.mrf.mxu0 }
 0x6ad   :  { %v5040_v58 = vadd.f32 %v4988_v18, %v4667_v23  ;;  %v5042_v19 = vadd.f32 %v5031_v61, %v4753_v29  ;;  %v7856_v18 = vld [vmem:[%s8973_s28 + $0x40] sm:$0xff]   ;;  %v7858_v61 = vld [vmem:[%s8974_s8 + $0x38] sm:$0xff]  }
 0x6ae   :  { %v4990_v16 = vpop.f32.mrf.mxu1  ;;  %v5033_v30 = vpop.f32.mrf.mxu0  ;;  %v7861_v23 = vld [vmem:[%s8974_s8 + $0x20] sm:$0xff]  }
 0x6af   :  { %v5041_v6 = vadd.f32 %v4990_v16, %v4669_v24  ;;  %v5043_v43 = vadd.f32 %v5033_v30, %v4755_v4  ;;  %v5070_v12 = vadd.f32 %v5053_v32, %v5040_v58  ;;  %v5072_v54 = vadd.f32 %v5061_v33, %v5042_v19  ;;  %v5150_v24 = vld [vmem:[#allocation30] sm:$0x3] }
 0x6b0   :  { %v4992_v57 = vpop.f32.mrf.mxu1  ;;  %v5035_v1 = vpop.f32.mrf.mxu0  ;;  %v5159_v4 = vrot.slane %v5150_v24, %v8699_v62 }
 0x6b1   :  { %v5044_v59 = vadd.f32 %v4992_v57, %v4671_v8  ;;  %v5046_v36 = vadd.f32 %v5035_v1, %v4757_v31  ;;  %v5071_v10 = vadd.f32 %v5057_v35, %v5041_v6  ;;  %v5073_v25 = vadd.f32 %v5065_v63, %v5043_v43 }
 0x6b2   :  { %v4994_v37 = vpop.f32.mrf.mxu1  ;;  %v5037_v38 = vpop.f32.mrf.mxu0  ;;  %v5155_v8 = vrot.slane %v5150_v24, %v8701_v3  ;;  %v6735_v24 = vld [vmem:[#allocation36] ss:$0 sm:$0xff] }
 0x6b3   :  { %v5074_v39 = vadd.f32 %v5053_v32, %v5044_v59  ;;  %v5076_v41 = vadd.f32 %v5061_v33, %v5046_v36  ;;  %v5045_v42 = vadd.f32 %v4994_v37, %v4673_v27  ;;  %v5047_v20 = vadd.f32 %v5037_v38, %v4759_v28  ;;  %v7862_v37 = vld [vmem:[%s8974_s8 + $0x18] sm:$0xff]   ;;  %v7863_v38 = vld [vmem:[%s8974_s8 + $0x10] sm:$0xff]  }
 0x6b5   :  { %v5075_v26 = vadd.f32 %v5057_v35, %v5045_v42  ;;  %v5077_v14 = vadd.f32 %v5065_v63, %v5047_v20  ;;  %v5078_v11 = vpack.c.bf16 %v5074_v39, %v5070_v12  ;;  %v5080_v44 = vpack.c.bf16 %v5076_v41, %v5072_v54  ;;  %v7864_v39 = vld [vmem:[%s8974_s8 + $0x8] sm:$0xff]   ;;  %v7865_v41 = vld [vmem:[%s8974_s8] sm:$0xff]   ;;  %v7866_v42 = vld [vmem:[%s8975_s1 + $0x18] sm:$0xff]  }
 0x6b7   :  { %v5079_v7 = vpack.c.bf16 %v5075_v26, %v5071_v10  ;;  %v5081_v46 = vpack.c.bf16 %v5077_v14, %v5073_v25  ;;  %v5082_v17 = vmax.bf16 %v8423_v2, %v5078_v11  ;;  %v5084_v45 = vmax.bf16 %v8423_v2, %v5080_v44  ;;  %v6703_v25 = vld [vmem:[#allocation31] ss:$0 sm:$0xff] }
 0x6b9   :  { %v5083_v48 = vmax.bf16 %v8423_v2, %v5079_v7  ;;  %v5085_v49 = vmax.bf16 %v8423_v2, %v5081_v46 }
 0x6bb   :  { %5514 = vmatprep.mubr.bf16.mxu1 %v5083_v48  ;;  %5557 = vmatprep.mubr.bf16.mxu0 %v5085_v49  ;;  %v7867_v48 = vld [vmem:[%s8975_s1 + $0x10] sm:$0xff]   ;;  %v7868_v49 = vld [vmem:[%s8975_s1 + $0x8] sm:$0xff]  }
 0x6bc   :  { %5515 = vmatmul.mubr.bf16.vlgmr.msra.gmra.mxu1 %v5082_v17  ;;  %5558 = vmatmul.mubr.bf16.vlgmr.msra.gmra.mxu0 %v5084_v45  ;;  %v6720_v45 = vld [vmem:[#allocation33] ss:$0 sm:$0xff] }
 0x6bd   :  { %6750 = vmatpush3.bf16.msra.mxu1 %v7843_v50  ;;  %6830 = vmatprep.mubr.msk.bf16.mxu0 %vm8425_vm4, %v8424_v56  ;;  %v7869_v50 = vld [vmem:[%s8975_s1] sm:$0xff]  }
 0x6be   :  { %6751 = vmatprep.subr.bf16.mxu1 %v7844_v51  ;;  %6815 = vmatpush3.bf16.msra.mxu0 %v7858_v61 }
 0x6bf   :  { %6816 = vmatprep.subr.bf16.mxu0 %v8424_v56 }
 0x6c1   :  { %6752 = vmatpush3.bf16.msra.mxu1 %v7845_v52 }
 0x6c2   :  { %6753 = vmatprep.subr.bf16.mxu1 %v7846_v9  ;;  %6817 = vmatpush3.bf16.msra.mxu0 %v7859_v21 }
 0x6c3   :  { %6818 = vmatprep.subr.bf16.mxu0 %v8424_v56 }
 0x6c5   :  { %6754 = vmatpush3.bf16.msra.mxu1 %v7847_v55 }
 0x6c6   :  { %6755 = vmatprep.subr.bf16.mxu1 %v7848_v60  ;;  %6819 = vmatpush3.bf16.msra.mxu0 %v7860_v22 }
 0x6c7   :  { %6820 = vmatprep.subr.bf16.mxu0 %v8424_v56 }
 0x6c9   :  { %6756 = vmatpush3.bf16.msra.mxu1 %v7849_v0 }
 0x6ca   :  { %6757 = vmatprep.subr.bf16.mxu1 %v7850_v40  ;;  %6821 = vmatpush3.bf16.msra.mxu0 %v7861_v23 }
 0x6cb   :  { %6822 = vmatprep.subr.bf16.mxu0 %v8424_v56 }
 0x6cd   :  { %6758 = vmatpush3.bf16.msra.mxu1 %v7851_v34  ;;  %v7870_v34 = vld [vmem:[%s8574_s6 + $0x8] sm:$0xff]  }
 0x6ce   :  { %6759 = vmatprep.subr.bf16.mxu1 %v7852_v5  ;;  %6823 = vmatpush3.bf16.msra.mxu0 %v7862_v37  ;;  %v7871_v5 = vld [vmem:[%s8574_s6] sm:$0xff]  }
 0x6cf   :  { %6824 = vmatprep.subr.bf16.mxu0 %v8424_v56 }
 0x6d1   :  { %6760 = vmatpush3.bf16.msra.mxu1 %v7853_v53 }
 0x6d2   :  { %6761 = vmatprep.subr.bf16.mxu1 %v7854_v13  ;;  %6825 = vmatpush3.bf16.msra.mxu0 %v7863_v38  ;;  %v6729_v13 = vld [vmem:[#allocation34] ss:$0 sm:$0xff] }
 0x6d3   :  { %6826 = vmatprep.subr.bf16.mxu0 %v8424_v56 }
 0x6d5   :  { %6762 = vmatpush3.bf16.msra.mxu1 %v7855_v15 }
 0x6d6   :  { %6763 = vmatprep.subr.bf16.mxu1 %v7856_v18  ;;  %6827 = vmatpush3.bf16.msra.mxu0 %v7864_v39 }
 0x6d7   :  { %6828 = vmatprep.subr.bf16.mxu0 %v8424_v56 }
 0x6d9   :  { %6764 = vmatpush3.bf16.msra.mxu1 %v7857_v47 }
 0x6da   :  { %6834 = vmatprep.subr.bf16.mxu1 %v8424_v56  ;;  %6829 = vmatpush3.bf16.msra.mxu0 %v7865_v41 }
 0x6db   :  { %6846 = vmatprep.subr.bf16.mxu0 %v8424_v56 }
 0x77c   :  { %v5516_v27 = vpop.f32.mrf.mxu1  ;;  %v5559_v29 = vpop.f32.mrf.mxu0 }
 0x77d   :  { %v5517_v31 = vadd.f32 %v5516_v27, %v5155_v8 }
 0x77e   :  { %v5518_v16 = vpop.f32.mrf.mxu1  ;;  %v5561_v30 = vpop.f32.mrf.mxu0 }
 0x77f   :  { %v5519_v33 = vadd.f32 %v5518_v16, %v5159_v4  ;;  %v5560_v57 = vadd.f32 %v5559_v29, %v5517_v31 }
 0x780   :  { %v5520_v28 = vpop.f32.mrf.mxu1  ;;  %v5563_v32 = vpop.f32.mrf.mxu0 }
 0x781   :  { %v5521_v58 = vadd.f32 %v5520_v28, %v5155_v8  ;;  %v5562_v3 = vadd.f32 %v5561_v30, %v5519_v33 }
 0x782   :  { %v5522_v19 = vpop.f32.mrf.mxu1  ;;  %v5565_v1 = vpop.f32.mrf.mxu0 }
 0x783   :  { %v5564_v35 = vadd.f32 %v5563_v32, %v5521_v58  ;;  %v5523_v63 = vadd.f32 %v5522_v19, %v5159_v4 }
 0x785   :  { %v5566_v6 = vadd.f32 %v5565_v1, %v5523_v63  ;;  %v5568_v43 = vpack.c.bf16 %v5564_v35, %v5560_v57 }
 0x787   :  { %v5569_v62 = vpack.c.bf16 %v5566_v6, %v5562_v3  ;;  %v5570_v36 = vmax.bf16 %v8423_v2, %v5568_v43 }
 0x789   :  { %v5571_v59 = vmax.bf16 %v8423_v2, %v5569_v62 }
 0x78b   :  { %5739 = vmatprep.mubr.bf16.mxu1 %v5571_v59 }
 0x78c   :  { %5740 = vmatmul.mubr.bf16.vlgmr.msra.gmra.mxu1 %v5570_v36 }
 0x78d   :  { %6842 = vmatprep.mubr.msk.bf16.mxu1 %vm8425_vm4, %v8424_v56  ;;  %6835 = vmatpush3.bf16.msra.mxu1 %v7866_v42 }
 0x78e   :  { %6836 = vmatprep.subr.bf16.mxu1 %v8424_v56 }
 0x791   :  { %6837 = vmatpush3.bf16.msra.mxu1 %v7867_v48 }
 0x792   :  { %6838 = vmatprep.subr.bf16.mxu1 %v8424_v56 }
 0x795   :  { %6839 = vmatpush3.bf16.msra.mxu1 %v7868_v49 }
 0x796   :  { %6840 = vmatprep.subr.bf16.mxu1 %v8424_v56 }
 0x799   :  { %6841 = vmatpush3.bf16.msra.mxu1 %v7869_v50 }
 0x84c   :  { %v6765_v20 = vpop.f32.mrf.mxu1 }
 0x84e   :  { %v6766_v12 = vpop.f32.mrf.mxu1 }
 0x84f   :  { %v6767_v10 = vadd.f32 %v6766_v12, %v6765_v20 }
 0x850   :  { %v6768_v54 = vpop.f32.mrf.mxu1 }
 0x851   :  { %v5742_v11 = vadd.f32 %v6767_v10, %v6703_v25 }
 0x852   :  { %v6769_v26 = vpop.f32.mrf.mxu1 }
 0x853   :  { %v6770_v14 = vadd.f32 %v6769_v26, %v6768_v54 }
 0x855   :  { %v5745_v44 = vadd.f32 %v6770_v14, %v6703_v25 }
 0x857   :  { %v5748_v7 = vpack.c.bf16 %v5745_v44, %v5742_v11 }
 0x859   :  { %v5749_v46 = vmax.bf16 %v8423_v2, %v5748_v7 }
 0x85b   :  { %6831 = vmatmul.mubr.bf16.vlgmr.msra.gmra.mxu0 %v5749_v46 }
 0x85c   :  { %6850 = vmatprep.mubr.msk.bf16.mxu0 %vm8425_vm4, %v8424_v56  ;;  %6847 = vmatpush3.bf16.msra.mxu0 %v7870_v34 }
 0x85d   :  { %6848 = vmatprep.subr.bf16.mxu0 %v8424_v56 }
 0x860   :  { %6849 = vmatpush3.bf16.msra.mxu0 %v7871_v5 }
 0x91b   :  { %v5855_v17 = vpop.f32.mrf.mxu0 }
 0x91c   :  { %v5856_v9 = vadd.f32 %v6720_v45, %v5855_v17 }
 0x91d   :  { %v6832_v51 = vpop.f32.mrf.mxu0 }
 0x91f   :  { %v5858_v52 = vpop.f32.mrf.mxu0 }
 0x920   :  { %v5859_v55 = vadd.f32 %v6720_v45, %v5858_v52 }
 0x921   :  { %v6833_v60 = vpop.f32.mrf.mxu0 }
 0x922   :  { %v5862_v0 = vpack.c.bf16 %v5859_v55, %v5856_v9 }
 0x924   :  { %v5863_v40 = vmax.bf16 %v8423_v2, %v5862_v0 }
 0x926   :  { %6843 = vmatmul.mubr.msk.bf16.vlgmr.msra.gmra.mxu1 %vm2785_vm7, %v5863_v40 }
 0x9e6   :  { %v5940_v53 = vpop.f32.mrf.mxu1 }
 0x9e7   :  { %v5941_v47 = vadd.f32 %v6729_v13, %v5940_v53 }
 0x9e8   :  { %v6844_v15 = vpop.f32.mrf.mxu1 }
 0x9ea   :  { %v5943_v18 = vpop.f32.mrf.mxu1 }
 0x9eb   :  { %v5944_v61 = vadd.f32 %v6729_v13, %v5943_v18 }
 0x9ec   :  { %v6845_v21 = vpop.f32.mrf.mxu1 }
 0x9ed   :  { %v5947_v22 = vpack.c.bf16 %v5944_v61, %v5941_v47 }
 0x9ef   :  { %v5948_v23 = vmax.bf16 %v8423_v2, %v5947_v22 }
 0x9f1   :  { %6851 = vmatmul.mubr.msk.bf16.vlgmr.msra.gmra.mxu0 %vm2699_vm6, %v5948_v23 }
 0xab1   :  { %v6009_v8 = vpop.f32.mrf.mxu0 }
 0xab2   :  { %v6010_v27 = vadd.f32 %v6735_v24, %v6009_v8 }
 0xab3   :  { %v6852_v56 = vpop.f32.mrf.mxu0 }
 0xab4   :  { %6016 = vst.msk [vmem:[%s8584_s20] sm:$0xff] %vm2625_vm5, %v6010_v27 }
 0xab5   :  { %v6012_v29 = vpop.f32.mrf.mxu0 }
 0xab6   :  { %v6013_v4 = vadd.f32 %v6735_v24, %v6012_v29 }
 0xab7   :  { %v6853_v16 = vpop.f32.mrf.mxu0 }
 0xab8   :  { %6017 = vst.msk [vmem:[%s8584_s20 + $0x8] sm:$0xff] %vm2625_vm5, %v6013_v4 }
 0xab9   :  { %6022 = vsyncpa [#allocation3], 1 }
 0xaba   :  { %6023 = vsyncpa [#allocation5], 1 }
 0xabb   :  { %6024 = vsyncpa [#allocation8], 1 }
 0xabc   :  { %6025 = vsyncpa [#allocation11], 1 }
 0xabd   :  { %6026 = vsyncpa [#allocation14], 1 }
 0xabe   :  { %6027 = vsyncpa [#allocation17], 1 }
 0xabf   :  { %6028 = vsyncpa [#allocation20], 1 }
 0xac0   :  { %6029 = vsyncpa [#allocation23], 1 }
 0xac1   :  { %6030 = vsyncpa [#allocation26], 1 }
 0xac2   :  { %6031 = vsyncpa [#allocation29], 1 }
 0xac3   :  { %6032 = vsyncpa [#allocation32], 1 }
 0xac4   :  { %6033 = vsyncpa [#allocation35], 1 }

</bundles_post_ra>
